<compile_context>
chip_gen: v7x
topology: tpu7x:2x2x1
jax: 0.10.0
libtpu: 0.0.40
codegen_flags: <defaults>
</compile_context>

<pallas_src>
import functools

import jax
import jax.numpy as jnp
from jax import lax
from jax.experimental import pallas as pl
from jax.experimental.pallas import tpu as pltpu

EPS = 1e-5
LANE = 128


def _round_up(x, m):
    return (x + m - 1) // m * m


def _vmem_limit_bytes():
    # Generation-aware VMEM budget: ~96 MiB on 128-MiB parts (v5e/v6e),
    # ~48 MiB on the 64-MiB v7x.
    try:
        cap = int(pltpu.get_tpu_info().vmem_capacity_bytes)
    except Exception:
        cap = 64 * 1024 * 1024
    return min(cap * 3 // 4, 100 * 1024 * 1024)


def _mosaic_params():
    return pltpu.CompilerParams(
        dimension_semantics=("parallel",),   # batch grid -> both TCs on v7x
        vmem_limit_bytes=_vmem_limit_bytes(),
    )


# ----------------------------------------------------------------------------
# Kernel 1: conv1 (3x3, stride s, pad 1) fused with the 1x1 downsample conv
# (centre tap), plus per-image BN sum/sumsq taken from the f32 accumulator.
# ----------------------------------------------------------------------------
def _conv1_kernel(*refs, stride, ho, wo, cin, cp, has_ds):
    if has_ds:
        x_ref, w_ref, wd_ref, y1_ref, yd_ref, st1_ref, std_ref = refs
    else:
        x_ref, w_ref, y1_ref, st1_ref = refs

    xv = x_ref[...]                 # (1, H+2, W+2, cin) or (4, Ho+1, Wo+1, cin)
    acc = jnp.zeros((ho * wo, cp), jnp.float32)
    acc_d = None
    for kh in range(3):
        for kw in range(3):
            if stride == 1:
                tap = xv[0, kh:kh + ho, kw:kw + wo, :]
            else:   # 2x2 phase-split input => only unit-stride slices needed
                tap = xv[2 * (kh % 2) + (kw % 2),
                         kh // 2:kh // 2 + ho,
                         kw // 2:kw // 2 + wo, :]
            tap = tap.reshape(ho * wo, cin)
            acc = acc + jnp.dot(tap, w_ref[3 * kh + kw],
                                preferred_element_type=jnp.float32)
            if has_ds and kh == 1 and kw == 1:
                # The strided 1x1 shortcut LHS is exactly the centre tap.
                acc_d = jnp.dot(tap, wd_ref[...],
                                preferred_element_type=jnp.float32)

    st1_ref[0, 0:1, :] = jnp.sum(acc, axis=0, keepdims=True)
    st1_ref[0, 1:2, :] = jnp.sum(acc * acc, axis=0, keepdims=True)
    y1_ref[...] = acc.astype(y1_ref.dtype).reshape(1, ho, wo, cp)
    if has_ds:
        std_ref[0, 0:1, :] = jnp.sum(acc_d, axis=0, keepdims=True)
        std_ref[0, 1:2, :] = jnp.sum(acc_d * acc_d, axis=0, keepdims=True)
        yd_ref[...] = acc_d.astype(yd_ref.dtype).reshape(1, ho, wo, cp)


def _conv1_call(x_in, w1_mat, wd_mat, *, n, ho, wo, cin, cp, stride, has_ds):
    kernel = functools.partial(_conv1_kernel, stride=stride, ho=ho, wo=wo,
                               cin=cin, cp=cp, has_ds=has_ds)
    if stride == 1:
        x_spec = pl.BlockSpec((1, ho + 2, wo + 2, cin), lambda i: (i, 0, 0, 0))
    else:
        x_spec = pl.BlockSpec((4, ho + 1, wo + 1, cin), lambda i: (i, 0, 0, 0))
    img_spec = pl.BlockSpec((1, ho, wo, cp), lambda i: (i, 0, 0, 0))
    st_spec = pl.BlockSpec((1, 2, cp), lambda i: (i, 0, 0))

    in_specs = [x_spec, pl.BlockSpec((9, cin, cp), lambda i: (0, 0, 0))]
    args = [x_in, w1_mat]
    out_specs = [img_spec]
    out_shape = [jax.ShapeDtypeStruct((n, ho, wo, cp), jnp.bfloat16)]
    if has_ds:
        in_specs.append(pl.BlockSpec((cin, cp), lambda i: (0, 0)))
        args.append(wd_mat)
        out_specs.append(img_spec)
        out_shape.append(jax.ShapeDtypeStruct((n, ho, wo, cp), jnp.bfloat16))
    out_specs.append(st_spec)
    out_shape.append(jax.ShapeDtypeStruct((n, 2, cp), jnp.float32))
    if has_ds:
        out_specs.append(st_spec)
        out_shape.append(jax.ShapeDtypeStruct((n, 2, cp), jnp.float32))

    return pl.pallas_call(
        kernel, grid=(n,), in_specs=in_specs, out_specs=out_specs,
        out_shape=out_shape, compiler_params=_mosaic_params(),
    )(*args)


# ----------------------------------------------------------------------------
# Kernel 2: conv2 (3x3, stride 1, pad 1) with BN1 affine + ReLU fused into the
# patch construction (the zero-halo h1 tile only ever lives in a VMEM scratch).
# ----------------------------------------------------------------------------
def _conv2_kernel(y1_ref, sc_ref, sh_ref, w_ref, y2_ref, st2_ref, hpad_ref,
                  *, ho, wo, cp):
    hpad_ref[...] = jnp.zeros_like(hpad_ref)
    h = jnp.maximum(y1_ref[0].astype(jnp.float32) * sc_ref[...] + sh_ref[...], 0.0)
    # Interior starts at column 8 so this store is sublane-aligned.
    hpad_ref[1:ho + 1, 8:8 + wo, :] = h.astype(hpad_ref.dtype)

    acc = jnp.zeros((ho * wo, cp), jnp.float32)
    for kh in range(3):
        for kw in range(3):
            tap = hpad_ref[kh:kh + ho, 7 + kw:7 + kw + wo, :]
            acc = acc + jnp.dot(tap.reshape(ho * wo, cp), w_ref[3 * kh + kw],
                                preferred_element_type=jnp.float32)

    st2_ref[0, 0:1, :] = jnp.sum(acc, axis=0, keepdims=True)
    st2_ref[0, 1:2, :] = jnp.sum(acc * acc, axis=0, keepdims=True)
    y2_ref[...] = acc.astype(y2_ref.dtype).reshape(1, ho, wo, cp)


def _conv2_call(y1, sc1, sh1, w2_mat, *, n, ho, wo, cp):
    kernel = functools.partial(_conv2_kernel, ho=ho, wo=wo, cp=cp)
    img_spec = pl.BlockSpec((1, ho, wo, cp), lambda i: (i, 0, 0, 0))
    vec_spec = pl.BlockSpec((1, cp), lambda i: (0, 0))
    return pl.pallas_call(
        kernel, grid=(n,),
        in_specs=[img_spec, vec_spec, vec_spec,
                  pl.BlockSpec((9, cp, cp), lambda i: (0, 0, 0))],
        out_specs=[img_spec, pl.BlockSpec((1, 2, cp), lambda i: (i, 0, 0))],
        out_shape=[jax.ShapeDtypeStruct((n, ho, wo, cp), jnp.bfloat16),
                   jax.ShapeDtypeStruct((n, 2, cp), jnp.float32)],
        scratch_shapes=[pltpu.VMEM((ho + 2, wo + 16, cp), jnp.bfloat16)],
        compiler_params=_mosaic_params(),
    )(y1, sc1, sh1, w2_mat)


# ----------------------------------------------------------------------------
# Kernel 3: fused epilogue. BN2 affine + shortcut (BN affine or identity) +
# residual add + final ReLU, f32 math, output written once.
# ----------------------------------------------------------------------------
def _epilogue_ds_kernel(y2_ref, sc2_ref, sh2_ref, yd_ref, scd_ref, shd_ref,
                        o_ref, *, cout):
    main = y2_ref[...].astype(jnp.float32) * sc2_ref[...] + sh2_ref[...]
    short = yd_ref[...].astype(jnp.float32) * scd_ref[...] + shd_ref[...]
    o_ref[...] = jnp.maximum(main + short, 0.0)[..., :cout].astype(o_ref.dtype)


def _epilogue_id_kernel(y2_ref, sc2_ref, sh2_ref, xs_ref, o_ref, *, cout):
    main = y2_ref[...].astype(jnp.float32) * sc2_ref[...] + sh2_ref[...]
    short = xs_ref[...].astype(jnp.float32)
    o_ref[...] = jnp.maximum(main[..., :cout] + short, 0.0).astype(o_ref.dtype)


def _epilogue_ds(y2, sc2, sh2, yd, scd, shd, *, n, ho, wo, cp, cout):
    kernel = functools.partial(_epilogue_ds_kernel, cout=cout)
    img = pl.BlockSpec((1, ho, wo, cp), lambda i: (i, 0, 0, 0))
    vec = pl.BlockSpec((1, cp), lambda i: (0, 0))
    return pl.pallas_call(
        kernel, grid=(n,),
        in_specs=[img, vec, vec, img, vec, vec],
        out_specs=pl.BlockSpec((1, ho, wo, cout), lambda i: (i, 0, 0, 0)),
        out_shape=jax.ShapeDtypeStruct((n, ho, wo, cout), jnp.float32),
        compiler_params=_mosaic_params(),
    )(y2, sc2, sh2, yd, scd, shd)


def _epilogue_id(y2, sc2, sh2, x_short, *, n, ho, wo, cp, cout):
    kernel = functools.partial(_epilogue_id_kernel, cout=cout)
    img_cp = pl.BlockSpec((1, ho, wo, cp), lambda i: (i, 0, 0, 0))
    vec = pl.BlockSpec((1, cp), lambda i: (0, 0))
    img_c = pl.BlockSpec((1, ho, wo, cout), lambda i: (i, 0, 0, 0))
    return pl.pallas_call(
        kernel, grid=(n,),
        in_specs=[img_cp, vec, vec, img_c],
        out_specs=img_c,
        out_shape=jax.ShapeDtypeStruct((n, ho, wo, cout), jnp.float32),
        compiler_params=_mosaic_params(),
    )(y2, sc2, sh2, x_short)


# ----------------------------------------------------------------------------
# Tiny plain-JAX glue: BN finalize (per-image sum/sumsq -> scale/shift).
# ----------------------------------------------------------------------------
def _bn_scale_shift(stats, m, gamma, beta, cp):
    tot = jnp.sum(stats, axis=0)                        # (2, cp), f32
    mean = tot[0] / m
    var = jnp.maximum(tot[1] / m - mean * mean, 0.0)    # biased variance
    g = jnp.zeros((cp,), jnp.float32).at[:gamma.shape[0]].set(gamma.astype(jnp.float32))
    b = jnp.zeros((cp,), jnp.float32).at[:beta.shape[0]].set(beta.astype(jnp.float32))
    scale = g * lax.rsqrt(var + EPS)
    shift = b - mean * scale
    return scale.reshape(1, cp), shift.reshape(1, cp)


# ----------------------------------------------------------------------------
# ResidualBlock forward
# ----------------------------------------------------------------------------
def residual_block_forward(x_nchw, params, stride):
    assert stride in (1, 2), "kernel supports stride 1 or 2"
    n, cin, h, w = x_nchw.shape
    if stride == 2:
        assert h % 2 == 0 and w % 2 == 0, "stride-2 path assumes even H/W"
    cout = params["w1"].shape[0]
    cp = _round_up(cout, LANE)
    ho = (h + 2 - 3) // stride + 1
    wo = (w + 2 - 3) // stride + 1
    m = n * ho * wo
    has_ds = (stride != 1) or (cin != cout)

    # NHWC + bf16 conv operands (f32 accumulation happens on the MXU).
    x_nhwc = jnp.transpose(x_nchw, (0, 2, 3, 1))
    x_bf = x_nhwc.astype(jnp.bfloat16)
    xp = jnp.pad(x_bf, ((0, 0), (1, 1), (1, 1), (0, 0)))
    if stride == 1:
        x_in = xp
    else:
        # Cheap 2x2 phase split so the conv1 kernel only needs unit-stride taps.
        phases = [xp[:, a::2, b::2, :] for a in range(2) for b in range(2)]
        x_in = jnp.stack(phases, axis=1).reshape(4 * n, ho + 1, wo + 1, cin)

    # Weights: (Cout, Cin, 3, 3) -> (9, Cin, Cp), tap index t = 3*kh + kw.
    w1_mat = jnp.transpose(params["w1"], (2, 3, 1, 0)).reshape(9, cin, cout)
    w1_mat = jnp.pad(w1_mat, ((0, 0), (0, 0), (0, cp - cout))).astype(jnp.bfloat16)
    w2_mat = jnp.transpose(params["w2"], (2, 3, 1, 0)).reshape(9, cout, cout)
    w2_mat = jnp.pad(w2_mat, ((0, 0), (0, cp - cout), (0, cp - cout))).astype(jnp.bfloat16)
    wd_mat = None
    if has_ds:
        wd_mat = jnp.pad(params["wd"][:, :, 0, 0].T,
                         ((0, 0), (0, cp - cout))).astype(jnp.bfloat16)

    # NOTE: conv biases b1/b2/bd are intentionally NOT applied: batch-statistic
    # BN subtracts the per-channel batch mean, which absorbs a bias exactly.

    # conv1 (+ fused 1x1 shortcut) -> raw bf16 outputs + per-image stats.
    res = _conv1_call(x_in, w1_mat, wd_mat, n=n, ho=ho, wo=wo, cin=cin, cp=cp,
                      stride=stride, has_ds=has_ds)
    if has_ds:
        y1, yd, st1, std = res
    else:
        y1, st1 = res
    sc1, sh1 = _bn_scale_shift(st1, m, params["g1"], params["be1"], cp)

    # conv2 with BN1 affine + ReLU fused into its patch construction.
    y2, st2 = _conv2_call(y1, sc1, sh1, w2_mat, n=n, ho=ho, wo=wo, cp=cp)
    sc2, sh2 = _bn_scale_shift(st2, m, params["g2"], params["be2"], cp)

    # Fused epilogue: BN2 affine + shortcut + residual add + final ReLU.
    if has_ds:
        scd, shd = _bn_scale_shift(std, m, params["gd"], params["bed"], cp)
        out = _epilogue_ds(y2, sc2, sh2, yd, scd, shd,
                           n=n, ho=ho, wo=wo, cp=cp, cout=cout)
    else:
        out = _epilogue_id(y2, sc2, sh2, x_bf,
                           n=n, ho=ho, wo=wo, cp=cp, cout=cout)

    # TODO(synk): when chaining blocks, keep NHWC and skip this transpose.
    return jnp.transpose(out, (0, 3, 1, 2))


# ----------------------------------------------------------------------------
# Pure-JAX f32 reference (training-mode BN, matches the PyTorch module)
# ----------------------------------------------------------------------------
def _ref_conv(x, w, b, s, pad):
    y = lax.conv_general_dilated(x, w, (s, s), ((pad, pad), (pad, pad)),
                                 dimension_numbers=("NCHW", "OIHW", "NCHW"))
    return y + b[None, :, None, None]


def _ref_bn(x, g, be):
    mean = x.mean(axis=(0, 2, 3), keepdims=True)
    var = jnp.square(x - mean).mean(axis=(0, 2, 3), keepdims=True)
    return g[None, :, None, None] * (x - mean) * lax.rsqrt(var + EPS) + be[None, :, None, None]


def residual_block_reference(x, params, stride):
    cin, cout = x.shape[1], params["w1"].shape[0]
    h = jnp.maximum(_ref_bn(_ref_conv(x, params["w1"], params["b1"], stride, 1),
                            params["g1"], params["be1"]), 0.0)
    y = _ref_bn(_ref_conv(h, params["w2"], params["b2"], 1, 1),
                params["g2"], params["be2"])
    if stride != 1 or cin != cout:
        sc = _ref_bn(_ref_conv(x, params["wd"], params["bd"], stride, 0),
                     params["gd"], params["bed"])
    else:
        sc = x
    return jnp.maximum(y + sc, 0.0)


def make_params(key, cin, cout, need_ds):
    ks = jax.random.split(key, 12)
    p = {
        "w1": 0.2 * jax.random.normal(ks[0], (cout, cin, 3, 3), jnp.float32),
        "b1": 0.1 * jax.random.normal(ks[1], (cout,), jnp.float32),
        "g1": 1.0 + 0.1 * jax.random.normal(ks[2], (cout,), jnp.float32),
        "be1": 0.1 * jax.random.normal(ks[3], (cout,), jnp.float32),
        "w2": 0.2 * jax.random.normal(ks[4], (cout, cout, 3, 3), jnp.float32),
        "b2": 0.1 * jax.random.normal(ks[5], (cout,), jnp.float32),
        "g2": 1.0 + 0.1 * jax.random.normal(ks[6], (cout,), jnp.float32),
        "be2": 0.1 * jax.random.normal(ks[7], (cout,), jnp.float32),
    }
    if need_ds:
        p.update({
            "wd": 0.2 * jax.random.normal(ks[8], (cout, cin, 1, 1), jnp.float32),
            "bd": 0.1 * jax.random.normal(ks[9], (cout,), jnp.float32),
            "gd": 1.0 + 0.1 * jax.random.normal(ks[10], (cout,), jnp.float32),
            "bed": 0.1 * jax.random.normal(ks[11], (cout,), jnp.float32),
        })
    return p


# ----------------------------------------------------------------------------
if __name__ == "__main__":
    fwd = jax.jit(residual_block_forward, static_argnums=2)

    # Config 1: downsample path — ResidualBlock(in=4, out=8, stride=2)
    N, Cin, H, W, Cout, stride = 2, 4, 16, 16, 8, 2
    params = make_params(jax.random.PRNGKey(0), Cin, Cout, need_ds=True)
    x = jax.random.normal(jax.random.PRNGKey(0), (N, Cin, H, W), jnp.float32)

    out = jax.block_until_ready(fwd(x, params, stride))
    ref = jax.block_until_ready(residual_block_reference(x, params, stride))
    assert out.shape == ref.shape, (out.shape, ref.shape)
    err = float(jnp.max(jnp.abs(out - ref)) / (jnp.max(jnp.abs(ref)) + 1e-12))
    assert err < 5e-2, f"downsample-path mismatch: rel-to-max err {err}"

    # Config 2: identity shortcut — ResidualBlock(8, 8, 1)
    params2 = make_params(jax.random.PRNGKey(1), 8, 8, need_ds=False)
    x2 = jax.random.normal(jax.random.PRNGKey(2), (2, 8, 16, 16), jnp.float32)
    out2 = jax.block_until_ready(fwd(x2, params2, 1))
    ref2 = jax.block_until_ready(residual_block_reference(x2, params2, 1))
    assert out2.shape == ref2.shape, (out2.shape, ref2.shape)
    err2 = float(jnp.max(jnp.abs(out2 - ref2)) / (jnp.max(jnp.abs(ref2)) + 1e-12))
    assert err2 < 5e-2, f"identity-path mismatch: rel-to-max err {err2}"

    print("KERNEL_OK")
</pallas_src>

<mosaic_0001>
module attributes {stable_mosaic.version = 11 : i64} {
  func.func @_conv2_kernel(%arg0: i32, %arg1: memref<1x8x8x128xbf16, #tpu.memory_space<vmem>>, %arg2: memref<1x128xf32, #tpu.memory_space<vmem>>, %arg3: memref<1x128xf32, #tpu.memory_space<vmem>>, %arg4: memref<9x128x128xbf16, #tpu.memory_space<vmem>>, %arg5: memref<1x8x8x128xbf16, #tpu.memory_space<vmem>>, %arg6: memref<1x2x128xf32, #tpu.memory_space<vmem>>, %arg7: memref<10x24x128xbf16, #tpu.memory_space<vmem>>) attributes {dimension_semantics = [#tpu.dimension_semantics<parallel>], iteration_bounds = array<i64: 2>, scalar_prefetch = 0 : i64, scratch_operands = 1 : i64, tpu.core_type = #tpu.core_type<tc>, window_params = [{transform_indices = @transform_0, window_bounds = array<i64: 1, 8, 8, 128>}, {pipeline_mode = #tpu.pipeline_mode<synchronous>, transform_indices = @transform_1, window_bounds = array<i64: 1, 128>}, {pipeline_mode = #tpu.pipeline_mode<synchronous>, transform_indices = @transform_2, window_bounds = array<i64: 1, 128>}, {pipeline_mode = #tpu.pipeline_mode<synchronous>, transform_indices = @transform_3, window_bounds = array<i64: 9, 128, 128>}, {transform_indices = @transform_4, window_bounds = array<i64: 1, 8, 8, 128>}, {transform_indices = @transform_5, window_bounds = array<i64: 1, 2, 128>}]} {
    %cst = arith.constant 0.000000e+00 : bf16
    %0 = vector.broadcast %cst : bf16 to vector<10x24x128xbf16>
    %c0 = arith.constant 0 : index
    %c0_0 = arith.constant 0 : index
    %c0_1 = arith.constant 0 : index
    %1 = vector.load %arg7[%c0, %c0_0, %c0_1] : memref<10x24x128xbf16, #tpu.memory_space<vmem>>, vector<10x24x128xbf16>
    tpu.vector_store %arg7[%c0, %c0_0, %c0_1], %0 {strides = array<i32>} : memref<10x24x128xbf16, #tpu.memory_space<vmem>>, vector<10x24x128xbf16>,
    %c0_2 = arith.constant 0 : index
    %c0_3 = arith.constant 0 : index
    %c0_4 = arith.constant 0 : index
    %c0_5 = arith.constant 0 : index
    %2 = vector.load %arg1[%c0_2, %c0_3, %c0_4, %c0_5] : memref<1x8x8x128xbf16, #tpu.memory_space<vmem>>, vector<1x8x8x128xbf16>
    %3 = vector.shape_cast %2 : vector<1x8x8x128xbf16> to vector<8x8x128xbf16>
    %4 = arith.extf %3 : vector<8x8x128xbf16> to vector<8x8x128xf32>
    %c0_6 = arith.constant 0 : index
    %c0_7 = arith.constant 0 : index
    %5 = vector.load %arg2[%c0_6, %c0_7] : memref<1x128xf32, #tpu.memory_space<vmem>>, vector<1x128xf32>
    %6 = vector.shape_cast %5 : vector<1x128xf32> to vector<1x1x128xf32>
    %7 = vector.broadcast %6 : vector<1x1x128xf32> to vector<8x8x128xf32>
    %8 = arith.mulf %4, %7 : vector<8x8x128xf32>
    %c0_8 = arith.constant 0 : index
    %c0_9 = arith.constant 0 : index
    %9 = vector.load %arg3[%c0_8, %c0_9] : memref<1x128xf32, #tpu.memory_space<vmem>>, vector<1x128xf32>
    %10 = vector.shape_cast %9 : vector<1x128xf32> to vector<1x1x128xf32>
    %11 = vector.broadcast %10 : vector<1x1x128xf32> to vector<8x8x128xf32>
    %12 = arith.addf %8, %11 : vector<8x8x128xf32>
    %cst_10 = arith.constant 0.000000e+00 : f32
    %13 = vector.broadcast %cst_10 : f32 to vector<8x8x128xf32>
    %14 = arith.maximumf %12, %13 : vector<8x8x128xf32>
    %15 = arith.truncf %14 : vector<8x8x128xf32> to vector<8x8x128xbf16>
    %c1 = arith.constant 1 : index
    %c8 = arith.constant 8 : index
    %c0_11 = arith.constant 0 : index
    %16 = vector.load %arg7[%c1, %c8, %c0_11] : memref<10x24x128xbf16, #tpu.memory_space<vmem>>, vector<8x8x128xbf16>
    tpu.vector_store %arg7[%c1, %c8, %c0_11], %15 {strides = array<i32>} : memref<10x24x128xbf16, #tpu.memory_space<vmem>>, vector<8x8x128xbf16>,
    %cst_12 = arith.constant 0.000000e+00 : f32
    %17 = vector.broadcast %cst_12 : f32 to vector<64x128xf32>
    %c0_13 = arith.constant 0 : index
    %c7 = arith.constant 7 : index
    %c0_14 = arith.constant 0 : index
    %18 = vector.load %arg7[%c0_13, %c7, %c0_14] : memref<10x24x128xbf16, #tpu.memory_space<vmem>>, vector<8x8x128xbf16>
    %19 = vector.shape_cast %18 : vector<8x8x128xbf16> to vector<64x128xbf16>
    %c0_15 = arith.constant 0 : index
    %c0_16 = arith.constant 0 : index
    %c0_17 = arith.constant 0 : index
    %20 = vector.load %arg4[%c0_15, %c0_16, %c0_17] : memref<9x128x128xbf16, #tpu.memory_space<vmem>>, vector<1x128x128xbf16>
    %21 = vector.shape_cast %20 : vector<1x128x128xbf16> to vector<128x128xbf16>
    %cst_18 = arith.constant dense<0.000000e+00> : vector<64x128xf32>
    %22 = tpu.matmul %19, %21, %cst_18 {dimension_numbers = #tpu.dot_dimension_numbers<[1], [0], [0], [1], [0, 0, 1, 1], [], []>} : vector<64x128xbf16>, vector<128x128xbf16>, vector<64x128xf32> -> vector<64x128xf32>
    %23 = arith.addf %17, %22 : vector<64x128xf32>
    %c0_19 = arith.constant 0 : index
    %c8_20 = arith.constant 8 : index
    %c0_21 = arith.constant 0 : index
    %24 = vector.load %arg7[%c0_19, %c8_20, %c0_21] : memref<10x24x128xbf16, #tpu.memory_space<vmem>>, vector<8x8x128xbf16>
    %25 = vector.shape_cast %24 : vector<8x8x128xbf16> to vector<64x128xbf16>
    %c1_22 = arith.constant 1 : index
    %c0_23 = arith.constant 0 : index
    %c0_24 = arith.constant 0 : index
    %26 = vector.load %arg4[%c1_22, %c0_23, %c0_24] : memref<9x128x128xbf16, #tpu.memory_space<vmem>>, vector<1x128x128xbf16>
    %27 = vector.shape_cast %26 : vector<1x128x128xbf16> to vector<128x128xbf16>
    %cst_25 = arith.constant dense<0.000000e+00> : vector<64x128xf32>
    %28 = tpu.matmul %25, %27, %cst_25 {dimension_numbers = #tpu.dot_dimension_numbers<[1], [0], [0], [1], [0, 0, 1, 1], [], []>} : vector<64x128xbf16>, vector<128x128xbf16>, vector<64x128xf32> -> vector<64x128xf32>
    %29 = arith.addf %23, %28 : vector<64x128xf32>
    %c0_26 = arith.constant 0 : index
    %c9 = arith.constant 9 : index
    %c0_27 = arith.constant 0 : index
    %30 = vector.load %arg7[%c0_26, %c9, %c0_27] : memref<10x24x128xbf16, #tpu.memory_space<vmem>>, vector<8x8x128xbf16>
    %31 = vector.shape_cast %30 : vector<8x8x128xbf16> to vector<64x128xbf16>
    %c2 = arith.constant 2 : index
    %c0_28 = arith.constant 0 : index
    %c0_29 = arith.constant 0 : index
    %32 = vector.load %arg4[%c2, %c0_28, %c0_29] : memref<9x128x128xbf16, #tpu.memory_space<vmem>>, vector<1x128x128xbf16>
    %33 = vector.shape_cast %32 : vector<1x128x128xbf16> to vector<128x128xbf16>
    %cst_30 = arith.constant dense<0.000000e+00> : vector<64x128xf32>
    %34 = tpu.matmul %31, %33, %cst_30 {dimension_numbers = #tpu.dot_dimension_numbers<[1], [0], [0], [1], [0, 0, 1, 1], [], []>} : vector<64x128xbf16>, vector<128x128xbf16>, vector<64x128xf32> -> vector<64x128xf32>
    %35 = arith.addf %29, %34 : vector<64x128xf32>
    %c1_31 = arith.constant 1 : index
    %c7_32 = arith.constant 7 : index
    %c0_33 = arith.constant 0 : index
    %36 = vector.load %arg7[%c1_31, %c7_32, %c0_33] : memref<10x24x128xbf16, #tpu.memory_space<vmem>>, vector<8x8x128xbf16>
    %37 = vector.shape_cast %36 : vector<8x8x128xbf16> to vector<64x128xbf16>
    %c3 = arith.constant 3 : index
    %c0_34 = arith.constant 0 : index
    %c0_35 = arith.constant 0 : index
    %38 = vector.load %arg4[%c3, %c0_34, %c0_35] : memref<9x128x128xbf16, #tpu.memory_space<vmem>>, vector<1x128x128xbf16>
    %39 = vector.shape_cast %38 : vector<1x128x128xbf16> to vector<128x128xbf16>
    %cst_36 = arith.constant dense<0.000000e+00> : vector<64x128xf32>
    %40 = tpu.matmul %37, %39, %cst_36 {dimension_numbers = #tpu.dot_dimension_numbers<[1], [0], [0], [1], [0, 0, 1, 1], [], []>} : vector<64x128xbf16>, vector<128x128xbf16>, vector<64x128xf32> -> vector<64x128xf32>
    %41 = arith.addf %35, %40 : vector<64x128xf32>
    %c1_37 = arith.constant 1 : index
    %c8_38 = arith.constant 8 : index
    %c0_39 = arith.constant 0 : index
    %42 = vector.load %arg7[%c1_37, %c8_38, %c0_39] : memref<10x24x128xbf16, #tpu.memory_space<vmem>>, vector<8x8x128xbf16>
    %43 = vector.shape_cast %42 : vector<8x8x128xbf16> to vector<64x128xbf16>
    %c4 = arith.constant 4 : index
    %c0_40 = arith.constant 0 : index
    %c0_41 = arith.constant 0 : index
    %44 = vector.load %arg4[%c4, %c0_40, %c0_41] : memref<9x128x128xbf16, #tpu.memory_space<vmem>>, vector<1x128x128xbf16>
    %45 = vector.shape_cast %44 : vector<1x128x128xbf16> to vector<128x128xbf16>
    %cst_42 = arith.constant dense<0.000000e+00> : vector<64x128xf32>
    %46 = tpu.matmul %43, %45, %cst_42 {dimension_numbers = #tpu.dot_dimension_numbers<[1], [0], [0], [1], [0, 0, 1, 1], [], []>} : vector<64x128xbf16>, vector<128x128xbf16>, vector<64x128xf32> -> vector<64x128xf32>
    %47 = arith.addf %41, %46 : vector<64x128xf32>
    %c1_43 = arith.constant 1 : index
    %c9_44 = arith.constant 9 : index
    %c0_45 = arith.constant 0 : index
    %48 = vector.load %arg7[%c1_43, %c9_44, %c0_45] : memref<10x24x128xbf16, #tpu.memory_space<vmem>>, vector<8x8x128xbf16>
    %49 = vector.shape_cast %48 : vector<8x8x128xbf16> to vector<64x128xbf16>
    %c5 = arith.constant 5 : index
    %c0_46 = arith.constant 0 : index
    %c0_47 = arith.constant 0 : index
    %50 = vector.load %arg4[%c5, %c0_46, %c0_47] : memref<9x128x128xbf16, #tpu.memory_space<vmem>>, vector<1x128x128xbf16>
    %51 = vector.shape_cast %50 : vector<1x128x128xbf16> to vector<128x128xbf16>
    %cst_48 = arith.constant dense<0.000000e+00> : vector<64x128xf32>
    %52 = tpu.matmul %49, %51, %cst_48 {dimension_numbers = #tpu.dot_dimension_numbers<[1], [0], [0], [1], [0, 0, 1, 1], [], []>} : vector<64x128xbf16>, vector<128x128xbf16>, vector<64x128xf32> -> vector<64x128xf32>
    %53 = arith.addf %47, %52 : vector<64x128xf32>
    %c2_49 = arith.constant 2 : index
    %c7_50 = arith.constant 7 : index
    %c0_51 = arith.constant 0 : index
    %54 = vector.load %arg7[%c2_49, %c7_50, %c0_51] : memref<10x24x128xbf16, #tpu.memory_space<vmem>>, vector<8x8x128xbf16>
    %55 = vector.shape_cast %54 : vector<8x8x128xbf16> to vector<64x128xbf16>
    %c6 = arith.constant 6 : index
    %c0_52 = arith.constant 0 : index
    %c0_53 = arith.constant 0 : index
    %56 = vector.load %arg4[%c6, %c0_52, %c0_53] : memref<9x128x128xbf16, #tpu.memory_space<vmem>>, vector<1x128x128xbf16>
    %57 = vector.shape_cast %56 : vector<1x128x128xbf16> to vector<128x128xbf16>
    %cst_54 = arith.constant dense<0.000000e+00> : vector<64x128xf32>
    %58 = tpu.matmul %55, %57, %cst_54 {dimension_numbers = #tpu.dot_dimension_numbers<[1], [0], [0], [1], [0, 0, 1, 1], [], []>} : vector<64x128xbf16>, vector<128x128xbf16>, vector<64x128xf32> -> vector<64x128xf32>
    %59 = arith.addf %53, %58 : vector<64x128xf32>
    %c2_55 = arith.constant 2 : index
    %c8_56 = arith.constant 8 : index
    %c0_57 = arith.constant 0 : index
    %60 = vector.load %arg7[%c2_55, %c8_56, %c0_57] : memref<10x24x128xbf16, #tpu.memory_space<vmem>>, vector<8x8x128xbf16>
    %61 = vector.shape_cast %60 : vector<8x8x128xbf16> to vector<64x128xbf16>
    %c7_58 = arith.constant 7 : index
    %c0_59 = arith.constant 0 : index
    %c0_60 = arith.constant 0 : index
    %62 = vector.load %arg4[%c7_58, %c0_59, %c0_60] : memref<9x128x128xbf16, #tpu.memory_space<vmem>>, vector<1x128x128xbf16>
    %63 = vector.shape_cast %62 : vector<1x128x128xbf16> to vector<128x128xbf16>
    %cst_61 = arith.constant dense<0.000000e+00> : vector<64x128xf32>
    %64 = tpu.matmul %61, %63, %cst_61 {dimension_numbers = #tpu.dot_dimension_numbers<[1], [0], [0], [1], [0, 0, 1, 1], [], []>} : vector<64x128xbf16>, vector<128x128xbf16>, vector<64x128xf32> -> vector<64x128xf32>
    %65 = arith.addf %59, %64 : vector<64x128xf32>
    %c2_62 = arith.constant 2 : index
    %c9_63 = arith.constant 9 : index
    %c0_64 = arith.constant 0 : index
    %66 = vector.load %arg7[%c2_62, %c9_63, %c0_64] : memref<10x24x128xbf16, #tpu.memory_space<vmem>>, vector<8x8x128xbf16>
    %67 = vector.shape_cast %66 : vector<8x8x128xbf16> to vector<64x128xbf16>
    %c8_65 = arith.constant 8 : index
    %c0_66 = arith.constant 0 : index
    %c0_67 = arith.constant 0 : index
    %68 = vector.load %arg4[%c8_65, %c0_66, %c0_67] : memref<9x128x128xbf16, #tpu.memory_space<vmem>>, vector<1x128x128xbf16>
    %69 = vector.shape_cast %68 : vector<1x128x128xbf16> to vector<128x128xbf16>
    %cst_68 = arith.constant dense<0.000000e+00> : vector<64x128xf32>
    %70 = tpu.matmul %67, %69, %cst_68 {dimension_numbers = #tpu.dot_dimension_numbers<[1], [0], [0], [1], [0, 0, 1, 1], [], []>} : vector<64x128xbf16>, vector<128x128xbf16>, vector<64x128xf32> -> vector<64x128xf32>
    %71 = arith.addf %65, %70 : vector<64x128xf32>
    %cst_69 = arith.constant dense<0.000000e+00> : vector<128xf32>
    %72 = vector.multi_reduction <add>, %71, %cst_69 [0] : vector<64x128xf32> to vector<128xf32>
    %73 = vector.shape_cast %72 : vector<128xf32> to vector<1x128xf32>
    %c0_70 = arith.constant 0 : index
    %c0_71 = arith.constant 0 : index
    %c0_72 = arith.constant 0 : index
    %74 = vector.load %arg6[%c0_70, %c0_71, %c0_72] : memref<1x2x128xf32, #tpu.memory_space<vmem>>, vector<1x1x128xf32>
    %75 = vector.shape_cast %74 : vector<1x1x128xf32> to vector<1x128xf32>
    %76 = vector.shape_cast %73 : vector<1x128xf32> to vector<1x1x128xf32>
    tpu.vector_store %arg6[%c0_70, %c0_71, %c0_72], %76 {strides = array<i32>} : memref<1x2x128xf32, #tpu.memory_space<vmem>>, vector<1x1x128xf32>,
    %77 = arith.mulf %71, %71 : vector<64x128xf32>
    %cst_73 = arith.constant dense<0.000000e+00> : vector<128xf32>
    %78 = vector.multi_reduction <add>, %77, %cst_73 [0] : vector<64x128xf32> to vector<128xf32>
    %79 = vector.shape_cast %78 : vector<128xf32> to vector<1x128xf32>
    %c0_74 = arith.constant 0 : index
    %c1_75 = arith.constant 1 : index
    %c0_76 = arith.constant 0 : index
    %80 = vector.load %arg6[%c0_74, %c1_75, %c0_76] : memref<1x2x128xf32, #tpu.memory_space<vmem>>, vector<1x1x128xf32>
    %81 = vector.shape_cast %80 : vector<1x1x128xf32> to vector<1x128xf32>
    %82 = vector.shape_cast %79 : vector<1x128xf32> to vector<1x1x128xf32>
    tpu.vector_store %arg6[%c0_74, %c1_75, %c0_76], %82 {strides = array<i32>} : memref<1x2x128xf32, #tpu.memory_space<vmem>>, vector<1x1x128xf32>,
    %83 = arith.truncf %71 : vector<64x128xf32> to vector<64x128xbf16>
    %84 = vector.shape_cast %83 : vector<64x128xbf16> to vector<1x8x8x128xbf16>
    %c0_77 = arith.constant 0 : index
    %c0_78 = arith.constant 0 : index
    %c0_79 = arith.constant 0 : index
    %c0_80 = arith.constant 0 : index
    %85 = vector.load %arg5[%c0_77, %c0_78, %c0_79, %c0_80] : memref<1x8x8x128xbf16, #tpu.memory_space<vmem>>, vector<1x8x8x128xbf16>
    tpu.vector_store %arg5[%c0_77, %c0_78, %c0_79, %c0_80], %84 {strides = array<i32>} : memref<1x8x8x128xbf16, #tpu.memory_space<vmem>>, vector<1x8x8x128xbf16>,
    return
  }
  func.func @transform_0(%arg0: i32) -> (i32, i32, i32, i32) {
    %c0_i32 = arith.constant 0 : i32
    %c0_i32_0 = arith.constant 0 : i32
    %c0_i32_1 = arith.constant 0 : i32
    %c0_i32_2 = arith.constant 0 : i32
    return %arg0, %c0_i32, %c0_i32_0, %c0_i32_1 : i32, i32, i32, i32
  }
  func.func @transform_1(%arg0: i32) -> (i32, i32) {
    %c0_i32 = arith.constant 0 : i32
    %c0_i32_0 = arith.constant 0 : i32
    %c0_i32_1 = arith.constant 0 : i32
    return %c0_i32, %c0_i32_0 : i32, i32
  }
  func.func @transform_2(%arg0: i32) -> (i32, i32) {
    %c0_i32 = arith.constant 0 : i32
    %c0_i32_0 = arith.constant 0 : i32
    %c0_i32_1 = arith.constant 0 : i32
    return %c0_i32, %c0_i32_0 : i32, i32
  }
  func.func @transform_3(%arg0: i32) -> (i32, i32, i32) {
    %c0_i32 = arith.constant 0 : i32
    %c0_i32_0 = arith.constant 0 : i32
    %c0_i32_1 = arith.constant 0 : i32
    %c0_i32_2 = arith.constant 0 : i32
    return %c0_i32, %c0_i32_0, %c0_i32_1 : i32, i32, i32
  }
  func.func @transform_4(%arg0: i32) -> (i32, i32, i32, i32) {
    %c0_i32 = arith.constant 0 : i32
    %c0_i32_0 = arith.constant 0 : i32
    %c0_i32_1 = arith.constant 0 : i32
    %c0_i32_2 = arith.constant 0 : i32
    return %arg0, %c0_i32, %c0_i32_0, %c0_i32_1 : i32, i32, i32, i32
  }
  func.func @transform_5(%arg0: i32) -> (i32, i32, i32) {
    %c0_i32 = arith.constant 0 : i32
    %c0_i32_0 = arith.constant 0 : i32
    %c0_i32_1 = arith.constant 0 : i32
    return %arg0, %c0_i32, %c0_i32_0 : i32, i32, i32
  }
}

module attributes {stable_mosaic.version = 11 : i64} {
  func.func @_epilogue_ds_kernel(%arg0: i32, %arg1: memref<1x8x8x128xbf16, #tpu.memory_space<vmem>>, %arg2: memref<1x128xf32, #tpu.memory_space<vmem>>, %arg3: memref<1x128xf32, #tpu.memory_space<vmem>>, %arg4: memref<1x8x8x128xbf16, #tpu.memory_space<vmem>>, %arg5: memref<1x128xf32, #tpu.memory_space<vmem>>, %arg6: memref<1x128xf32, #tpu.memory_space<vmem>>, %arg7: memref<1x8x8x8xf32, #tpu.memory_space<vmem>>) attributes {dimension_semantics = [#tpu.dimension_semantics<parallel>], iteration_bounds = array<i64: 2>, scalar_prefetch = 0 : i64, scratch_operands = 0 : i64, tpu.core_type = #tpu.core_type<tc>, window_params = [{transform_indices = @transform_0, window_bounds = array<i64: 1, 8, 8, 128>}, {pipeline_mode = #tpu.pipeline_mode<synchronous>, transform_indices = @transform_1, window_bounds = array<i64: 1, 128>}, {pipeline_mode = #tpu.pipeline_mode<synchronous>, transform_indices = @transform_2, window_bounds = array<i64: 1, 128>}, {transform_indices = @transform_3, window_bounds = array<i64: 1, 8, 8, 128>}, {pipeline_mode = #tpu.pipeline_mode<synchronous>, transform_indices = @transform_4, window_bounds = array<i64: 1, 128>}, {pipeline_mode = #tpu.pipeline_mode<synchronous>, transform_indices = @transform_5, window_bounds = array<i64: 1, 128>}, {transform_indices = @transform_6, window_bounds = array<i64: 1, 8, 8, 8>}]} {
    %c0 = arith.constant 0 : index
    %c0_0 = arith.constant 0 : index
    %c0_1 = arith.constant 0 : index
    %c0_2 = arith.constant 0 : index
    %0 = vector.load %arg1[%c0, %c0_0, %c0_1, %c0_2] : memref<1x8x8x128xbf16, #tpu.memory_space<vmem>>, vector<1x8x8x128xbf16>
    %1 = arith.extf %0 : vector<1x8x8x128xbf16> to vector<1x8x8x128xf32>
    %c0_3 = arith.constant 0 : index
    %c0_4 = arith.constant 0 : index
    %2 = vector.load %arg2[%c0_3, %c0_4] : memref<1x128xf32, #tpu.memory_space<vmem>>, vector<1x128xf32>
    %3 = vector.shape_cast %2 : vector<1x128xf32> to vector<1x1x1x128xf32>
    %4 = vector.broadcast %3 : vector<1x1x1x128xf32> to vector<1x8x8x128xf32>
    %5 = arith.mulf %1, %4 : vector<1x8x8x128xf32>
    %c0_5 = arith.constant 0 : index
    %c0_6 = arith.constant 0 : index
    %6 = vector.load %arg3[%c0_5, %c0_6] : memref<1x128xf32, #tpu.memory_space<vmem>>, vector<1x128xf32>
    %7 = vector.shape_cast %6 : vector<1x128xf32> to vector<1x1x1x128xf32>
    %8 = vector.broadcast %7 : vector<1x1x1x128xf32> to vector<1x8x8x128xf32>
    %9 = arith.addf %5, %8 : vector<1x8x8x128xf32>
    %c0_7 = arith.constant 0 : index
    %c0_8 = arith.constant 0 : index
    %c0_9 = arith.constant 0 : index
    %c0_10 = arith.constant 0 : index
    %10 = vector.load %arg4[%c0_7, %c0_8, %c0_9, %c0_10] : memref<1x8x8x128xbf16, #tpu.memory_space<vmem>>, vector<1x8x8x128xbf16>
    %11 = arith.extf %10 : vector<1x8x8x128xbf16> to vector<1x8x8x128xf32>
    %c0_11 = arith.constant 0 : index
    %c0_12 = arith.constant 0 : index
    %12 = vector.load %arg5[%c0_11, %c0_12] : memref<1x128xf32, #tpu.memory_space<vmem>>, vector<1x128xf32>
    %13 = vector.shape_cast %12 : vector<1x128xf32> to vector<1x1x1x128xf32>
    %14 = vector.broadcast %13 : vector<1x1x1x128xf32> to vector<1x8x8x128xf32>
    %15 = arith.mulf %11, %14 : vector<1x8x8x128xf32>
    %c0_13 = arith.constant 0 : index
    %c0_14 = arith.constant 0 : index
    %16 = vector.load %arg6[%c0_13, %c0_14] : memref<1x128xf32, #tpu.memory_space<vmem>>, vector<1x128xf32>
    %17 = vector.shape_cast %16 : vector<1x128xf32> to vector<1x1x1x128xf32>
    %18 = vector.broadcast %17 : vector<1x1x1x128xf32> to vector<1x8x8x128xf32>
    %19 = arith.addf %15, %18 : vector<1x8x8x128xf32>
    %20 = arith.addf %9, %19 : vector<1x8x8x128xf32>
    %cst = arith.constant 0.000000e+00 : f32
    %21 = vector.broadcast %cst : f32 to vector<1x8x8x128xf32>
    %22 = arith.maximumf %20, %21 : vector<1x8x8x128xf32>
    %23 = vector.extract_strided_slice %22 {offsets = [0, 0, 0, 0], sizes = [1, 8, 8, 8], strides = [1, 1, 1, 1]} : vector<1x8x8x128xf32> to vector<1x8x8x8xf32>
    %c0_15 = arith.constant 0 : index
    %c0_16 = arith.constant 0 : index
    %c0_17 = arith.constant 0 : index
    %c0_18 = arith.constant 0 : index
    %24 = vector.load %arg7[%c0_15, %c0_16, %c0_17, %c0_18] : memref<1x8x8x8xf32, #tpu.memory_space<vmem>>, vector<1x8x8x8xf32>
    tpu.vector_store %arg7[%c0_15, %c0_16, %c0_17, %c0_18], %23 {strides = array<i32>} : memref<1x8x8x8xf32, #tpu.memory_space<vmem>>, vector<1x8x8x8xf32>,
    return
  }
  func.func @transform_0(%arg0: i32) -> (i32, i32, i32, i32) {
    %c0_i32 = arith.constant 0 : i32
    %c0_i32_0 = arith.constant 0 : i32
    %c0_i32_1 = arith.constant 0 : i32
    %c0_i32_2 = arith.constant 0 : i32
    return %arg0, %c0_i32, %c0_i32_0, %c0_i32_1 : i32, i32, i32, i32
  }
  func.func @transform_1(%arg0: i32) -> (i32, i32) {
    %c0_i32 = arith.constant 0 : i32
    %c0_i32_0 = arith.constant 0 : i32
    %c0_i32_1 = arith.constant 0 : i32
    return %c0_i32, %c0_i32_0 : i32, i32
  }
  func.func @transform_2(%arg0: i32) -> (i32, i32) {
    %c0_i32 = arith.constant 0 : i32
    %c0_i32_0 = arith.constant 0 : i32
    %c0_i32_1 = arith.constant 0 : i32
    return %c0_i32, %c0_i32_0 : i32, i32
  }
  func.func @transform_3(%arg0: i32) -> (i32, i32, i32, i32) {
    %c0_i32 = arith.constant 0 : i32
    %c0_i32_0 = arith.constant 0 : i32
    %c0_i32_1 = arith.constant 0 : i32
    %c0_i32_2 = arith.constant 0 : i32
    return %arg0, %c0_i32, %c0_i32_0, %c0_i32_1 : i32, i32, i32, i32
  }
  func.func @transform_4(%arg0: i32) -> (i32, i32) {
    %c0_i32 = arith.constant 0 : i32
    %c0_i32_0 = arith.constant 0 : i32
    %c0_i32_1 = arith.constant 0 : i32
    return %c0_i32, %c0_i32_0 : i32, i32
  }
  func.func @transform_5(%arg0: i32) -> (i32, i32) {
    %c0_i32 = arith.constant 0 : i32
    %c0_i32_0 = arith.constant 0 : i32
    %c0_i32_1 = arith.constant 0 : i32
    return %c0_i32, %c0_i32_0 : i32, i32
  }
  func.func @transform_6(%arg0: i32) -> (i32, i32, i32, i32) {
    %c0_i32 = arith.constant 0 : i32
    %c0_i32_0 = arith.constant 0 : i32
    %c0_i32_1 = arith.constant 0 : i32
    %c0_i32_2 = arith.constant 0 : i32
    return %arg0, %c0_i32, %c0_i32_0, %c0_i32_1 : i32, i32, i32, i32
  }
}

module attributes {stable_mosaic.version = 11 : i64} {
  func.func @_conv1_kernel(%arg0: i32, %arg1: memref<4x9x9x4xbf16, #tpu.memory_space<vmem>>, %arg2: memref<9x4x128xbf16, #tpu.memory_space<vmem>>, %arg3: memref<4x128xbf16, #tpu.memory_space<vmem>>, %arg4: memref<1x8x8x128xbf16, #tpu.memory_space<vmem>>, %arg5: memref<1x8x8x128xbf16, #tpu.memory_space<vmem>>, %arg6: memref<1x2x128xf32, #tpu.memory_space<vmem>>, %arg7: memref<1x2x128xf32, #tpu.memory_space<vmem>>) attributes {dimension_semantics = [#tpu.dimension_semantics<parallel>], iteration_bounds = array<i64: 2>, scalar_prefetch = 0 : i64, scratch_operands = 0 : i64, tpu.core_type = #tpu.core_type<tc>, window_params = [{transform_indices = @transform_0, window_bounds = array<i64: 4, 9, 9, 4>}, {pipeline_mode = #tpu.pipeline_mode<synchronous>, transform_indices = @transform_1, window_bounds = array<i64: 9, 4, 128>}, {pipeline_mode = #tpu.pipeline_mode<synchronous>, transform_indices = @transform_2, window_bounds = array<i64: 4, 128>}, {transform_indices = @transform_3, window_bounds = array<i64: 1, 8, 8, 128>}, {transform_indices = @transform_4, window_bounds = array<i64: 1, 8, 8, 128>}, {transform_indices = @transform_5, window_bounds = array<i64: 1, 2, 128>}, {transform_indices = @transform_6, window_bounds = array<i64: 1, 2, 128>}]} {
    %c0 = arith.constant 0 : index
    %c0_0 = arith.constant 0 : index
    %c0_1 = arith.constant 0 : index
    %c0_2 = arith.constant 0 : index
    %0 = vector.load %arg1[%c0, %c0_0, %c0_1, %c0_2] : memref<4x9x9x4xbf16, #tpu.memory_space<vmem>>, vector<4x9x9x4xbf16>
    %cst = arith.constant 0.000000e+00 : f32
    %1 = vector.broadcast %cst : f32 to vector<64x128xf32>
    %2 = vector.extract_strided_slice %0 {offsets = [0, 0, 0, 0], sizes = [1, 8, 8, 4], strides = [1, 1, 1, 1]} : vector<4x9x9x4xbf16> to vector<1x8x8x4xbf16>
    %3 = vector.shape_cast %2 : vector<1x8x8x4xbf16> to vector<8x8x4xbf16>
    %4 = vector.shape_cast %3 : vector<8x8x4xbf16> to vector<64x4xbf16>
    %c0_3 = arith.constant 0 : index
    %c0_4 = arith.constant 0 : index
    %c0_5 = arith.constant 0 : index
    %5 = vector.load %arg2[%c0_3, %c0_4, %c0_5] : memref<9x4x128xbf16, #tpu.memory_space<vmem>>, vector<1x4x128xbf16>
    %6 = vector.shape_cast %5 : vector<1x4x128xbf16> to vector<4x128xbf16>
    %cst_6 = arith.constant dense<0.000000e+00> : vector<64x128xf32>
    %7 = tpu.matmul %4, %6, %cst_6 {dimension_numbers = #tpu.dot_dimension_numbers<[1], [0], [0], [1], [0, 0, 1, 1], [], []>} : vector<64x4xbf16>, vector<4x128xbf16>, vector<64x128xf32> -> vector<64x128xf32>
    %8 = arith.addf %1, %7 : vector<64x128xf32>
    %9 = vector.extract_strided_slice %0 {offsets = [1, 0, 0, 0], sizes = [1, 8, 8, 4], strides = [1, 1, 1, 1]} : vector<4x9x9x4xbf16> to vector<1x8x8x4xbf16>
    %10 = vector.shape_cast %9 : vector<1x8x8x4xbf16> to vector<8x8x4xbf16>
    %11 = vector.shape_cast %10 : vector<8x8x4xbf16> to vector<64x4xbf16>
    %c1 = arith.constant 1 : index
    %c0_7 = arith.constant 0 : index
    %c0_8 = arith.constant 0 : index
    %12 = vector.load %arg2[%c1, %c0_7, %c0_8] : memref<9x4x128xbf16, #tpu.memory_space<vmem>>, vector<1x4x128xbf16>
    %13 = vector.shape_cast %12 : vector<1x4x128xbf16> to vector<4x128xbf16>
    %cst_9 = arith.constant dense<0.000000e+00> : vector<64x128xf32>
    %14 = tpu.matmul %11, %13, %cst_9 {dimension_numbers = #tpu.dot_dimension_numbers<[1], [0], [0], [1], [0, 0, 1, 1], [], []>} : vector<64x4xbf16>, vector<4x128xbf16>, vector<64x128xf32> -> vector<64x128xf32>
    %15 = arith.addf %8, %14 : vector<64x128xf32>
    %16 = vector.extract_strided_slice %0 {offsets = [0, 0, 1, 0], sizes = [1, 8, 8, 4], strides = [1, 1, 1, 1]} : vector<4x9x9x4xbf16> to vector<1x8x8x4xbf16>
    %17 = vector.shape_cast %16 : vector<1x8x8x4xbf16> to vector<8x8x4xbf16>
    %18 = vector.shape_cast %17 : vector<8x8x4xbf16> to vector<64x4xbf16>
    %c2 = arith.constant 2 : index
    %c0_10 = arith.constant 0 : index
    %c0_11 = arith.constant 0 : index
    %19 = vector.load %arg2[%c2, %c0_10, %c0_11] : memref<9x4x128xbf16, #tpu.memory_space<vmem>>, vector<1x4x128xbf16>
    %20 = vector.shape_cast %19 : vector<1x4x128xbf16> to vector<4x128xbf16>
    %cst_12 = arith.constant dense<0.000000e+00> : vector<64x128xf32>
    %21 = tpu.matmul %18, %20, %cst_12 {dimension_numbers = #tpu.dot_dimension_numbers<[1], [0], [0], [1], [0, 0, 1, 1], [], []>} : vector<64x4xbf16>, vector<4x128xbf16>, vector<64x128xf32> -> vector<64x128xf32>
    %22 = arith.addf %15, %21 : vector<64x128xf32>
    %23 = vector.extract_strided_slice %0 {offsets = [2, 0, 0, 0], sizes = [1, 8, 8, 4], strides = [1, 1, 1, 1]} : vector<4x9x9x4xbf16> to vector<1x8x8x4xbf16>
    %24 = vector.shape_cast %23 : vector<1x8x8x4xbf16> to vector<8x8x4xbf16>
    %25 = vector.shape_cast %24 : vector<8x8x4xbf16> to vector<64x4xbf16>
    %c3 = arith.constant 3 : index
    %c0_13 = arith.constant 0 : index
    %c0_14 = arith.constant 0 : index
    %26 = vector.load %arg2[%c3, %c0_13, %c0_14] : memref<9x4x128xbf16, #tpu.memory_space<vmem>>, vector<1x4x128xbf16>
    %27 = vector.shape_cast %26 : vector<1x4x128xbf16> to vector<4x128xbf16>
    %cst_15 = arith.constant dense<0.000000e+00> : vector<64x128xf32>
    %28 = tpu.matmul %25, %27, %cst_15 {dimension_numbers = #tpu.dot_dimension_numbers<[1], [0], [0], [1], [0, 0, 1, 1], [], []>} : vector<64x4xbf16>, vector<4x128xbf16>, vector<64x128xf32> -> vector<64x128xf32>
    %29 = arith.addf %22, %28 : vector<64x128xf32>
    %30 = vector.extract_strided_slice %0 {offsets = [3, 0, 0, 0], sizes = [1, 8, 8, 4], strides = [1, 1, 1, 1]} : vector<4x9x9x4xbf16> to vector<1x8x8x4xbf16>
    %31 = vector.shape_cast %30 : vector<1x8x8x4xbf16> to vector<8x8x4xbf16>
    %32 = vector.shape_cast %31 : vector<8x8x4xbf16> to vector<64x4xbf16>
    %c4 = arith.constant 4 : index
    %c0_16 = arith.constant 0 : index
    %c0_17 = arith.constant 0 : index
    %33 = vector.load %arg2[%c4, %c0_16, %c0_17] : memref<9x4x128xbf16, #tpu.memory_space<vmem>>, vector<1x4x128xbf16>
    %34 = vector.shape_cast %33 : vector<1x4x128xbf16> to vector<4x128xbf16>
    %cst_18 = arith.constant dense<0.000000e+00> : vector<64x128xf32>
    %35 = tpu.matmul %32, %34, %cst_18 {dimension_numbers = #tpu.dot_dimension_numbers<[1], [0], [0], [1], [0, 0, 1, 1], [], []>} : vector<64x4xbf16>, vector<4x128xbf16>, vector<64x128xf32> -> vector<64x128xf32>
    %36 = arith.addf %29, %35 : vector<64x128xf32>
    %c0_19 = arith.constant 0 : index
    %c0_20 = arith.constant 0 : index
    %37 = vector.load %arg3[%c0_19, %c0_20] : memref<4x128xbf16, #tpu.memory_space<vmem>>, vector<4x128xbf16>
    %cst_21 = arith.constant dense<0.000000e+00> : vector<64x128xf32>
    %38 = tpu.matmul %32, %37, %cst_21 {dimension_numbers = #tpu.dot_dimension_numbers<[1], [0], [0], [1], [0, 0, 1, 1], [], []>} : vector<64x4xbf16>, vector<4x128xbf16>, vector<64x128xf32> -> vector<64x128xf32>
    %39 = vector.extract_strided_slice %0 {offsets = [2, 0, 1, 0], sizes = [1, 8, 8, 4], strides = [1, 1, 1, 1]} : vector<4x9x9x4xbf16> to vector<1x8x8x4xbf16>
    %40 = vector.shape_cast %39 : vector<1x8x8x4xbf16> to vector<8x8x4xbf16>
    %41 = vector.shape_cast %40 : vector<8x8x4xbf16> to vector<64x4xbf16>
    %c5 = arith.constant 5 : index
    %c0_22 = arith.constant 0 : index
    %c0_23 = arith.constant 0 : index
    %42 = vector.load %arg2[%c5, %c0_22, %c0_23] : memref<9x4x128xbf16, #tpu.memory_space<vmem>>, vector<1x4x128xbf16>
    %43 = vector.shape_cast %42 : vector<1x4x128xbf16> to vector<4x128xbf16>
    %cst_24 = arith.constant dense<0.000000e+00> : vector<64x128xf32>
    %44 = tpu.matmul %41, %43, %cst_24 {dimension_numbers = #tpu.dot_dimension_numbers<[1], [0], [0], [1], [0, 0, 1, 1], [], []>} : vector<64x4xbf16>, vector<4x128xbf16>, vector<64x128xf32> -> vector<64x128xf32>
    %45 = arith.addf %36, %44 : vector<64x128xf32>
    %46 = vector.extract_strided_slice %0 {offsets = [0, 1, 0, 0], sizes = [1, 8, 8, 4], strides = [1, 1, 1, 1]} : vector<4x9x9x4xbf16> to vector<1x8x8x4xbf16>
    %47 = vector.shape_cast %46 : vector<1x8x8x4xbf16> to vector<8x8x4xbf16>
    %48 = vector.shape_cast %47 : vector<8x8x4xbf16> to vector<64x4xbf16>
    %c6 = arith.constant 6 : index
    %c0_25 = arith.constant 0 : index
    %c0_26 = arith.constant 0 : index
    %49 = vector.load %arg2[%c6, %c0_25, %c0_26] : memref<9x4x128xbf16, #tpu.memory_space<vmem>>, vector<1x4x128xbf16>
    %50 = vector.shape_cast %49 : vector<1x4x128xbf16> to vector<4x128xbf16>
    %cst_27 = arith.constant dense<0.000000e+00> : vector<64x128xf32>
    %51 = tpu.matmul %48, %50, %cst_27 {dimension_numbers = #tpu.dot_dimension_numbers<[1], [0], [0], [1], [0, 0, 1, 1], [], []>} : vector<64x4xbf16>, vector<4x128xbf16>, vector<64x128xf32> -> vector<64x128xf32>
    %52 = arith.addf %45, %51 : vector<64x128xf32>
    %53 = vector.extract_strided_slice %0 {offsets = [1, 1, 0, 0], sizes = [1, 8, 8, 4], strides = [1, 1, 1, 1]} : vector<4x9x9x4xbf16> to vector<1x8x8x4xbf16>
    %54 = vector.shape_cast %53 : vector<1x8x8x4xbf16> to vector<8x8x4xbf16>
    %55 = vector.shape_cast %54 : vector<8x8x4xbf16> to vector<64x4xbf16>
    %c7 = arith.constant 7 : index
    %c0_28 = arith.constant 0 : index
    %c0_29 = arith.constant 0 : index
    %56 = vector.load %arg2[%c7, %c0_28, %c0_29] : memref<9x4x128xbf16, #tpu.memory_space<vmem>>, vector<1x4x128xbf16>
    %57 = vector.shape_cast %56 : vector<1x4x128xbf16> to vector<4x128xbf16>
    %cst_30 = arith.constant dense<0.000000e+00> : vector<64x128xf32>
    %58 = tpu.matmul %55, %57, %cst_30 {dimension_numbers = #tpu.dot_dimension_numbers<[1], [0], [0], [1], [0, 0, 1, 1], [], []>} : vector<64x4xbf16>, vector<4x128xbf16>, vector<64x128xf32> -> vector<64x128xf32>
    %59 = arith.addf %52, %58 : vector<64x128xf32>
    %60 = vector.extract_strided_slice %0 {offsets = [0, 1, 1, 0], sizes = [1, 8, 8, 4], strides = [1, 1, 1, 1]} : vector<4x9x9x4xbf16> to vector<1x8x8x4xbf16>
    %61 = vector.shape_cast %60 : vector<1x8x8x4xbf16> to vector<8x8x4xbf16>
    %62 = vector.shape_cast %61 : vector<8x8x4xbf16> to vector<64x4xbf16>
    %c8 = arith.constant 8 : index
    %c0_31 = arith.constant 0 : index
    %c0_32 = arith.constant 0 : index
    %63 = vector.load %arg2[%c8, %c0_31, %c0_32] : memref<9x4x128xbf16, #tpu.memory_space<vmem>>, vector<1x4x128xbf16>
    %64 = vector.shape_cast %63 : vector<1x4x128xbf16> to vector<4x128xbf16>
    %cst_33 = arith.constant dense<0.000000e+00> : vector<64x128xf32>
    %65 = tpu.matmul %62, %64, %cst_33 {dimension_numbers = #tpu.dot_dimension_numbers<[1], [0], [0], [1], [0, 0, 1, 1], [], []>} : vector<64x4xbf16>, vector<4x128xbf16>, vector<64x128xf32> -> vector<64x128xf32>
    %66 = arith.addf %59, %65 : vector<64x128xf32>
    %cst_34 = arith.constant dense<0.000000e+00> : vector<128xf32>
    %67 = vector.multi_reduction <add>, %66, %cst_34 [0] : vector<64x128xf32> to vector<128xf32>
    %68 = vector.shape_cast %67 : vector<128xf32> to vector<1x128xf32>
    %c0_35 = arith.constant 0 : index
    %c0_36 = arith.constant 0 : index
    %c0_37 = arith.constant 0 : index
    %69 = vector.load %arg6[%c0_35, %c0_36, %c0_37] : memref<1x2x128xf32, #tpu.memory_space<vmem>>, vector<1x1x128xf32>
    %70 = vector.shape_cast %69 : vector<1x1x128xf32> to vector<1x128xf32>
    %71 = vector.shape_cast %68 : vector<1x128xf32> to vector<1x1x128xf32>
    tpu.vector_store %arg6[%c0_35, %c0_36, %c0_37], %71 {strides = array<i32>} : memref<1x2x128xf32, #tpu.memory_space<vmem>>, vector<1x1x128xf32>,
    %72 = arith.mulf %66, %66 : vector<64x128xf32>
    %cst_38 = arith.constant dense<0.000000e+00> : vector<128xf32>
    %73 = vector.multi_reduction <add>, %72, %cst_38 [0] : vector<64x128xf32> to vector<128xf32>
    %74 = vector.shape_cast %73 : vector<128xf32> to vector<1x128xf32>
    %c0_39 = arith.constant 0 : index
    %c1_40 = arith.constant 1 : index
    %c0_41 = arith.constant 0 : index
    %75 = vector.load %arg6[%c0_39, %c1_40, %c0_41] : memref<1x2x128xf32, #tpu.memory_space<vmem>>, vector<1x1x128xf32>
    %76 = vector.shape_cast %75 : vector<1x1x128xf32> to vector<1x128xf32>
    %77 = vector.shape_cast %74 : vector<1x128xf32> to vector<1x1x128xf32>
    tpu.vector_store %arg6[%c0_39, %c1_40, %c0_41], %77 {strides = array<i32>} : memref<1x2x128xf32, #tpu.memory_space<vmem>>, vector<1x1x128xf32>,
    %78 = arith.truncf %66 : vector<64x128xf32> to vector<64x128xbf16>
    %79 = vector.shape_cast %78 : vector<64x128xbf16> to vector<1x8x8x128xbf16>
    %c0_42 = arith.constant 0 : index
    %c0_43 = arith.constant 0 : index
    %c0_44 = arith.constant 0 : index
    %c0_45 = arith.constant 0 : index
    %80 = vector.load %arg4[%c0_42, %c0_43, %c0_44, %c0_45] : memref<1x8x8x128xbf16, #tpu.memory_space<vmem>>, vector<1x8x8x128xbf16>
    tpu.vector_store %arg4[%c0_42, %c0_43, %c0_44, %c0_45], %79 {strides = array<i32>} : memref<1x8x8x128xbf16, #tpu.memory_space<vmem>>, vector<1x8x8x128xbf16>,
    %cst_46 = arith.constant dense<0.000000e+00> : vector<128xf32>
    %81 = vector.multi_reduction <add>, %38, %cst_46 [0] : vector<64x128xf32> to vector<128xf32>
    %82 = vector.shape_cast %81 : vector<128xf32> to vector<1x128xf32>
    %c0_47 = arith.constant 0 : index
    %c0_48 = arith.constant 0 : index
    %c0_49 = arith.constant 0 : index
    %83 = vector.load %arg7[%c0_47, %c0_48, %c0_49] : memref<1x2x128xf32, #tpu.memory_space<vmem>>, vector<1x1x128xf32>
    %84 = vector.shape_cast %83 : vector<1x1x128xf32> to vector<1x128xf32>
    %85 = vector.shape_cast %82 : vector<1x128xf32> to vector<1x1x128xf32>
    tpu.vector_store %arg7[%c0_47, %c0_48, %c0_49], %85 {strides = array<i32>} : memref<1x2x128xf32, #tpu.memory_space<vmem>>, vector<1x1x128xf32>,
    %86 = arith.mulf %38, %38 : vector<64x128xf32>
    %cst_50 = arith.constant dense<0.000000e+00> : vector<128xf32>
    %87 = vector.multi_reduction <add>, %86, %cst_50 [0] : vector<64x128xf32> to vector<128xf32>
    %88 = vector.shape_cast %87 : vector<128xf32> to vector<1x128xf32>
    %c0_51 = arith.constant 0 : index
    %c1_52 = arith.constant 1 : index
    %c0_53 = arith.constant 0 : index
    %89 = vector.load %arg7[%c0_51, %c1_52, %c0_53] : memref<1x2x128xf32, #tpu.memory_space<vmem>>, vector<1x1x128xf32>
    %90 = vector.shape_cast %89 : vector<1x1x128xf32> to vector<1x128xf32>
    %91 = vector.shape_cast %88 : vector<1x128xf32> to vector<1x1x128xf32>
    tpu.vector_store %arg7[%c0_51, %c1_52, %c0_53], %91 {strides = array<i32>} : memref<1x2x128xf32, #tpu.memory_space<vmem>>, vector<1x1x128xf32>,
    %92 = arith.truncf %38 : vector<64x128xf32> to vector<64x128xbf16>
    %93 = vector.shape_cast %92 : vector<64x128xbf16> to vector<1x8x8x128xbf16>
    %c0_54 = arith.constant 0 : index
    %c0_55 = arith.constant 0 : index
    %c0_56 = arith.constant 0 : index
    %c0_57 = arith.constant 0 : index
    %94 = vector.load %arg5[%c0_54, %c0_55, %c0_56, %c0_57] : memref<1x8x8x128xbf16, #tpu.memory_space<vmem>>, vector<1x8x8x128xbf16>
    tpu.vector_store %arg5[%c0_54, %c0_55, %c0_56, %c0_57], %93 {strides = array<i32>} : memref<1x8x8x128xbf16, #tpu.memory_space<vmem>>, vector<1x8x8x128xbf16>,
    return
  }
  func.func @transform_0(%arg0: i32) -> (i32, i32, i32, i32) {
    %c0_i32 = arith.constant 0 : i32
    %c0_i32_0 = arith.constant 0 : i32
    %c0_i32_1 = arith.constant 0 : i32
    %c0_i32_2 = arith.constant 0 : i32
    return %arg0, %c0_i32, %c0_i32_0, %c0_i32_1 : i32, i32, i32, i32
  }
  func.func @transform_1(%arg0: i32) -> (i32, i32, i32) {
    %c0_i32 = arith.constant 0 : i32
    %c0_i32_0 = arith.constant 0 : i32
    %c0_i32_1 = arith.constant 0 : i32
    %c0_i32_2 = arith.constant 0 : i32
    return %c0_i32, %c0_i32_0, %c0_i32_1 : i32, i32, i32
  }
  func.func @transform_2(%arg0: i32) -> (i32, i32) {
    %c0_i32 = arith.constant 0 : i32
    %c0_i32_0 = arith.constant 0 : i32
    %c0_i32_1 = arith.constant 0 : i32
    return %c0_i32, %c0_i32_0 : i32, i32
  }
  func.func @transform_3(%arg0: i32) -> (i32, i32, i32, i32) {
    %c0_i32 = arith.constant 0 : i32
    %c0_i32_0 = arith.constant 0 : i32
    %c0_i32_1 = arith.constant 0 : i32
    %c0_i32_2 = arith.constant 0 : i32
    return %arg0, %c0_i32, %c0_i32_0, %c0_i32_1 : i32, i32, i32, i32
  }
  func.func @transform_4(%arg0: i32) -> (i32, i32, i32, i32) {
    %c0_i32 = arith.constant 0 : i32
    %c0_i32_0 = arith.constant 0 : i32
    %c0_i32_1 = arith.constant 0 : i32
    %c0_i32_2 = arith.constant 0 : i32
    return %arg0, %c0_i32, %c0_i32_0, %c0_i32_1 : i32, i32, i32, i32
  }
  func.func @transform_5(%arg0: i32) -> (i32, i32, i32) {
    %c0_i32 = arith.constant 0 : i32
    %c0_i32_0 = arith.constant 0 : i32
    %c0_i32_1 = arith.constant 0 : i32
    return %arg0, %c0_i32, %c0_i32_0 : i32, i32, i32
  }
  func.func @transform_6(%arg0: i32) -> (i32, i32, i32) {
    %c0_i32 = arith.constant 0 : i32
    %c0_i32_0 = arith.constant 0 : i32
    %c0_i32_1 = arith.constant 0 : i32
    return %arg0, %c0_i32, %c0_i32_0 : i32, i32, i32
  }
}

</mosaic_0001>

<bundles_post_ra>
// kernel: residual_block_forward.5
= control target key start
LH: loop header
LB: loop body
LE: loop exit
PB: predicated region body
PF: predicated region fallthrough
CT: control target
= control target key end

     0   :  { %s565_s21 = smov 0   ;;  %s671_s0 = inlined_call_operand.vmem [shape: bf16[2,8,8,128], index: 0, kind: input, shape index: {}]   ;;  %s672_s1 = inlined_call_operand.vmem [shape: f32[1,128], index: 1, kind: input, shape index: {}]   ;;  %s673_s2 = inlined_call_operand.vmem [shape: f32[1,128], index: 2, kind: input, shape index: {}]   ;;  %s674_s3 = inlined_call_operand.vmem [shape: bf16[2,8,8,128], index: 3, kind: input, shape index: {}]   ;;  %s675_s4 = inlined_call_operand.vmem [shape: f32[1,128], index: 4, kind: input, shape index: {}]   ;;  %s676_s5 = inlined_call_operand.vmem [shape: f32[1,128], index: 5, kind: input, shape index: {}]   ;;  %s677_s6 = inlined_call_operand.vmem [shape: f32[2,8,8,8], index: 6, kind: output, shape index: {}]  }
   0x1 LB: > { %s456_s22 = sadd.s32 4294967295, %s528_s21   ;;  %p460_p0 = scmp.ge.s32.totalorder %s528_s21, 1  ;;  %s528_s21 = sphi %s565_s21, %s16_s21  }
   0x2   : > { %p222_p1 = scmp.lt.s32.totalorder %s528_s21, 3 }
   0x4   : > { %p223_p2 = pnand %p460_p0, %p222_p1 }
   0x5   : > { %p257_p3 = scmp.lt.s32.totalorder (!%p223_p2), %s456_s22, 1  ;;  %v589_v0 = vld [vmem:[%s672_s1] ss:$0 sm:$0xff] (!%p223_p2)  ;;  %vm380_vm0 = vcmask (!%p223_p2), 64512  }
   0x6   : > { %226 = sbr.rel (%p223_p2) target bundleno = 39 (0x27), region = 44  ;;  %v594_v1 = vld [vmem:[%s675_s4] ss:$0 sm:$0xff] (!%p223_p2) }
   0x7   : > { %v603_v10 = vld [vmem:[%s673_s2] ss:$0 sm:$0xff] (!%p223_p2) }
   0x8   : > { %v608_v11 = vld [vmem:[%s676_s5] ss:$0 sm:$0xff] (!%p223_p2) }
   0xd   : > { %s679_s22 = smov (!%p257_p3, %s456_s22), 1 }
   0xe   : > { %s473_s23 = sshll.u32 %s679_s22, 5  ;;  %s475_s14 = sshll.u32 %s679_s22, 6 }
   0xf   : > { %s579_s26 = scalar_lea.vmem %s671_s0, %s473_s23  ;;  %s584_s29 = scalar_lea.vmem %s674_s3, %s473_s23 }
  0x10   : > { %v477_v2 = vld [vmem:[%s579_s26] sm:$0xff]   ;;  %v508_v4 = vld [vmem:[%s579_s26 + $0x8] sm:$0xff]   ;;  %v509_v24 = vld [vmem:[%s579_s26 + $0x10] sm:$0xff]   ;;  %s632_s17 = scalar_lea.vmem %s677_s6, %s475_s14 }
  0x11   : > { %v493_v3 = vld [vmem:[%s584_s29] sm:$0xff]   ;;  %v478_v5 = vunpack.c.l.bf16 %v477_v2  ;;  %v479_v7 = vunpack.c.h.bf16 %v477_v2  ;;  %v511_v9 = vld [vmem:[%s584_s29 + $0x8] sm:$0xff]   ;;  %v482_v12 = vunpack.c.l.bf16 %v508_v4  ;;  %v483_v14 = vunpack.c.h.bf16 %v508_v4  ;;  %v512_v25 = vld [vmem:[%s584_s29 + $0x10] sm:$0xff]  }
  0x12   : > { %v494_v6 = vunpack.c.l.bf16 %v493_v3  ;;  %v495_v8 = vunpack.c.h.bf16 %v493_v3  ;;  %v498_v13 = vunpack.c.l.bf16 %v511_v9  ;;  %v499_v15 = vunpack.c.h.bf16 %v511_v9  ;;  %v510_v42 = vld [vmem:[%s579_s26 + $0x18] sm:$0xff]  }
  0x13   : > { %v295_v16 = vmul.f32 %v478_v5, %v589_v0  ;;  %v296_v18 = vmul.f32 %v479_v7, %v589_v0  ;;  %v297_v20 = vmul.f32 %v482_v12, %v589_v0  ;;  %v298_v22 = vmul.f32 %v483_v14, %v589_v0  ;;  %v513_v43 = vld [vmem:[%s584_s29 + $0x18] sm:$0xff]  }
  0x14   : > { %v341_v17 = vmul.f32 %v494_v6, %v594_v1  ;;  %v342_v19 = vmul.f32 %v495_v8, %v594_v1  ;;  %v343_v21 = vmul.f32 %v498_v13, %v594_v1  ;;  %v344_v23 = vmul.f32 %v499_v15, %v594_v1 }
  0x15   : > { %v310_v26 = vadd.f32 %v603_v10, %v295_v16  ;;  %v311_v28 = vadd.f32 %v603_v10, %v296_v18  ;;  %v312_v30 = vadd.f32 %v603_v10, %v297_v20  ;;  %v313_v32 = vadd.f32 %v603_v10, %v298_v22 }
  0x16   : > { %v356_v27 = vadd.f32 %v608_v11, %v341_v17  ;;  %v357_v29 = vadd.f32 %v608_v11, %v342_v19  ;;  %v358_v31 = vadd.f32 %v608_v11, %v343_v21  ;;  %v359_v33 = vadd.f32 %v608_v11, %v344_v23 }
  0x17   : > { %v486_v36 = vunpack.c.l.bf16 %v509_v24  ;;  %v502_v37 = vunpack.c.l.bf16 %v512_v25  ;;  %v487_v40 = vunpack.c.h.bf16 %v509_v24  ;;  %v503_v41 = vunpack.c.h.bf16 %v512_v25 }
  0x18   : > { %v364_v34 = vadd.f32 %v356_v27, %v310_v26  ;;  %v365_v35 = vadd.f32 %v357_v29, %v311_v28  ;;  %v366_v38 = vadd.f32 %v358_v31, %v312_v30  ;;  %v367_v39 = vadd.f32 %v359_v33, %v313_v32 }
  0x19   : > { %v299_v46 = vmul.f32 %v486_v36, %v589_v0  ;;  %v345_v47 = vmul.f32 %v502_v37, %v594_v1  ;;  %v300_v50 = vmul.f32 %v487_v40, %v589_v0  ;;  %v346_v51 = vmul.f32 %v503_v41, %v594_v1 }
  0x1a   : > { %v372_v44 = vmax.f32 %v364_v34, 0.0  ;;  %v373_v45 = vmax.f32 %v365_v35, 0.0  ;;  %v374_v48 = vmax.f32 %v366_v38, 0.0  ;;  %v375_v49 = vmax.f32 %v367_v39, 0.0 }
  0x1b   : > { %v314_v52 = vadd.f32 %v603_v10, %v299_v46  ;;  %v360_v53 = vadd.f32 %v608_v11, %v345_v47  ;;  %v490_v54 = vunpack.c.l.bf16 %v510_v42  ;;  %v506_v55 = vunpack.c.l.bf16 %v513_v43 }
  0x1c   : > { %381 = vst.msk [vmem:[%s632_s17] sm:$0xff] %vm380_vm0, %v372_v44  ;;  %382 = vst.msk [vmem:[%s632_s17 + $0x8] sm:$0xff] %vm380_vm0, %v373_v45  ;;  %v315_v56 = vadd.f32 %v603_v10, %v300_v50  ;;  %v361_v57 = vadd.f32 %v608_v11, %v346_v51  ;;  %v491_v58 = vunpack.c.h.bf16 %v510_v42  ;;  %v507_v59 = vunpack.c.h.bf16 %v513_v43 }
  0x1d   : > { %383 = vst.msk [vmem:[%s632_s17 + $0x10] sm:$0xff] %vm380_vm0, %v374_v48  ;;  %384 = vst.msk [vmem:[%s632_s17 + $0x18] sm:$0xff] %vm380_vm0, %v375_v49  ;;  %v368_v60 = vadd.f32 %v360_v53, %v314_v52  ;;  %v301_v61 = vmul.f32 %v490_v54, %v589_v0  ;;  %v347_v62 = vmul.f32 %v506_v55, %v594_v1 }
  0x1e   : > { %v369_v63 = vadd.f32 %v361_v57, %v315_v56  ;;  %v302_v2 = vmul.f32 %v491_v58, %v589_v0  ;;  %v348_v3 = vmul.f32 %v507_v59, %v594_v1 }
  0x1f   : > { %v376_v4 = vmax.f32 %v368_v60, 0.0  ;;  %v316_v5 = vadd.f32 %v603_v10, %v301_v61  ;;  %v362_v6 = vadd.f32 %v608_v11, %v347_v62 }
  0x20   : > { %v377_v7 = vmax.f32 %v369_v63, 0.0  ;;  %v317_v8 = vadd.f32 %v603_v10, %v302_v2  ;;  %v363_v9 = vadd.f32 %v608_v11, %v348_v3 }
  0x21   : > { %385 = vst.msk [vmem:[%s632_s17 + $0x20] sm:$0xff] %vm380_vm0, %v376_v4  ;;  %v370_v12 = vadd.f32 %v362_v6, %v316_v5 }
  0x22   : > { %386 = vst.msk [vmem:[%s632_s17 + $0x28] sm:$0xff] %vm380_vm0, %v377_v7  ;;  %v371_v13 = vadd.f32 %v363_v9, %v317_v8 }
  0x23   : > { %v378_v14 = vmax.f32 %v370_v12, 0.0 }
  0x24   : > { %v379_v0 = vmax.f32 %v371_v13, 0.0 }
  0x25   : > { %387 = vst.msk [vmem:[%s632_s17 + $0x30] sm:$0xff] %vm380_vm0, %v378_v14 }
  0x26   : > { %388 = vst.msk [vmem:[%s632_s17 + $0x38] sm:$0xff] %vm380_vm0, %v379_v0 }
  0x27 PF: > { %s16_s21 = sadd.s32 1, %s528_s21  }
  0x28   : > { %p13_p4 = scmp.ge.s32.totalorder %s16_s21, 4  }
  0x2a   :  { %15 = sbr.rel (!%p13_p4) target bundleno = 1 (0x1), region = 77 }

// kernel: residual_block_forward.3
= control target key start
LH: loop header
LB: loop body
LE: loop exit
PB: predicated region body
PF: predicated region fallthrough
CT: control target
= control target key end

     0   :  { %s2349_s21 = smov 0   ;;  %s2772_s0 = inlined_call_operand.vmem [shape: bf16[8,9,9,4], index: 0, kind: input, shape index: {}]   ;;  %s2773_s1 = inlined_call_operand.vmem [shape: bf16[9,4,128], index: 1, kind: input, shape index: {}]   ;;  %s2774_s2 = inlined_call_operand.vmem [shape: bf16[4,128], index: 2, kind: input, shape index: {}]   ;;  %s2775_s3 = inlined_call_operand.vmem [shape: bf16[2,8,8,128], index: 3, kind: output, shape index: {0}]   ;;  %s2776_s4 = inlined_call_operand.vmem [shape: bf16[2,8,8,128], index: 4, kind: output, shape index: {1}]   ;;  %s2777_s5 = inlined_call_operand.vmem [shape: f32[2,2,128], index: 5, kind: output, shape index: {2}]   ;;  %s2778_s6 = inlined_call_operand.vmem [shape: f32[2,2,128], index: 6, kind: output, shape index: {3}]  }
   0x1 LB: > { %s2355_s22 = sadd.s32 4294967295, %s2312_s21   ;;  %p1874_p0 = scmp.ge.s32.totalorder %s2312_s21, 1  ;;  %s2312_s21 = sphi %s2349_s21, %s17_s21  }
   0x2   : > { %p221_p1 = scmp.lt.s32.totalorder %s2312_s21, 3 }
   0x4   : > { %p222_p2 = pnand %p1874_p0, %p221_p1 }
   0x5   : > { %vm378_vm0 = vcmask (!%p222_p2), 1041408   ;;  %v1918_v0 = vld [vmem:[%s2773_s1 + $0x8] sm:$0x3] (!%p222_p2)  ;;  %v1883_v1 = vld [vmem:[%s2773_s1 + $0x2] sm:$0x3] (!%p222_p2)  ;;  %s1875_s27 = sshll.u32 (!%p222_p2), %s2355_s22, 2 }
   0x6   : > { %225 = sbr.rel (%p222_p2) target bundleno = 340 (0x154), region = 32  ;;  %2267 = vmatprep.subr.msk.bf16.mxu0 (!%p222_p2), %vm378_vm0, %v1918_v0  ;;  %2263 = vmatprep.subr.msk.bf16.mxu1 (!%p222_p2), %vm378_vm0, %v1883_v1  ;;  %v909_v2 = vsel (!%p222_p2), %vm378_vm0, %v1918_v0, 0  ;;  %v380_v3 = vsel (!%p222_p2), %vm378_vm0, %v1883_v1, 0  ;;  %p266_p3 = scmp.lt.s32.totalorder (!%p222_p2), %s1875_s27, 7  ;;  %v1931_v4 = vld [vmem:[%s2773_s1 + $0xa] sm:$0x3] (!%p222_p2) }
   0x7   : > { %2140 = vmatpush3.bf16.msra.mxu0 (!%p222_p2), %v909_v2  ;;  %2100 = vmatpush3.bf16.msra.mxu1 (!%p222_p2), %v380_v3  ;;  %v342_v5 = vld [vmem:[%s2773_s1] sm:$0x3] (!%p222_p2)  ;;  %vm365_vm1 = vcmask (!%p222_p2), 31744   ;;  %v1192_v6 = vsel (!%p222_p2), %vm378_vm0, %v1931_v4, 0  ;;  %v1940_v14 = vld [vmem:[%s2773_s1 + $0xc] sm:$0x3] (!%p222_p2) }
   0x8   : > { %2269 = vmatprep.subr.msk.bf16.mxu0 (!%p222_p2), %vm378_vm0, %v1931_v4  ;;  %2264 = vmatprep.subr.msk.bf16.mxu1 (!%p222_p2), %vm378_vm0, %v342_v5  ;;  %v480_v7 = vsel (!%p222_p2), %vm378_vm0, %v342_v5, 0  ;;  %v1900_v15 = vld [vmem:[%s2773_s1 + $0x4] sm:$0x3] (!%p222_p2)  ;;  %vm547_vm2 = vsmask.f32 (!%p222_p2), 3328  ;;  %v2441_v26 = vsel (!%p222_p2), %vm378_vm0, %v1940_v14, 0 }
   0x9   : > { %vm548_vm3 = vsmask.f32 (!%p222_p2), 7440  ;;  %v2420_v20 = vld [vmem:[%s2773_s1 + $0x6] sm:$0x3] (!%p222_p2)  ;;  %v2444_v27 = vsel (!%p222_p2), %vm378_vm0, %v1900_v15, 0  ;;  %p272_p4 = scmp.lt.s32.totalorder (!%p222_p2), %s2355_s22, 1 }
   0xa   : > { %v2469_v38 = vsel (!%p222_p2), %vm378_vm0, %v2420_v20, 0  ;;  %vm2505_vm4 = vmor (!%p222_p2), %vm547_vm2, %vm548_vm3 }
   0xd   : > { %s2786_s27 = smov (!%p266_p3, %s1875_s27), 7  ;;  %s2788_s22 = smov (!%p272_p4, %s2355_s22), 1 }
   0xe   : > { %s2273_s8 = smul.u32 72, %s2786_s27  ;;  %s1985_s26 = sshll.u32 %s2788_s22, 5 }
   0xf   : > { %s2746_s29 = scalar_lea.vmem %s2776_s4, %s1985_s26  ;;  %s1881_s9 = sshll.u32 %s2788_s22, 1 }
  0x10   : > { %s2381_s11 = scalar_lea.vmem %s2772_s0, %s2273_s8  ;;  %s2751_s8 = scalar_lea.vmem %s2775_s3, %s1985_s26 }
  0x11   : > { %v309_v8 = vld [vmem:[%s2381_s11 + $0x48] sm:$0xf]  ;;  %v2387_v9 = vld [vmem:[%s2381_s11 + $0x50] sm:$0xf]  ;;  %v2390_v10 = vld [vmem:[%s2381_s11 + $0x58] sm:$0xf]  ;;  %s289_s12 = scalar_lea.vmem %s2778_s6, %s1881_s9  ;;  %s285_s22 = scalar_lea.vmem %s2777_s5, %s1881_s9 }
  0x12   : > { %v2393_v11 = vld [vmem:[%s2381_s11 + $0x60] sm:$0xf]  ;;  %v2396_v12 = vld [vmem:[%s2381_s11 + $0x68] sm:$0xf]  ;;  %v1884_v13 = vcombine.low %v309_v8, %v2387_v9  ;;  %v2415_v19 = vld [vmem:[%s2381_s11 + $0x70] sm:$0xf] }
  0x13   : > { %v1885_v16 = vcombine.low %v2390_v10, %v2393_v11  ;;  %v2408_v17 = vld [vmem:[%s2381_s11 + $0xd8] ss:$8 sps:$4 sm:$0xff]   ;;  %v2412_v18 = vld [vmem:[%s2381_s11 + $0xe8] ss:$8 sps:$4 sm:$0xff]   ;;  %v1886_v21 = vcombine.low %v2396_v12, %v2415_v19  ;;  %v319_v36 = vld [vmem:[%s2381_s11 + $0x94] sm:$0x1] }
  0x14   : > { %2101 = vmatprep.mubr.msk.bf16.mxu1 %vm365_vm1, %v1884_v13  ;;  %2141 = vmatprep.mubr.msk.bf16.mxu0 %vm365_vm1, %v2408_v17  ;;  %v2428_v22 = vld [vmem:[%s2381_s11 + $0xf8] ss:$8 sps:$4 sm:$0xff]   ;;  %v2449_v28 = vld [vmem:[%s2381_s11 + $0x108] ss:$8 sps:$4 sm:$0xff]   ;;  %v321_v41 = vld [vmem:[%s2381_s11 + $0x9c] sm:$0x1] }
  0x15   : > { %2102 = vmatmul.mubr.msk.bf16.vlgmr.msra.gmra.mrb[0].mxu1 %vm365_vm1, %v1885_v16  ;;  %2142 = vmatmul.mubr.msk.bf16.vlgmr.msra.gmra.mrb[0].mxu0 %vm365_vm1, %v2412_v18  ;;  %v2433_v23 = vld [vmem:[%s2381_s11 + $0x78] sm:$0xf]  ;;  %v2436_v24 = vld [vmem:[%s2381_s11 + $0x80] sm:$0xf]  ;;  %v2452_v29 = vld [vmem:[%s2381_s11 + $0x8] sm:$0xf] }
  0x16   : > { %2110 = vmatpush3.bf16.msra.mxu1 %v480_v7  ;;  %2160 = vmatpush3.bf16.msra.mxu0 %v1192_v6  ;;  %v291_v25 = vld [vmem:[%s2381_s11] sm:$0xf]  ;;  %v2455_v32 = vld [vmem:[%s2381_s11 + $0x90] sm:$0xf]  ;;  %v1887_v33 = vcombine.low %v2433_v23, %v2436_v24  ;;  %v565_v35 = vshrl.u32 %v2452_v29, 16  ;;  %v568_v40 = vshll.u32 %v2452_v29, 16  ;;  %v1952_v1 = vcombine.low %v2415_v19, %v2433_v23 }
  0x17   : > { %2105 = vmatprep.mubr.msk.bf16.mxu1 %vm365_vm1, %v1886_v21  ;;  %2145 = vmatprep.mubr.msk.bf16.mxu0 %vm365_vm1, %v2428_v22  ;;  %v551_v30 = vshrl.u32 %v291_v25, 16  ;;  %v554_v31 = vshll.u32 %v291_v25, 16  ;;  %v1892_v34 = vcombine.low %v291_v25, %v2452_v29  ;;  %v2464_v37 = vld [vmem:[%s2381_s11 + $0x98] sm:$0xf]  ;;  %v1054_v42 = vshrl.u32 %v2455_v32, 16 }
  0x18   : > { %2270 = vmatprep.subr.msk.bf16.mxu0 %vm378_vm0, %v1940_v14  ;;  %2265 = vmatprep.subr.msk.bf16.mxu1 %vm378_vm0, %v1900_v15  ;;  %v1057_v43 = vshll.u32 %v2455_v32, 16  ;;  %v1063_v44 = vshll.u32 %v319_v36, 16  ;;  %v1068_v45 = vshrl.u32 %v2464_v37, 16  ;;  %v1071_v46 = vshll.u32 %v2464_v37, 16  ;;  %v2480_v48 = vld [vmem:[%s2381_s11 + $0x10] sm:$0xf] }
  0x19   : > { %v2471_v39 = vrot.slane %v551_v30, 4  ;;  %v1077_v47 = vshll.u32 %v321_v41, 16  ;;  %v2482_v49 = vrot.slane %v554_v31, 5  ;;  %v1056_v50 = vrot.slane %v1054_v42, 4  ;;  %v2485_v52 = vld [vmem:[%s2381_s11 + $0x18] sm:$0xf] }
  0x1a   : > { %v1059_v51 = vrot.slane %v1057_v43, 5  ;;  %v579_v53 = vshrl.u32 %v2480_v48, 16  ;;  %v1065_v54 = vrot.slane %v1063_v44, 5  ;;  %v1070_v55 = vrot.slane %v1068_v45, 4  ;;  %v2491_v58 = vld [vmem:[%s2381_s11 + $0xa0] sm:$0xf] }
  0x1b   : > { %v1073_v56 = vrot.slane %v1071_v46, 5  ;;  %v582_v57 = vshll.u32 %v2480_v48, 16  ;;  %v1079_v60 = vrot.slane %v1077_v47, 5  ;;  %v1893_v61 = vcombine.low %v2480_v48, %v2485_v52  ;;  %v323_v63 = vld [vmem:[%s2381_s11 + $0xa4] sm:$0x1] }
  0x1c   : > { %v1060_v59 = vor.u32 %v1059_v51, %v1056_v50  ;;  %v593_v62 = vshrl.u32 %v2485_v52, 16  ;;  %v2501_v0 = vld [vmem:[%s2381_s11 + $0xa8] sm:$0xf]  ;;  %v325_v3 = vld [vmem:[%s2381_s11 + $0xac] sm:$0x1]  ;;  %v1082_v4 = vshrl.u32 %v2491_v58, 16 }
  0x1d   : > { %2106 = vmatmul.mubr.msk.bf16.gmra.mrb[4].mxu1 %vm365_vm1, %v1887_v33  ;;  %2146 = vmatmul.mubr.msk.bf16.gmra.mrb[4].mxu0 %vm365_vm1, %v2449_v28  ;;  %v1074_v2 = vor.u32 %v1073_v56, %v1070_v55  ;;  %v1085_v5 = vshll.u32 %v2491_v58, 16  ;;  %v1091_v6 = vshll.u32 %v323_v63, 16  ;;  %v1096_v8 = vshrl.u32 %v2501_v0, 16  ;;  %v2515_v15 = vld [vmem:[%s2381_s11 + $0x20] sm:$0xf] }
  0x1e   : > { %2111 = vmatprep.mubr.msk.bf16.mxu1 %vm365_vm1, %v1892_v34  ;;  %v1061_v7 = vrot.slane %v1060_v59, 4  ;;  %v1099_v13 = vshll.u32 %v2501_v0, 16  ;;  %v1105_v14 = vshll.u32 %v325_v3, 16  ;;  %v596_v21 = vshll.u32 %v2485_v52, 16  ;;  %v2519_v31 = vld [vmem:[%s2381_s11 + $0x28] sm:$0xf] }
  0x1f   : > { %v1075_v16 = vrot.slane %v1074_v2, 4  ;;  %v1084_v25 = vrot.slane %v1082_v4, 4  ;;  %v1087_v30 = vrot.slane %v1085_v5, 5  ;;  %v1093_v34 = vrot.slane %v1091_v6, 5  ;;  %v2524_v42 = vld [vmem:[%s2381_s11 + $0xb0] sm:$0xf] }
  0x20   : > { %v1066_v33 = vsel %vm2505_vm4, %v1061_v7, %v1065_v54  ;;  %v1098_v36 = vrot.slane %v1096_v8, 4  ;;  %v1101_v41 = vrot.slane %v1099_v13, 5  ;;  %v1107_v45 = vrot.slane %v1105_v14, 5  ;;  %v327_v47 = vld [vmem:[%s2381_s11 + $0xb4] sm:$0x1] }
  0x21   : > { %v1080_v43 = vsel %vm2505_vm4, %v1075_v16, %v1079_v60  ;;  %v1088_v44 = vor.u32 %v1087_v30, %v1084_v25  ;;  %v1894_v46 = vcombine.low %v2515_v15, %v2519_v31  ;;  %v2532_v50 = vld [vmem:[%s2381_s11 + $0xb8] sm:$0xf]  ;;  %v607_v54 = vshrl.u32 %v2515_v15, 16  ;;  %v329_v59 = vld [vmem:[%s2381_s11 + $0xbc] sm:$0x1] }
  0x22   : > { %v1932_v51 = vcombine.low %v1066_v33, %v1080_v43  ;;  %v1102_v55 = vor.u32 %v1101_v41, %v1098_v36  ;;  %v610_v56 = vshll.u32 %v2515_v15, 16  ;;  %v621_v63 = vshrl.u32 %v2519_v31, 16  ;;  %v2542_v4 = vld [vmem:[%s2381_s11 + $0x30] sm:$0xf]  ;;  %v2549_v8 = vld [vmem:[%s2381_s11 + $0x38] sm:$0xf] }
  0x23   : > { %v1089_v60 = vrot.slane %v1088_v44, 4  ;;  %v624_v2 = vshll.u32 %v2519_v31, 16  ;;  %v1110_v3 = vshrl.u32 %v2524_v42, 16  ;;  %v1113_v6 = vshll.u32 %v2524_v42, 16  ;;  %v2562_v36 = vld [vmem:[%s2381_s11 + $0xc0] sm:$0xf] }
  0x24   : > { %2161 = vmatprep.mubr.msk.bf16.mxu0 %vm365_vm1, %v1932_v51  ;;  %v1103_v5 = vrot.slane %v1102_v55, 4  ;;  %v1119_v7 = vshll.u32 %v327_v47, 16  ;;  %v1127_v16 = vshll.u32 %v2532_v50, 16  ;;  %v1133_v25 = vshll.u32 %v329_v59, 16  ;;  %v2567_v41 = vld [vmem:[%s2773_s1 + $0xe] sm:$0x3] }
  0x25   : > { %2112 = vmatmul.mubr.msk.bf16.vlgmr.msra.gmra.mrb[0].mxu1 %vm365_vm1, %v1893_v61  ;;  %v1124_v61 = vshrl.u32 %v2532_v50, 16  ;;  %v1094_v13 = vsel %vm2505_vm4, %v1089_v60, %v1093_v34  ;;  %v1112_v14 = vrot.slane %v1110_v3, 4  ;;  %v1115_v33 = vrot.slane %v1113_v6, 5  ;;  %v2573_v47 = vld [vmem:[%s2381_s11 + $0xc8] sm:$0xf] }
  0x26   : > { %2120 = vmatpush3.bf16.msra.mxu1 %v2444_v27  ;;  %2115 = vmatprep.mubr.msk.bf16.mxu1 %vm365_vm1, %v1894_v46  ;;  %v1108_v27 = vsel %vm2505_vm4, %v1103_v5, %v1107_v45  ;;  %v1121_v44 = vrot.slane %v1119_v7, 5  ;;  %v1129_v46 = vrot.slane %v1127_v16, 5  ;;  %v331_v45 = vld [vmem:[%s2381_s11 + $0xc4] sm:$0x1]  ;;  %v1135_v55 = vrot.slane %v1133_v25, 5 }
  0x27   : > { %2266 = vmatprep.subr.msk.bf16.mxu1 %vm378_vm0, %v2420_v20  ;;  %v1126_v34 = vrot.slane %v1124_v61, 4  ;;  %v1933_v43 = vcombine.low %v1094_v13, %v1108_v27  ;;  %v1895_v20 = vcombine.low %v2542_v4, %v2549_v8  ;;  %v1116_v51 = vor.u32 %v1115_v33, %v1112_v14  ;;  %v333_v3 = vld [vmem:[%s2381_s11 + $0xcc] sm:$0x1] }
  0x28   : > { %v1138_v7 = vshrl.u32 %v2562_v36, 16  ;;  %v1141_v61 = vshll.u32 %v2562_v36, 16  ;;  %v1147_v14 = vshll.u32 %v331_v45, 16  ;;  %v1152_v16 = vshrl.u32 %v2573_v47, 16  ;;  %v294_v6 = vld [vmem:[%s2381_s11 + $0xc] sm:$0x1] }
  0x29   : > { %2162 = vmatmul.mubr.msk.bf16.vlgmr.msra.gmra.mrb[0].mxu0 %vm365_vm1, %v1933_v43  ;;  %v1130_v5 = vor.u32 %v1129_v46, %v1126_v34  ;;  %v1117_v13 = vrot.slane %v1116_v51, 4  ;;  %v1155_v25 = vshll.u32 %v2573_v47, 16  ;;  %v1161_v43 = vshll.u32 %v333_v3, 16  ;;  %v292_v46 = vld [vmem:[%s2381_s11 + $0x4] sm:$0x1] }
  0x2a   : > { %2170 = vmatpush3.bf16.msra.mxu0 %v2441_v26  ;;  %v1140_v33 = vrot.slane %v1138_v7, 4  ;;  %v1143_v34 = vrot.slane %v1141_v61, 5  ;;  %v1149_v30 = vrot.slane %v1147_v14, 5  ;;  %v1154_v45 = vrot.slane %v1152_v16, 4 }
  0x2b   : > { %v1131_v27 = vrot.slane %v1130_v5, 4  ;;  %2271 = vmatprep.subr.msk.bf16.mxu0 %vm378_vm0, %v2567_v41  ;;  %v1122_v26 = vsel %vm2505_vm4, %v1117_v13, %v1121_v44  ;;  %v1157_v51 = vrot.slane %v1155_v25, 5  ;;  %v557_v3 = vor.u32 %v2482_v49, %v2471_v39 }
  0x2c   : > { %v1144_v60 = vor.u32 %v1143_v34, %v1140_v33  ;;  %v560_v59 = vshll.u32 %v292_v46, 16  ;;  %v567_v44 = vrot.slane %v565_v35, 4  ;;  %v570_v16 = vrot.slane %v568_v40, 5  ;;  %v300_v46 = vld [vmem:[%s2381_s11 + $0x24] sm:$0x1] }
  0x2d   : > { %2116 = vmatmul.mubr.msk.bf16.gmra.mrb[4].mxu1 %vm365_vm1, %v1895_v20  ;;  %v1136_v5 = vsel %vm2505_vm4, %v1131_v27, %v1135_v55  ;;  %v1163_v20 = vrot.slane %v1161_v43, 5  ;;  %v1158_v61 = vor.u32 %v1157_v51, %v1154_v45  ;;  %v558_v14 = vrot.slane %v557_v3, 4  ;;  %v296_v55 = vld [vmem:[%s2381_s11 + $0x14] sm:$0x1]  ;;  %v298_v43 = vld [vmem:[%s2381_s11 + $0x1c] sm:$0x1] }
  0x2e   : > { %v1934_v7 = vcombine.low %v1122_v26, %v1136_v5  ;;  %v1145_v13 = vrot.slane %v1144_v60, 4  ;;  %v574_v25 = vshll.u32 %v294_v6, 16  ;;  %v562_v33 = vrot.slane %v560_v59, 5 }
  0x2f   : > { %v1159_v27 = vrot.slane %v1158_v61, 4  ;;  %v1941_v39 = vcombine.low %v2452_v29, %v2480_v48  ;;  %v581_v49 = vrot.slane %v579_v53, 4  ;;  %v571_v60 = vor.u32 %v570_v16, %v567_v44  ;;  %v302_v61 = vld [vmem:[%s2381_s11 + $0x2c] sm:$0x1] }
  0x30   : > { %2165 = vmatprep.mubr.msk.bf16.mxu0 %vm365_vm1, %v1934_v7  ;;  %v1150_v35 = vsel %vm2505_vm4, %v1145_v13, %v1149_v30  ;;  %v576_v34 = vrot.slane %v574_v25, 5  ;;  %v584_v40 = vrot.slane %v582_v57, 5  ;;  %v563_v59 = vsel %vm2505_vm4, %v558_v14, %v562_v33  ;;  %v304_v14 = vld [vmem:[%s2381_s11 + $0x34] sm:$0x1] }
  0x31   : > { %v1164_v6 = vsel %vm2505_vm4, %v1159_v27, %v1163_v20  ;;  %v588_v29 = vshll.u32 %v296_v55, 16  ;;  %v595_v53 = vrot.slane %v593_v62, 4  ;;  %v572_v30 = vrot.slane %v571_v60, 4 }
  0x32   : > { %v1935_v26 = vcombine.low %v1150_v35, %v1164_v6  ;;  %v585_v45 = vor.u32 %v584_v40, %v581_v49  ;;  %v598_v51 = vrot.slane %v596_v21, 5  ;;  %v602_v57 = vshll.u32 %v298_v43, 16  ;;  %v306_v43 = vld [vmem:[%s2381_s11 + $0x3c] sm:$0x1] }
  0x33   : > { %v590_v48 = vrot.slane %v588_v29, 5  ;;  %v609_v5 = vrot.slane %v607_v54, 4  ;;  %v612_v20 = vrot.slane %v610_v56, 5  ;;  %v2627_v62 = vsel %vm2505_vm4, %v572_v30, %v576_v34 }
  0x34   : > { %2166 = vmatmul.mubr.msk.bf16.gmra.mrb[4].mxu0 %vm365_vm1, %v1935_v26  ;;  %v586_v3 = vrot.slane %v585_v45, 4  ;;  %v599_v7 = vor.u32 %v598_v51, %v595_v53  ;;  %v616_v44 = vshll.u32 %v300_v46, 16  ;;  %v1901_v21 = vcombine.low %v563_v59, %v2627_v62 }
  0x35   : > { %2171 = vmatprep.mubr.msk.bf16.mxu0 %vm365_vm1, %v1941_v39  ;;  %v604_v13 = vrot.slane %v602_v57, 5  ;;  %v613_v54 = vor.u32 %v612_v20, %v609_v5  ;;  %v623_v56 = vrot.slane %v621_v63, 4  ;;  %v626_v27 = vrot.slane %v624_v2, 5  ;;  %v307_v57 = vld [vmem:[%s2381_s11 + $0x40] sm:$0xf] }
  0x36   : > { %v2637_v16 = vsel %vm2505_vm4, %v586_v3, %v590_v48  ;;  %v600_v25 = vrot.slane %v599_v7, 4  ;;  %v618_v55 = vrot.slane %v616_v44, 5  ;;  %v652_v33 = vshll.u32 %v2549_v8, 16  ;;  %2121 = vmatprep.mubr.msk.bf16.mxu1 %vm365_vm1, %v1901_v21  ;;  %v1958_v5 = vld [vmem:[%s2773_s1 + $0x10] sm:$0x3] }
  0x37   : > { %v614_v39 = vrot.slane %v613_v54, 4  ;;  %v630_v49 = vshll.u32 %v302_v61, 16  ;;  %v2781_v35 = vshrl.u32 %v2542_v4, 16  ;;  %v627_v34 = vor.u32 %v626_v27, %v623_v56 }
  0x38   : > { %v2647_v60 = vsel %vm2505_vm4, %v600_v25, %v604_v13  ;;  %v2782_v40 = vshll.u32 %v2542_v4, 16  ;;  %v644_v2 = vshll.u32 %v304_v14, 16  ;;  %v1943_v53 = vcombine.low %v2519_v31, %v2542_v4  ;;  %v308_v25 = vld [vmem:[%s2381_s11 + $0x44] sm:$0x1] }
  0x39   : > { %v637_v63 = vrot.slane %v2781_v35, 4  ;;  %v1902_v59 = vcombine.low %v2637_v16, %v2647_v60  ;;  %v632_v29 = vrot.slane %v630_v49, 5  ;;  %v2783_v46 = vshrl.u32 %v2549_v8, 16 }
  0x3a   : > { %v640_v6 = vrot.slane %v2782_v40, 5  ;;  %v1384_v30 = vsel %vm378_vm0, %v2567_v41, 0  ;;  %v2662_v45 = vsel %vm2505_vm4, %v614_v39, %v618_v55  ;;  %v628_v51 = vrot.slane %v627_v34, 4  ;;  %v984_v41 = vld [vmem:[%s2774_s2] sm:$0x3] }
  0x3b   : > { %v651_v26 = vrot.slane %v2783_v46, 4  ;;  %2122 = vmatmul.mubr.msk.bf16.vlgmr.msra.gmra.mrb[0].mxu1 %vm365_vm1, %v1902_v59  ;;  %v646_v31 = vrot.slane %v644_v2, 5  ;;  %v654_v4 = vrot.slane %v652_v33, 5  ;;  %v658_v20 = vshll.u32 %v306_v43, 16 }
  0x3c   : > { %v641_v48 = vor.u32 %v640_v6, %v637_v63  ;;  %v1460_v3 = vshrl.u32 %v307_v57, 16  ;;  %v2784_v7 = vcombine.low %v2485_v52, %v2515_v15  ;;  %2130 = vmatpush3.bf16.msra.mxu1 %v2469_v38  ;;  %v633_v61 = vsel %vm2505_vm4, %v628_v51, %v632_v29 }
  0x3d   : > { %v1463_v21 = vshll.u32 %v307_v57, 16  ;;  %v1903_v13 = vcombine.low %v2662_v45, %v633_v61  ;;  %v655_v54 = vor.u32 %v654_v4, %v651_v26  ;;  %v660_v56 = vrot.slane %v658_v20, 5  ;;  %2268 = vmatprep.subr.msk.bf16.mxu1 %vm378_vm0, %v984_v41 }
  0x3e   : > { %2172 = vmatmul.mubr.msk.bf16.vlgmr.msra.gmra.mrb[0].mxu0 %vm365_vm1, %v2784_v7  ;;  %v642_v44 = vrot.slane %v641_v48, 4  ;;  %v1462_v14 = vrot.slane %v1460_v3, 4  ;;  %v1944_v15 = vcombine.low %v2549_v8, %v307_v57  ;;  %v1469_v33 = vshll.u32 %v308_v25, 16 }
  0x3f   : > { %2180 = vmatpush3.bf16.msra.mxu0 %v1384_v30  ;;  %2175 = vmatprep.mubr.msk.bf16.mxu0 %vm365_vm1, %v1943_v53  ;;  %v1465_v55 = vrot.slane %v1463_v21, 5  ;;  %v656_v52 = vrot.slane %v655_v54, 4  ;;  %v1950_v39 = vcombine.low %v2387_v9, %v2390_v10  ;;  %v1910_v35 = vcombine.low %v2455_v32, %v2464_v37 }
  0x40   : > { %2272 = vmatprep.subr.msk.bf16.mxu0 %vm378_vm0, %v1958_v5  ;;  %2125 = vmatprep.mubr.msk.bf16.mxu1 %vm365_vm1, %v1903_v13  ;;  %v647_v38 = vsel %vm2505_vm4, %v642_v44, %v646_v31  ;;  %v1471_v43 = vrot.slane %v1469_v33, 5  ;;  %v1951_v9 = vcombine.low %v2393_v11, %v2396_v12  ;;  %v1911_v10 = vcombine.low %v2491_v58, %v2501_v0  ;;  %v317_v11 = vld [vmem:[%s2381_s11 + $0x88] sm:$0xf] }
  0x41   : > { %v1466_v27 = vor.u32 %v1465_v55, %v1462_v14  ;;  %v661_v49 = vsel %vm2505_vm4, %v656_v52, %v660_v56  ;;  %v1493_v32 = vsel %vm378_vm0, %v1958_v5, 0  ;;  %v986_v37 = vsel %vm378_vm0, %v984_v41, 0 }
  0x42   : > { %v1904_v63 = vcombine.low %v647_v38, %v661_v49  ;;  %v1912_v40 = vcombine.low %v2524_v42, %v2532_v50  ;;  %v1913_v12 = vcombine.low %v2562_v36, %v2573_v47  ;;  %v1953_v58 = vcombine.low %v2436_v24, %v317_v11 }
  0x43   : > { %v1467_v34 = vrot.slane %v1466_v27, 4  ;;  %v1959_v0 = vcombine.low %v2627_v62, %v2637_v16  ;;  %v1960_v19 = vcombine.low %v2647_v60, %v2662_v45  ;;  %v1961_v23 = vcombine.low %v633_v61, %v647_v38 }
  0x44   : > { %2126 = vmatmul.mubr.msk.bf16.gmra.mrb[4].mxu1 %vm365_vm1, %v1904_v63 }
  0x45   : > { %v1472_v8 = vsel %vm2505_vm4, %v1467_v34, %v1471_v43  ;;  %2131 = vmatprep.mubr.msk.bf16.mxu1 %vm365_vm1, %v1910_v35 }
  0x46   : > { %2176 = vmatmul.mubr.msk.bf16.gmra.mrb[4].mxu0 %vm365_vm1, %v1944_v15  ;;  %v1962_v24 = vcombine.low %v661_v49, %v1472_v8 }
  0x47   : > { %2181 = vmatprep.mubr.msk.bf16.mxu0 %vm365_vm1, %v1950_v39 }
  0x4c   : > { %2132 = vmatmul.mubr.msk.bf16.vlgmr.msra.gmra.mrb[0].mxu1 %vm365_vm1, %v1911_v10 }
  0x4d   : > { %2150 = vmatpush3.bf16.msra.mxu1 %v986_v37  ;;  %2135 = vmatprep.mubr.msk.bf16.mxu1 %vm365_vm1, %v1912_v40 }
  0x4e   : > { %2182 = vmatmul.mubr.msk.bf16.vlgmr.msra.gmra.mrb[0].mxu0 %vm365_vm1, %v1951_v9 }
  0x4f   : > { %2190 = vmatpush3.bf16.msra.mxu0 %v1493_v32  ;;  %2185 = vmatprep.mubr.msk.bf16.mxu0 %vm365_vm1, %v1952_v1 }
  0x54   : > { %2136 = vmatmul.mubr.msk.bf16.gmra.mrb[4].mxu1 %vm365_vm1, %v1913_v12 }
  0x55   : > { %2151 = vmatprep.mubr.msk.bf16.mxu1 %vm365_vm1, %v2408_v17 }
  0x56   : > { %2186 = vmatmul.mubr.msk.bf16.gmra.mrb[4].mxu0 %vm365_vm1, %v1953_v58 }
  0x57   : > { %2191 = vmatprep.mubr.msk.bf16.mxu0 %vm365_vm1, %v1959_v0 }
  0x5c   : > { %2152 = vmatmul.mubr.msk.bf16.vlgmr.msra.gmra.mrb[8].mxu1 %vm365_vm1, %v2412_v18 }
  0x5d   : > { %2155 = vmatprep.mubr.msk.bf16.mxu1 %vm365_vm1, %v2428_v22 }
  0x5e   : > { %2192 = vmatmul.mubr.msk.bf16.vlgmr.msra.gmra.mrb[0].mxu0 %vm365_vm1, %v1960_v19 }
  0x5f   : > { %2195 = vmatprep.mubr.msk.bf16.mxu0 %vm365_vm1, %v1961_v23 }
  0x64   : > { %2156 = vmatmul.mubr.msk.bf16.gmra.mrb[12].mxu1 %vm365_vm1, %v2449_v28 }
  0x66   : > { %2196 = vmatmul.mubr.msk.bf16.gmra.mrb[4].mxu0 %vm365_vm1, %v1962_v24 }
 0x11f   : > { %v2133_v17 = vpop.f32.mrb[0].mxu1 }
 0x120   : > { %v835_v42 = vpop.f32.mrb[1].mxu1 }
 0x121   : > { %v2134_v50 = vpop.f32.mrb[2].mxu1 }
 0x122   : > { %v838_v36 = vpop.f32.mrb[3].mxu1 }
 0x127   : > { %v2137_v18 = vpop.f32.mrb[4].mxu1 }
 0x128   : > { %v851_v47 = vpop.f32.mrb[5].mxu1 }
 0x129   : > { %v2138_v62 = vpop.f32.mrb[6].mxu1 }
 0x12a   : > { %v2737_v16 = vpop.f32.mrb[7].mxu1 }
 0x12f   : > { %v2153_v22 = vpop.f32.mrb[8].mxu1 }
 0x130   : > { %v1022_v28 = vpop.f32.mrb[9].mxu1  ;;  %v1660_v20 = vmul.f32 %v2153_v22, %v2153_v22 }
 0x131   : > { %v2193_v60 = vpop.f32.mrb[0].mxu0  ;;  %v2154_v29 = vpop.f32.mrb[10].mxu1  ;;  %v1658_v51 = vmul.f32 %v1022_v28, %v1022_v28 }
 0x132   : > { %v2199_v6 = vadd.f32 %v2193_v60, %v2133_v17  ;;  %v1529_v2 = vpop.f32.mrb[1].mxu0  ;;  %v2031_v46 = vpack.c.bf16 %v2154_v29, %v2153_v22  ;;  %v1025_v30 = vpop.f32.mrb[11].mxu1  ;;  %v1661_v13 = vmul.f32 %v2154_v29, %v2154_v29 }
 0x133   : > { %v2200_v59 = vadd.f32 %v1529_v2, %v835_v42  ;;  %v2194_v53 = vpop.f32.mrb[2].mxu0  ;;  %v1644_v48 = vadd.f32 %v1025_v30, %v1022_v28  ;;  %v1659_v57 = vmul.f32 %v1025_v30, %v1025_v30  ;;  %v2026_v5 = vpack.c.bf16 %v1025_v30, %v1022_v28 }
 0x134   : > { %v2201_v26 = vadd.f32 %v2194_v53, %v2134_v50  ;;  %v1532_v45 = vpop.f32.mrb[3].mxu0  ;;  %2046 = vst [vmem:[%s2746_s29 + $0x8] sm:$0xff] %v2031_v46   ;;  %v1584_v55 = vmul.f32 %v2199_v6, %v2199_v6 }
 0x135   : > { %v2202_v4 = vadd.f32 %v1532_v45, %v838_v36  ;;  %v1645_v3 = vadd.f32 %v2153_v22, %v1644_v48  ;;  %v1666_v41 = vadd.f32 %v1659_v57, %v1658_v51  ;;  %2027 = vst [vmem:[%s2746_s29] sm:$0xff] %v2026_v5   ;;  %v1582_v7 = vmul.f32 %v2200_v59, %v2200_v59 }
 0x136   : > { %v2011_v31 = vpack.c.bf16 %v2201_v26, %v2199_v6  ;;  %v1585_v8 = vmul.f32 %v2201_v26, %v2201_v26 }
 0x137   : > { %v1568_v61 = vadd.f32 %v2202_v4, %v2200_v59  ;;  %v1583_v44 = vmul.f32 %v2202_v4, %v2202_v4  ;;  %v2006_v21 = vpack.c.bf16 %v2202_v4, %v2200_v59  ;;  %v1667_v54 = vadd.f32 %v1666_v41, %v1660_v20  ;;  %v2157_v56 = vpop.f32.mrb[12].mxu1 }
 0x138   : > { %2043 = vst [vmem:[%s2751_s8 + $0x8] sm:$0xff] %v2011_v31   ;;  %v1646_v25 = vadd.f32 %v2154_v29, %v1645_v3  ;;  %v1038_v27 = vpop.f32.mrb[13].mxu1  ;;  %v1664_v50 = vmul.f32 %v2157_v56, %v2157_v56 }
 0x139   : > { %v2197_v14 = vpop.f32.mrb[4].mxu0  ;;  %v1569_v38 = vadd.f32 %v2199_v6, %v1568_v61  ;;  %v1590_v52 = vadd.f32 %v1583_v44, %v1582_v7  ;;  %2007 = vst [vmem:[%s2751_s8] sm:$0xff] %v2006_v21   ;;  %v1662_v49 = vmul.f32 %v1038_v27, %v1038_v27  ;;  %v1668_v35 = vadd.f32 %v1667_v54, %v1661_v13  ;;  %v2158_v34 = vpop.f32.mrb[14].mxu1 }
 0x13a   : > { %v2203_v15 = vadd.f32 %v2197_v14, %v2137_v18  ;;  %v1545_v33 = vpop.f32.mrb[5].mxu0  ;;  %v1647_v39 = vadd.f32 %v1646_v25, %v1038_v27  ;;  %v1041_v32 = vpop.f32.mrb[15].mxu1  ;;  %v2041_v11 = vpack.c.bf16 %v2158_v34, %v2157_v56 }
 0x13b   : > { %v2204_v63 = vadd.f32 %v1545_v33, %v851_v47  ;;  %v2198_v43 = vpop.f32.mrb[6].mxu0  ;;  %v1591_v9 = vadd.f32 %v1590_v52, %v1584_v55  ;;  %v1570_v10 = vadd.f32 %v2201_v26, %v1569_v38  ;;  %v1669_v40 = vadd.f32 %v1668_v35, %v1662_v49 }
 0x13c   : > { %v1548_v37 = vpop.f32.mrb[7].mxu0  ;;  %v2205_v12 = vadd.f32 %v2198_v43, %v2138_v62  ;;  %v1648_v19 = vadd.f32 %v1647_v39, %v1041_v32  ;;  %v1663_v23 = vmul.f32 %v1041_v32, %v1041_v32  ;;  %2048 = vst [vmem:[%s2746_s29 + $0x18] sm:$0xff] %v2041_v11   ;;  %v2036_v17 = vpack.c.bf16 %v1041_v32, %v1038_v27 }
 0x13d   : > { %v1586_v1 = vmul.f32 %v2204_v63, %v2204_v63  ;;  %v1571_v58 = vadd.f32 %v2204_v63, %v1570_v10  ;;  %v1592_v0 = vadd.f32 %v1591_v9, %v1585_v8  ;;  %v2206_v42 = vadd.f32 %v1548_v37, %v2737_v16 }
 0x13e   : > { %v2021_v24 = vpack.c.bf16 %v2205_v12, %v2203_v15  ;;  %v1649_v18 = vadd.f32 %v2157_v56, %v1648_v19  ;;  %v1670_v47 = vadd.f32 %v1669_v40, %v1663_v23  ;;  %2047 = vst [vmem:[%s2746_s29 + $0x10] sm:$0xff] %v2036_v17   ;;  %v1665_v62 = vmul.f32 %v2158_v34, %v2158_v34 }
 0x13f   : > { %v1593_v36 = vadd.f32 %v1592_v0, %v1586_v1  ;;  %v1572_v22 = vadd.f32 %v2206_v42, %v1571_v58  ;;  %v1587_v60 = vmul.f32 %v2206_v42, %v2206_v42  ;;  %v2016_v6 = vpack.c.bf16 %v2206_v42, %v2204_v63 }
 0x140   : > { %2045 = vst [vmem:[%s2751_s8 + $0x18] sm:$0xff] %v2021_v24   ;;  %v1650_v28 = vadd.f32 %v2158_v34, %v1649_v18  ;;  %v1671_v2 = vadd.f32 %v1670_v47, %v1664_v50  ;;  %v1588_v59 = vmul.f32 %v2203_v15, %v2203_v15  ;;  %v1589_v26 = vmul.f32 %v2205_v12, %v2205_v12 }
 0x141   : > { %v1573_v29 = vadd.f32 %v2203_v15, %v1572_v22  ;;  %v1594_v53 = vadd.f32 %v1593_v36, %v1587_v60  ;;  %2044 = vst [vmem:[%s2751_s8 + $0x10] sm:$0xff] %v2016_v6  }
 0x142   : > { %v1651_v46 = vrot.slane %v1650_v28, 4  ;;  %v1672_v16 = vadd.f32 %v1671_v2, %v1665_v62 }
 0x143   : > { %v1574_v30 = vadd.f32 %v2205_v12, %v1573_v29  ;;  %v1595_v45 = vadd.f32 %v1594_v53, %v1588_v59 }
 0x144   : > { %v1652_v51 = vadd.f32 %v1651_v46, %v1650_v28  ;;  %v1673_v48 = vrot.slane %v1672_v16, 4 }
 0x145   : > { %v1575_v57 = vrot.slane %v1574_v30, 4  ;;  %v1596_v5 = vadd.f32 %v1595_v45, %v1589_v26 }
 0x146   : > { %v1653_v31 = vrot.slane %v1652_v51, 2  ;;  %v1674_v4 = vadd.f32 %v1673_v48, %v1672_v16 }
 0x147   : > { %v1576_v20 = vadd.f32 %v1575_v57, %v1574_v30  ;;  %v1597_v3 = vrot.slane %v1596_v5, 4 }
 0x148   : > { %v1654_v41 = vadd.f32 %v1653_v31, %v1652_v51  ;;  %v1675_v7 = vrot.slane %v1674_v4, 2 }
 0x149   : > { %v1577_v61 = vrot.slane %v1576_v20, 2  ;;  %v1598_v44 = vadd.f32 %v1597_v3, %v1596_v5 }
 0x14a   : > { %v1655_v21 = vrot.slane %v1654_v41, 1  ;;  %v1676_v13 = vadd.f32 %v1675_v7, %v1674_v4 }
 0x14b   : > { %v1578_v54 = vadd.f32 %v1577_v61, %v1576_v20  ;;  %v1599_v56 = vrot.slane %v1598_v44, 2 }
 0x14c   : > { %v1656_v14 = vadd.f32 %v1655_v21, %v1654_v41  ;;  %v1677_v25 = vrot.slane %v1676_v13, 1 }
 0x14d   : > { %v1579_v55 = vrot.slane %v1578_v54, 1  ;;  %v1600_v38 = vadd.f32 %v1599_v56, %v1598_v44 }
 0x14e   : > { %1657 = vst [vmem:[%s289_s12] sm:$0x1] %v1656_v14  ;;  %v1678_v52 = vadd.f32 %v1677_v25, %v1676_v13 }
 0x14f   : > { %v1580_v15 = vadd.f32 %v1579_v55, %v1578_v54  ;;  %v1601_v27 = vrot.slane %v1600_v38, 1 }
 0x150   : > { %1679 = vst [vmem:[%s289_s12 + $0x1] sm:$0x1] %v1678_v52 }
 0x151   : > { %1581 = vst [vmem:[%s285_s22] sm:$0x1] %v1580_v15  ;;  %v1602_v33 = vadd.f32 %v1601_v27, %v1600_v38 }
 0x153   : > { %1603 = vst [vmem:[%s285_s22 + $0x1] sm:$0x1] %v1602_v33 }
 0x154 PF: > { %s17_s21 = sadd.s32 1, %s2312_s21  }
 0x155   : > { %p14_p5 = scmp.ge.s32.totalorder %s17_s21, 4  }
 0x157   :  { %16 = sbr.rel (!%p14_p5) target bundleno = 1 (0x1), region = 106 }

// kernel: residual_block_forward.4
= control target key start
LH: loop header
LB: loop body
LE: loop exit
PB: predicated region body
PF: predicated region fallthrough
CT: control target
= control target key end

     0   :  { %s3514_s18 = smov 0   ;;  %s4157_s0 = inlined_call_operand.vmem [shape: bf16[2,8,8,128], index: 0, kind: input, shape index: {}]   ;;  %s4158_s1 = inlined_call_operand.vmem [shape: f32[1,128], index: 1, kind: input, shape index: {}]   ;;  %s4159_s2 = inlined_call_operand.vmem [shape: f32[1,128], index: 2, kind: input, shape index: {}]   ;;  %s4160_s3 = inlined_call_operand.vmem [shape: bf16[9,128,128], index: 3, kind: input, shape index: {}]   ;;  %s4161_s4 = inlined_call_operand.vmem [shape: bf16[2,8,8,128], index: 4, kind: output, shape index: {0}]   ;;  %s4162_s5 = inlined_call_operand.vmem [shape: f32[2,2,128], index: 5, kind: output, shape index: {1}]  }
   0x1 LB: > { %s2644_s19 = sadd.s32 4294967295, %s3481_s18   ;;  %p2648_p0 = scmp.ge.s32.totalorder %s3481_s18, 1  ;;  %s3481_s18 = sphi %s3514_s18, %s16_s18  }
   0x2   : > { %p190_p1 = scmp.lt.s32.totalorder %s3481_s18, 3 }
   0x4   : > { %p191_p2 = pnand %p2648_p0, %p190_p1 }
   0x5   : > { %v3391_v0 = vld [vmem:[%s4160_s3 + $0x40] sm:$0xff] (!%p191_p2)   ;;  %v3393_v2 = vld [vmem:[%s4160_s3 + $0x48] sm:$0xff] (!%p191_p2)   ;;  %p3533_p3 = scmp.lt.s32.totalorder (!%p191_p2), %s2644_s19, 1  ;;  %v3483_v3 = vmov (!%p191_p2), 0   ;;  %v3395_v5 = vld [vmem:[%s4160_s3 + $0x50] sm:$0xff] (!%p191_p2)  }
   0x6   : > { %194 = sbr.rel (%p191_p2) target bundleno = 416 (0x1a0), region = 36  ;;  %v3392_v1 = vld [vmem:[%s4160_s3 + $0x100] sm:$0xff] (!%p191_p2)   ;;  %3086 = vmatprep.subr.bf16.mxu1 (!%p191_p2), %v3391_v0  ;;  %238 = vst [vmem:[#allocation2 + $0x4] sm:$0xf] (!%p191_p2), %v3483_v3  ;;  %241 = vst [vmem:[#allocation2 + $0x10] sm:$0xf] (!%p191_p2), %v3483_v3 }
   0x7   : > { %237 = vst [vmem:[#allocation2] sm:$0xf] (!%p191_p2), %v3483_v3  ;;  %239 = vst [vmem:[#allocation2 + $0x8] sm:$0xf] (!%p191_p2), %v3483_v3  ;;  %3182 = vmatprep.subr.bf16.mxu0 (!%p191_p2), %v3392_v1  ;;  %3087 = vmatpush3.bf16.msra.mxu1 (!%p191_p2), %v3391_v0  ;;  %v3394_v4 = vld [vmem:[%s4160_s3 + $0x108] sm:$0xff] (!%p191_p2)   ;;  %v3396_v6 = vld [vmem:[%s4160_s3 + $0x110] sm:$0xff] (!%p191_p2)  }
   0x8   : > { %240 = vst [vmem:[#allocation2 + $0xc] sm:$0xf] (!%p191_p2), %v3483_v3  ;;  %242 = vst [vmem:[#allocation2 + $0x14] sm:$0xf] (!%p191_p2), %v3483_v3  ;;  %3183 = vmatpush3.bf16.msra.mxu0 (!%p191_p2), %v3392_v1  ;;  %3088 = vmatprep.subr.bf16.mxu1 (!%p191_p2), %v3393_v2  ;;  %v3397_v7 = vld [vmem:[%s4160_s3 + $0x58] sm:$0xff] (!%p191_p2)   ;;  %v3399_v9 = vld [vmem:[%s4160_s3 + $0x60] sm:$0xff] (!%p191_p2)  }
   0x9   : > { %243 = vst [vmem:[#allocation2 + $0x18] sm:$0xf] (!%p191_p2), %v3483_v3  ;;  %244 = vst [vmem:[#allocation2 + $0x1c] sm:$0xf] (!%p191_p2), %v3483_v3  ;;  %3184 = vmatprep.subr.bf16.mxu0 (!%p191_p2), %v3394_v4  ;;  %v3398_v8 = vld [vmem:[%s4160_s3 + $0x118] sm:$0xff] (!%p191_p2)   ;;  %v3400_v10 = vld [vmem:[%s4160_s3 + $0x120] sm:$0xff] (!%p191_p2)  }
   0xa   : > { %245 = vst [vmem:[#allocation2 + $0x20] sm:$0xf] (!%p191_p2), %v3483_v3  ;;  %246 = vst [vmem:[#allocation2 + $0x24] sm:$0xf] (!%p191_p2), %v3483_v3  ;;  %v3401_v11 = vld [vmem:[%s4160_s3 + $0x68] sm:$0xff] (!%p191_p2)   ;;  %v3403_v21 = vld [vmem:[%s4160_s3 + $0x70] sm:$0xff] (!%p191_p2)  }
   0xb   : > { %247 = vst [vmem:[#allocation2 + $0x28] sm:$0xf] (!%p191_p2), %v3483_v3  ;;  %248 = vst [vmem:[#allocation2 + $0x2c] sm:$0xf] (!%p191_p2), %v3483_v3  ;;  %3089 = vmatpush3.bf16.msra.mxu1 (!%p191_p2), %v3393_v2  ;;  %v3579_v13 = vld [vmem:[%s4158_s1] ss:$0 sm:$0xff] (!%p191_p2) }
   0xc   : > { %249 = vst [vmem:[#allocation2 + $0x30] sm:$0xf] (!%p191_p2), %v3483_v3  ;;  %250 = vst [vmem:[#allocation2 + $0x34] sm:$0xf] (!%p191_p2), %v3483_v3  ;;  %3185 = vmatpush3.bf16.msra.mxu0 (!%p191_p2), %v3394_v4  ;;  %3090 = vmatprep.subr.bf16.mxu1 (!%p191_p2), %v3395_v5  ;;  %v3402_v14 = vld [vmem:[%s4160_s3 + $0x128] sm:$0xff] (!%p191_p2)   ;;  %v3404_v24 = vld [vmem:[%s4160_s3 + $0x130] sm:$0xff] (!%p191_p2)  }
   0xd   : > { %251 = vst [vmem:[#allocation2 + $0x38] sm:$0xf] %v3483_v3  ;;  %252 = vst [vmem:[#allocation2 + $0x3c] sm:$0xf] %v3483_v3  ;;  %s4172_s19 = smov (!%p3533_p3, %s2644_s19), 1  ;;  %3186 = vmatprep.subr.bf16.mxu0 %v3396_v6  ;;  %v3405_v29 = vld [vmem:[%s4160_s3 + $0x78] sm:$0xff]  }
   0xe   : > { %253 = vst [vmem:[#allocation2 + $0x40] sm:$0xf] %v3483_v3  ;;  %254 = vst [vmem:[#allocation2 + $0x44] sm:$0xf] %v3483_v3  ;;  %s2926_s12 = sshll.u32 %s4172_s19, 5  ;;  %v3406_v34 = vld [vmem:[%s4160_s3 + $0x138] sm:$0xff]  }
   0xf   : > { %255 = vst [vmem:[#allocation2 + $0x48] sm:$0xf] %v3483_v3  ;;  %256 = vst [vmem:[#allocation2 + $0x4c] sm:$0xf] %v3483_v3  ;;  %3091 = vmatpush3.bf16.msra.mxu1 %v3395_v5  ;;  %s3570_s21 = scalar_lea.vmem %s4157_s0, %s2926_s12  ;;  %v3587_v17 = vld [vmem:[%s4159_s2] ss:$0 sm:$0xff]  ;;  %s231_s20 = scalar_lea.vmem %s4161_s4, %s2926_s12 }
  0x10   : > { %257 = vst [vmem:[#allocation2 + $0x50] sm:$0xf] %v3483_v3  ;;  %258 = vst [vmem:[#allocation2 + $0x54] sm:$0xf] %v3483_v3  ;;  %3187 = vmatpush3.bf16.msra.mxu0 %v3396_v6  ;;  %3092 = vmatprep.subr.bf16.mxu1 %v3397_v7  ;;  %v2937_v12 = vld [vmem:[%s3570_s21] sm:$0xff]   ;;  %v2972_v20 = vld [vmem:[%s3570_s21 + $0x8] sm:$0xff]  }
  0x11   : > { %259 = vst [vmem:[#allocation2 + $0x58] sm:$0xf] %v3483_v3  ;;  %260 = vst [vmem:[#allocation2 + $0x5c] sm:$0xf] %v3483_v3  ;;  %3188 = vmatprep.subr.bf16.mxu0 %v3398_v8  ;;  %v2938_v15 = vunpack.c.l.bf16 %v2937_v12  ;;  %v2939_v16 = vunpack.c.h.bf16 %v2937_v12  ;;  %v2942_v22 = vunpack.c.l.bf16 %v2972_v20  ;;  %v2943_v23 = vunpack.c.h.bf16 %v2972_v20  ;;  %v3408_v39 = vld [vmem:[%s4160_s3] sm:$0xff]   ;;  %v2973_v43 = vld [vmem:[%s3570_s21 + $0x10] sm:$0xff]  }
  0x12   : > { %261 = vst [vmem:[#allocation2 + $0x60] sm:$0xf] %v3483_v3  ;;  %262 = vst [vmem:[#allocation2 + $0x64] sm:$0xf] %v3483_v3  ;;  %v3616_v42 = vld [vmem:[%s4160_s3 + $0x140] sm:$0xff]   ;;  %v2946_v44 = vunpack.c.l.bf16 %v2973_v43  ;;  %v2947_v45 = vunpack.c.h.bf16 %v2973_v43  ;;  %v2974_v49 = vld [vmem:[%s3570_s21 + $0x18] sm:$0xff]  }
  0x13   : > { %263 = vst [vmem:[#allocation2 + $0x68] sm:$0xf] %v3483_v3  ;;  %264 = vst [vmem:[#allocation2 + $0x6c] sm:$0xf] %v3483_v3  ;;  %3093 = vmatpush3.bf16.msra.mxu1 %v3397_v7  ;;  %v290_v18 = vmul.f32 %v2938_v15, %v3579_v13  ;;  %v291_v19 = vmul.f32 %v2939_v16, %v3579_v13  ;;  %v292_v27 = vmul.f32 %v2942_v22, %v3579_v13  ;;  %v3619_v46 = vld [vmem:[#allocation2 + $0x4] sm:$0xf] }
  0x14   : > { %265 = vst [vmem:[#allocation2 + $0x70] sm:$0xf] %v3483_v3  ;;  %266 = vst [vmem:[#allocation2 + $0x74] sm:$0xf] %v3483_v3  ;;  %3189 = vmatpush3.bf16.msra.mxu0 %v3398_v8  ;;  %3094 = vmatprep.subr.bf16.mxu1 %v3399_v9  ;;  %v293_v28 = vmul.f32 %v2943_v23, %v3579_v13  ;;  %v363_v47 = vshrl.u32 %v3619_v46, 16  ;;  %v294_v48 = vmul.f32 %v2946_v44, %v3579_v13  ;;  %v3413_v7 = vld [vmem:[%s4160_s3 + $0x8] sm:$0xff]  }
  0x15   : > { %3190 = vmatprep.subr.bf16.mxu0 %v3400_v10  ;;  %v305_v25 = vadd.f32 %v3587_v17, %v290_v18  ;;  %v306_v26 = vadd.f32 %v3587_v17, %v291_v19  ;;  %v307_v32 = vadd.f32 %v3587_v17, %v292_v27  ;;  %v295_v53 = vmul.f32 %v2947_v45, %v3579_v13  ;;  %v3414_v15 = vld [vmem:[%s4160_s3 + $0x148] sm:$0xff]   ;;  %v338_v22 = vld [vmem:[#allocation2] sm:$0x8]  ;;  %v1482_v43 = vld [vmem:[#allocation2 + $0x14] sm:$0x1]  ;;  %s2653_s12 = sshll.u32 %s4172_s19, 1 }
  0x16   : > { %v308_v33 = vadd.f32 %v3587_v17, %v293_v28  ;;  %v366_v54 = vshll.u32 %v3619_v46, 16  ;;  %v365_v58 = vrot.slane %v363_v47, 7  ;;  %v309_v0 = vadd.f32 %v3587_v17, %v294_v48  ;;  %s235_s23 = scalar_lea.vmem %s4162_s5, %s2653_s12 }
  0x17   : > { %3095 = vmatpush3.bf16.msra.mxu1 %v3399_v9  ;;  %v313_v30 = vmax.f32 %v305_v25, 0.0  ;;  %v314_v31 = vmax.f32 %v306_v26, 0.0  ;;  %v315_v37 = vmax.f32 %v307_v32, 0.0  ;;  %v2950_v1 = vunpack.c.l.bf16 %v2974_v49 }
  0x18   : > { %3191 = vmatpush3.bf16.msra.mxu0 %v3400_v10  ;;  %3096 = vmatprep.subr.bf16.mxu1 %v3401_v11  ;;  %v316_v38 = vmax.f32 %v308_v33, 0.0  ;;  %v2951_v2 = vunpack.c.h.bf16 %v2974_v49  ;;  %v310_v8 = vadd.f32 %v3587_v17, %v295_v53  ;;  %vm354_vm0 = vsmask.f32 256  ;;  %v3416_v33 = vld [vmem:[%s4160_s3 + $0x150] sm:$0xff]   ;;  %v3417_v49 = vld [vmem:[%s4160_s3 + $0x18] sm:$0xff]  }
  0x19   : > { %3192 = vmatprep.subr.bf16.mxu0 %v3402_v14  ;;  %v321_v35 = vpack.c.bf16 %v313_v30, %v313_v30  ;;  %v322_v36 = vpack.c.bf16 %v314_v31, %v314_v31  ;;  %v323_v40 = vpack.c.bf16 %v315_v37, %v315_v37  ;;  %v3687_v37 = vor.u32 %v366_v54, %v365_v58  ;;  %v3418_v53 = vld [vmem:[%s4160_s3 + $0x158] sm:$0xff]  }
  0x1a   : > { %v324_v41 = vpack.c.bf16 %v316_v38, %v316_v38  ;;  %v358_v47 = vshrl.u32 %v338_v22, 16  ;;  %vm355_vm1 = vsmask.f32 4368  ;;  %vm776_vm2 = vsmask.f32 3328 }
  0x1b   : > { %3097 = vmatpush3.bf16.msra.mxu1 %v3401_v11  ;;  %330 = vst [vmem:[#allocation2 + $0x10] sm:$0xf] %v321_v35  ;;  %331 = vst [vmem:[#allocation2 + $0x1c] sm:$0xf] %v322_v36  ;;  %v296_v35 = vmul.f32 %v2950_v1, %v3579_v13  ;;  %v340_v36 = vld [vmem:[#allocation2 + $0xc] sm:$0x8] }
  0x1c   : > { %3193 = vmatpush3.bf16.msra.mxu0 %v3402_v14  ;;  %3098 = vmatprep.subr.bf16.mxu1 %v3403_v21  ;;  %332 = vst [vmem:[#allocation2 + $0x28] sm:$0xf] %v323_v40  ;;  %333 = vst [vmem:[#allocation2 + $0x34] sm:$0xf] %v324_v41  ;;  %v297_v40 = vmul.f32 %v2951_v2, %v3579_v13  ;;  %vm777_vm4 = vsmask.f32 7440 }
  0x1d   : > { %3194 = vmatprep.subr.bf16.mxu0 %v3404_v24  ;;  %vm3716_vm3 = vmor %vm354_vm0, %vm355_vm1 }
  0x1e   : > { %v312_v13 = vadd.f32 %v3587_v17, %v297_v40  ;;  %v3421_v40 = vld [vmem:[%s4160_s3 + $0x28] sm:$0xff]   ;;  %vm3774_vm5 = vmor %vm776_vm2, %vm777_vm4 }
  0x1f   : > { %3099 = vmatpush3.bf16.msra.mxu1 %v3403_v21  ;;  %v3415_v21 = vld [vmem:[%s4160_s3 + $0x10] sm:$0xff]  }
  0x20   : > { %3195 = vmatpush3.bf16.msra.mxu0 %v3404_v24  ;;  %3100 = vmatprep.subr.bf16.mxu1 %v3405_v29  ;;  %v320_v58 = vmax.f32 %v312_v13, 0.0 }
  0x21   : > { %3196 = vmatprep.subr.bf16.mxu0 %v3406_v34 }
  0x22   : > { %v341_v50 = vld [vmem:[#allocation2 + $0x10] sm:$0xf]  ;;  %v3627_v52 = vld [vmem:[#allocation2 + $0x1c] sm:$0xf] }
  0x23   : > { %3101 = vmatpush3.bf16.msra.mxu1 %v3405_v29  ;;  %v3625_v51 = vld [vmem:[#allocation2 + $0x10] sm:$0xf]  ;;  %v376_v55 = vshrl.u32 %v341_v50, 16  ;;  %v2680_v56 = vcombine.low %v3619_v46, %v341_v50  ;;  %v3632_v57 = vld [vmem:[#allocation2 + $0x1c] sm:$0xf]  ;;  %v1080_v60 = vshrl.u32 %v3627_v52, 16  ;;  %v311_v46 = vadd.f32 %v3587_v17, %v296_v35 }
  0x24   : > { %3197 = vmatpush3.bf16.msra.mxu0 %v3406_v34  ;;  %3110 = vmatprep.subr.bf16.mxu1 %v3408_v39  ;;  %v1067_v59 = vshrl.u32 %v3625_v51, 16  ;;  %v2784_v61 = vcombine.low %v3625_v51, %v3627_v52  ;;  %v3638_v62 = vld [vmem:[#allocation2 + $0x28] sm:$0xf]  ;;  %v389_v63 = vshrl.u32 %v3632_v57, 16  ;;  %v379_v3 = vshll.u32 %v341_v50, 16  ;;  %v3419_v17 = vld [vmem:[%s4160_s3 + $0x20] sm:$0xff]  }
  0x25   : > { %3206 = vmatprep.subr.bf16.mxu0 %v3616_v42  ;;  %3102 = vmatprep.mubr.bf16.mxu1 %v2680_v56  ;;  %v402_v4 = vshrl.u32 %v3638_v62, 16  ;;  %v2681_v5 = vcombine.low %v3632_v57, %v3638_v62  ;;  %v3645_v6 = vld [vmem:[#allocation2 + $0x28] sm:$0xf]  ;;  %v378_v9 = vrot.slane %v376_v55, 7  ;;  %v1070_v10 = vshll.u32 %v3625_v51, 16 }
  0x26   : > { %3198 = vmatprep.mubr.bf16.mxu0 %v2784_v61  ;;  %v1083_v11 = vshll.u32 %v3627_v52, 16  ;;  %v3653_v12 = vld [vmem:[#allocation2 + $0x34] sm:$0xf]  ;;  %v1093_v14 = vshrl.u32 %v3645_v6, 16  ;;  %v3659_v16 = vrot.slane %v1067_v59, 7  ;;  %v3661_v18 = vrot.slane %v1080_v60, 7 }
  0x27   : > { %v392_v19 = vshll.u32 %v3632_v57, 16  ;;  %3103 = vmatmul.mubr.bf16.vlgmr.msra.gmra.mrb[0].mxu1 %v2681_v5  ;;  %v1106_v20 = vshrl.u32 %v3653_v12, 16  ;;  %v3668_v23 = vrot.slane %v389_v63, 7  ;;  %v405_v24 = vshll.u32 %v3638_v62, 16  ;;  %v3678_v30 = vld [vmem:[#allocation2 + $0x34] sm:$0xf] }
  0x28   : > { %3111 = vmatpush3.bf16.msra.mxu1 %v3408_v39  ;;  %v2785_v25 = vcombine.low %v3645_v6, %v3653_v12  ;;  %v3673_v26 = vrot.slane %v402_v4, 7  ;;  %v3675_v27 = vrot.slane %v1093_v14, 7  ;;  %v1096_v28 = vshll.u32 %v3645_v6, 16  ;;  %v1481_v41 = vld [vmem:[#allocation2 + $0x10] sm:$0xf] }
  0x29   : > { %3112 = vmatprep.subr.bf16.mxu1 %v3413_v7  ;;  %v317_v29 = vmax.f32 %v309_v0, 0.0  ;;  %v3680_v31 = vrot.slane %v1106_v20, 7  ;;  %v1109_v32 = vshll.u32 %v3653_v12, 16  ;;  %v318_v34 = vmax.f32 %v310_v8, 0.0  ;;  %v1483_v48 = vld [vmem:[#allocation2 + $0x1c] sm:$0xf] }
  0x2a   : > { %3199 = vmatmul.mubr.bf16.vlgmr.msra.gmra.mrb[0].mxu0 %v2785_v25  ;;  %v3689_v38 = vor.u32 %v379_v3, %v378_v9  ;;  %v415_v44 = vshrl.u32 %v3678_v30, 16  ;;  %v371_v50 = vshrl.u32 %v340_v36, 16  ;;  %v319_v54 = vmax.f32 %v311_v46, 0.0  ;;  %v3705_v60 = vld [vmem:[#allocation2 + $0x20] sm:$0x1]  ;;  %v3452_v6 = vld [vmem:[%s4160_s3 + $0x1d0] sm:$0xff]  }
  0x2b   : > { %3207 = vmatpush3.bf16.msra.mxu0 %v3616_v42  ;;  %v325_v39 = vpack.c.bf16 %v317_v29, %v317_v29  ;;  %v326_v45 = vpack.c.bf16 %v318_v34, %v318_v34  ;;  %v418_v42 = vshll.u32 %v3678_v30, 16  ;;  %v1498_v55 = vshrl.u32 %v1481_v41, 16  ;;  %v3712_v4 = vld [vmem:[#allocation2 + $0x18] sm:$0x8]  ;;  %v3720_v8 = vld [vmem:[#allocation2 + $0x24] sm:$0x8] }
  0x2c   : > { %3208 = vmatprep.subr.bf16.mxu0 %v3414_v15  ;;  %3113 = vmatpush3.bf16.msra.mxu1 %v3413_v7  ;;  %v1501_v56 = vshll.u32 %v1481_v41, 16  ;;  %v3703_v59 = vrot.slane %v358_v47, 11  ;;  %v1507_v61 = vshll.u32 %v1482_v43, 16  ;;  %v1512_v63 = vshrl.u32 %v1483_v48, 16  ;;  %v3722_v9 = vld [vmem:[#allocation2 + $0x28] sm:$0xf] }
  0x2d   : > { %3114 = vmatprep.subr.bf16.mxu1 %v3415_v21  ;;  %334 = vst [vmem:[#allocation2 + $0x40] sm:$0xf] %v325_v39  ;;  %335 = vst [vmem:[#allocation2 + $0x4c] sm:$0xf] %v326_v45  ;;  %v327_v0 = vpack.c.bf16 %v319_v54, %v319_v54  ;;  %v3710_v1 = vrot.slane %v371_v50, 11  ;;  %v1500_v2 = vrot.slane %v1498_v55, 4  ;;  %v328_v5 = vpack.c.bf16 %v320_v58, %v320_v58 }
  0x2e   : > { %v1503_v3 = vrot.slane %v1501_v56, 5  ;;  %v3727_v14 = vor.u32 %v392_v19, %v3668_v23  ;;  %v3732_v20 = vrot.slane %v415_v44, 7  ;;  %v1515_v22 = vshll.u32 %v1483_v48, 16  ;;  %v3424_v55 = vld [vmem:[%s4160_s3 + $0x30] sm:$0xff]  }
  0x2f   : > { %3209 = vmatpush3.bf16.msra.mxu0 %v3414_v15  ;;  %v3420_v15 = vld [vmem:[%s4160_s3 + $0x160] sm:$0xff]   ;;  %336 = vst [vmem:[#allocation2 + $0x58] sm:$0xf] %v327_v0  ;;  %337 = vst [vmem:[#allocation2 + $0x64] sm:$0xf] %v328_v5  ;;  %v3734_v25 = vrot.slane %v1507_v61, 5  ;;  %v382_v35 = vsel %vm3716_vm3, %v3710_v1, %v3689_v38  ;;  %v3988_v52 = vor.u32 %v1109_v32, %v3680_v31 }
  0x30   : > { %3210 = vmatprep.subr.bf16.mxu0 %v3416_v33  ;;  %3115 = vmatpush3.bf16.msra.mxu1 %v3415_v21  ;;  %v1504_v21 = vor.u32 %v1503_v3, %v1500_v2  ;;  %v3736_v29 = vrot.slane %v1512_v63, 4  ;;  %v1521_v34 = vshll.u32 %v3705_v60, 16  ;;  %v384_v57 = vshrl.u32 %v3712_v4, 16  ;;  %v3422_v38 = vld [vmem:[%s4160_s3 + $0x168] sm:$0xff]   ;;  %v3426_v4 = vld [vmem:[%s4160_s3 + $0x170] sm:$0xff]  }
  0x31   : > { %3116 = vmatprep.subr.bf16.mxu1 %v3417_v49  ;;  %v1517_v36 = vrot.slane %v1515_v22, 5  ;;  %v397_v39 = vshrl.u32 %v3720_v8, 16  ;;  %v1526_v13 = vshrl.u32 %v3722_v9, 16  ;;  %v1529_v50 = vshll.u32 %v3722_v9, 16 }
  0x32   : > { %v3762_v45 = vrot.slane %v1504_v21, 4  ;;  %v3790_v60 = vor.u32 %v405_v24, %v3673_v26  ;;  %v1486_v26 = vld [vmem:[#allocation2 + $0x2c] sm:$0x1]  ;;  %v1523_v22 = vrot.slane %v1521_v34, 5 }
  0x33   : > { %3211 = vmatpush3.bf16.msra.mxu0 %v3416_v33  ;;  %v369_v33 = vsel %vm3716_vm3, %v3703_v59, %v3687_v37  ;;  %v1518_v63 = vor.u32 %v1517_v36, %v3736_v29  ;;  %v1488_v29 = vld [vmem:[#allocation2 + $0x38] sm:$0x1] }
  0x34   : > { %3212 = vmatprep.subr.bf16.mxu0 %v3418_v53  ;;  %3117 = vmatpush3.bf16.msra.mxu1 %v3417_v49  ;;  %v3740_v19 = vld [vmem:[#allocation2 + $0x40] sm:$0xf]  ;;  %v3759_v44 = vld [vmem:[#allocation2 + $0x4c] sm:$0xf]  ;;  %v2692_v62 = vcombine.low %v369_v33, %v382_v35  ;;  %v1510_v24 = vsel %vm3774_vm5, %v3762_v45, %v3734_v25  ;;  %v3429_v36 = vld [vmem:[%s4160_s3 + $0x38] sm:$0xff]  }
  0x35   : > { %v3742_v23 = vld [vmem:[#allocation2 + $0x40] sm:$0xf]  ;;  %3118 = vmatprep.subr.bf16.mxu1 %v3419_v17  ;;  %v428_v41 = vshrl.u32 %v3740_v19, 16  ;;  %v2682_v43 = vcombine.low %v3678_v30, %v3740_v19  ;;  %v1132_v46 = vshrl.u32 %v3759_v44, 16  ;;  %v3770_v48 = vld [vmem:[#allocation2 + $0x4c] sm:$0xf] }
  0x36   : > { %v1119_v37 = vshrl.u32 %v3742_v23, 16  ;;  %v2786_v47 = vcombine.low %v3742_v23, %v3759_v44  ;;  %v431_v54 = vshll.u32 %v3740_v19, 16  ;;  %v1122_v56 = vshll.u32 %v3742_v23, 16  ;;  %v3799_v1 = vld [vmem:[#allocation2 + $0x58] sm:$0xf] }
  0x37   : > { %3213 = vmatpush3.bf16.msra.mxu0 %v3418_v53  ;;  %3106 = vmatprep.mubr.bf16.mxu1 %v2682_v43  ;;  %v441_v59 = vshrl.u32 %v3770_v48, 16  ;;  %v3792_v53 = vrot.slane %v428_v41, 7  ;;  %v3797_v0 = vrot.slane %v1132_v46, 7  ;;  %v444_v2 = vshll.u32 %v3770_v48, 16  ;;  %v3802_v3 = vld [vmem:[#allocation2 + $0x58] sm:$0xf] }
  0x38   : > { %3214 = vmatprep.subr.bf16.mxu0 %v3420_v15  ;;  %3119 = vmatpush3.bf16.msra.mxu1 %v3419_v17  ;;  %v3794_v61 = vrot.slane %v1119_v37, 7  ;;  %v1487_v17 = vld [vmem:[#allocation2 + $0x34] sm:$0xf]  ;;  %v454_v8 = vshrl.u32 %v3799_v1, 16  ;;  %v2683_v9 = vcombine.low %v3770_v48, %v3799_v1  ;;  %v3816_v21 = vld [vmem:[#allocation2 + $0x64] sm:$0xf] }
  0x39   : > { %3120 = vmatprep.subr.bf16.mxu1 %v3421_v40  ;;  %3202 = vmatprep.mubr.bf16.mxu0 %v2786_v47  ;;  %v3811_v5 = vrot.slane %v441_v59, 7  ;;  %v457_v25 = vshll.u32 %v3799_v1, 16  ;;  %v1145_v33 = vshrl.u32 %v3802_v3, 16  ;;  %v2787_v35 = vcombine.low %v3802_v3, %v3816_v21  ;;  %v3453_v23 = vld [vmem:[%s4160_s3 + $0xd8] sm:$0xff]  }
  0x3a   : > { %v2658_v41 = vrot.slane %v384_v57, 11  ;;  %v1158_v34 = vshrl.u32 %v3816_v21, 16  ;;  %v1519_v37 = vrot.slane %v1518_v63, 4  ;;  %v3828_v45 = vrot.slane %v454_v8, 7  ;;  %3107 = vmatmul.mubr.bf16.gmra.mrb[4].mxu1 %v2683_v9  ;;  %v3430_v63 = vld [vmem:[%s4160_s3 + $0x178] sm:$0xff]  }
  0x3b   : > { %3215 = vmatpush3.bf16.msra.mxu0 %v3420_v15  ;;  %v2659_v46 = vrot.slane %v397_v39, 11  ;;  %v1528_v47 = vrot.slane %v1526_v13, 4  ;;  %v1531_v59 = vrot.slane %v1529_v50, 5  ;;  %3126 = vmatprep.mubr.bf16.mxu1 %v2692_v62  ;;  %v1540_v58 = vshrl.u32 %v1487_v17, 16  ;;  %v3431_v62 = vld [vmem:[%s4160_s3 + $0x80] sm:$0xff]  }
  0x3c   : > { %3216 = vmatprep.subr.bf16.mxu0 %v3422_v38  ;;  %3121 = vmatpush3.bf16.msra.mxu1 %v3421_v40  ;;  %v1524_v57 = vsel %vm3774_vm5, %v1519_v37, %v1523_v22  ;;  %v1535_v40 = vshll.u32 %v1486_v26, 16  ;;  %v1543_v43 = vshll.u32 %v1487_v17, 16  ;;  %v395_v39 = vsel %vm3716_vm3, %v2658_v41, %v3727_v14  ;;  %v3432_v14 = vld [vmem:[%s4160_s3 + $0x180] sm:$0xff]   ;;  %v348_v41 = vld [vmem:[#allocation2 + $0x3c] sm:$0x8] }
  0x3d   : > { %3122 = vmatprep.subr.bf16.mxu1 %v3424_v55  ;;  %3203 = vmatmul.mubr.bf16.gmra.mrb[4].mxu0 %v2787_v35  ;;  %v2812_v15 = vcombine.low %v1510_v24, %v1524_v57  ;;  %v1532_v13 = vor.u32 %v1531_v59, %v1528_v47  ;;  %v1549_v50 = vshll.u32 %v1488_v29, 16  ;;  %v1542_v17 = vrot.slane %v1540_v58, 4  ;;  %v3433_v29 = vld [vmem:[%s4160_s3 + $0x88] sm:$0xff]   ;;  %v346_v35 = vld [vmem:[#allocation2 + $0x30] sm:$0x8] }
  0x3e   : > { %v1537_v26 = vrot.slane %v1535_v40, 5  ;;  %v1545_v8 = vrot.slane %v1543_v43, 5  ;;  %v410_v43 = vshrl.u32 %v346_v35, 16  ;;  %v3855_v37 = vrot.slane %v1145_v33, 7  ;;  %v1489_v47 = vld [vmem:[#allocation2 + $0x40] sm:$0xf] }
  0x3f   : > { %3217 = vmatpush3.bf16.msra.mxu0 %v3422_v38  ;;  %v408_v38 = vsel %vm3716_vm3, %v2659_v46, %v3790_v60  ;;  %3222 = vmatprep.mubr.bf16.mxu0 %v2812_v15  ;;  %v1533_v24 = vrot.slane %v1532_v13, 4  ;;  %v1551_v9 = vrot.slane %v1549_v50, 5  ;;  %v420_v15 = vor.u32 %v418_v42, %v3732_v20  ;;  %v1490_v57 = vld [vmem:[#allocation2 + $0x44] sm:$0x1]  ;;  %v1491_v40 = vld [vmem:[#allocation2 + $0x4c] sm:$0xf] }
  0x40   : > { %3218 = vmatprep.subr.bf16.mxu0 %v3426_v4  ;;  %3123 = vmatpush3.bf16.msra.mxu1 %v3424_v55  ;;  %v1546_v55 = vor.u32 %v1545_v8, %v1542_v17  ;;  %v2693_v22 = vcombine.low %v395_v39, %v408_v38  ;;  %v433_v46 = vor.u32 %v431_v54, %v3792_v53  ;;  %v2660_v59 = vrot.slane %v410_v43, 11  ;;  %v1492_v33 = vld [vmem:[#allocation2 + $0x50] sm:$0x1]  ;;  %v3434_v54 = vld [vmem:[%s4160_s3 + $0x188] sm:$0xff]  }
  0x41   : > { %3124 = vmatprep.subr.bf16.mxu1 %v3429_v36  ;;  %v1538_v58 = vsel %vm3774_vm5, %v1533_v24, %v1537_v26  ;;  %v1554_v39 = vshrl.u32 %v1489_v47, 16  ;;  %v446_v30 = vor.u32 %v444_v2, %v3811_v5  ;;  %v1557_v13 = vshll.u32 %v1489_v47, 16  ;;  %v3435_v2 = vld [vmem:[%s4160_s3 + $0x90] sm:$0xff]   ;;  %v1494_v47 = vld [vmem:[#allocation2 + $0x5c] sm:$0x1] }
  0x42   : > { %v1547_v60 = vrot.slane %v1546_v55, 4  ;;  %v1563_v19 = vshll.u32 %v1490_v57, 16  ;;  %v421_v53 = vsel %vm3716_vm3, %v2660_v59, %v420_v15  ;;  %v1568_v38 = vshrl.u32 %v1491_v40, 16  ;;  %v3436_v17 = vld [vmem:[%s4160_s3 + $0x190] sm:$0xff]   ;;  %v350_v55 = vld [vmem:[#allocation2 + $0x48] sm:$0x8] }
  0x43   : > { %3219 = vmatpush3.bf16.msra.mxu0 %v3426_v4  ;;  %v423_v4 = vshrl.u32 %v348_v41, 16  ;;  %v1556_v50 = vrot.slane %v1554_v39, 4  ;;  %v1571_v48 = vshll.u32 %v1491_v40, 16  ;;  %v1577_v26 = vshll.u32 %v1492_v33, 16  ;;  %v1496_v59 = vld [vmem:[#allocation2 + $0x68] sm:$0x1] }
  0x44   : > { %3220 = vmatprep.subr.bf16.mxu0 %v3430_v63  ;;  %3125 = vmatpush3.bf16.msra.mxu1 %v3429_v36  ;;  %v1552_v36 = vsel %vm3774_vm5, %v1547_v60, %v1551_v9  ;;  %v1570_v24 = vrot.slane %v1568_v38, 4  ;;  %v459_v35 = vor.u32 %v457_v25, %v3828_v45  ;;  %v436_v43 = vshrl.u32 %v350_v55, 16  ;;  %v763_v55 = vld [vmem:[#allocation2 + $0x14] sm:$0x1] }
  0x45   : > { %3134 = vmatprep.subr.bf16.mxu1 %v3431_v62  ;;  %v2813_v42 = vcombine.low %v1538_v58, %v1552_v36  ;;  %v2661_v20 = vrot.slane %v423_v4, 11  ;;  %v1573_v9 = vrot.slane %v1571_v48, 5  ;;  %v3437_v58 = vld [vmem:[%s4160_s3 + $0x98] sm:$0xff]   ;;  %v1579_v41 = vrot.slane %v1577_v26, 5  ;;  %v1495_v36 = vld [vmem:[#allocation2 + $0x64] sm:$0xf] }
  0x46   : > { %v1493_v4 = vld [vmem:[#allocation2 + $0x58] sm:$0xf]  ;;  %v2662_v25 = vrot.slane %v436_v43, 11  ;;  %v1591_v39 = vshll.u32 %v1494_v47, 16  ;;  %v760_v48 = vld [vmem:[#allocation2 + $0x4] sm:$0xf] }
  0x47   : > { %3221 = vmatpush3.bf16.msra.mxu0 %v3430_v63  ;;  %3127 = vmatmul.mubr.bf16.vlgmr.msra.gmra.mrb[0].mxu1 %v2693_v22  ;;  %v434_v5 = vsel %vm3716_vm3, %v2661_v20, %v433_v46  ;;  %v1559_v63 = vrot.slane %v1557_v13, 5  ;;  %v352_v22 = vld [vmem:[#allocation2 + $0x54] sm:$0x8]  ;;  %v1574_v46 = vor.u32 %v1573_v9, %v1570_v24  ;;  %v1585_v40 = vshll.u32 %v1493_v4, 16  ;;  %v3438_v20 = vld [vmem:[%s4160_s3 + $0x198] sm:$0xff]  }
  0x48   : > { %3230 = vmatprep.subr.bf16.mxu0 %v3432_v14  ;;  %3135 = vmatpush3.bf16.msra.mxu1 %v3431_v62  ;;  %v1565_v62 = vrot.slane %v1563_v19, 5  ;;  %v2694_v8 = vcombine.low %v421_v53, %v434_v5  ;;  %v449_v15 = vshrl.u32 %v352_v22, 16  ;;  %v447_v33 = vsel %vm3716_vm3, %v2662_v25, %v446_v30  ;;  %v761_v5 = vld [vmem:[#allocation2 + $0x8] sm:$0x1]  ;;  %v762_v24 = vld [vmem:[#allocation2 + $0x10] sm:$0xf] }
  0x49   : > { %3136 = vmatprep.subr.bf16.mxu1 %v3433_v29  ;;  %v1560_v60 = vor.u32 %v1559_v63, %v1556_v50  ;;  %v1575_v57 = vrot.slane %v1574_v46, 4  ;;  %v1587_v50 = vrot.slane %v1585_v40, 5  ;;  %v1593_v38 = vrot.slane %v1591_v39, 5  ;;  %v3439_v63 = vld [vmem:[%s4160_s3 + $0xa0] sm:$0xff]  }
  0x4a   : > { %3223 = vmatmul.mubr.bf16.vlgmr.msra.gmra.mrb[0].mxu0 %v2813_v42  ;;  %3130 = vmatprep.mubr.bf16.mxu1 %v2694_v8  ;;  %v2663_v45 = vrot.slane %v449_v15, 11  ;;  %v1596_v42 = vshrl.u32 %v1495_v36, 16  ;;  %v1599_v26 = vshll.u32 %v1495_v36, 16  ;;  %v1605_v8 = vshll.u32 %v1496_v59, 16 }
  0x4b   : > { %3231 = vmatpush3.bf16.msra.mxu0 %v3432_v14  ;;  %v1561_v1 = vrot.slane %v1560_v60, 4  ;;  %v1582_v14 = vshrl.u32 %v1493_v4, 16  ;;  %v1580_v53 = vsel %vm3774_vm5, %v1575_v57, %v1579_v41  ;;  %v780_v22 = vshrl.u32 %v760_v48, 16  ;;  %v1764_v57 = vld [vmem:[#allocation2 + $0x18] sm:$0x8] }
  0x4c   : > { %3232 = vmatprep.subr.bf16.mxu0 %v3434_v54  ;;  %3137 = vmatpush3.bf16.msra.mxu1 %v3433_v29  ;;  %v460_v13 = vsel %vm3716_vm3, %v2663_v45, %v459_v35  ;;  %v783_v35 = vshll.u32 %v760_v48, 16  ;;  %v789_v60 = vshll.u32 %v761_v5, 16  ;;  %v1601_v41 = vrot.slane %v1599_v26, 5 }
  0x4d   : > { %3138 = vmatprep.subr.bf16.mxu1 %v3435_v2  ;;  %v1566_v29 = vsel %vm3774_vm5, %v1561_v1, %v1565_v62  ;;  %v1584_v19 = vrot.slane %v1582_v14, 4  ;;  %v1598_v62 = vrot.slane %v1596_v42, 4  ;;  %v1607_v43 = vrot.slane %v1605_v8, 5  ;;  %v3441_v1 = vld [vmem:[%s4160_s3 + $0xa8] sm:$0xff]   ;;  %v3906_v42 = vld [vmem:[#allocation2 + $0x1c] sm:$0xf] }
  0x4e   : > { %v2814_v30 = vcombine.low %v1566_v29, %v1580_v53  ;;  %v794_v15 = vshrl.u32 %v762_v24, 16  ;;  %v797_v4 = vshll.u32 %v762_v24, 16  ;;  %v782_v47 = vrot.slane %v780_v22, 4  ;;  %v3908_v29 = vld [vmem:[#allocation2 + $0x28] sm:$0xf] }
  0x4f   : > { %3233 = vmatpush3.bf16.msra.mxu0 %v3434_v54  ;;  %v2695_v54 = vcombine.low %v447_v33, %v460_v13  ;;  %v1588_v9 = vor.u32 %v1587_v50, %v1584_v19  ;;  %v785_v36 = vrot.slane %v783_v35, 5  ;;  %v791_v59 = vrot.slane %v789_v60, 5  ;;  %v3442_v33 = vld [vmem:[%s4160_s3 + $0x1a8] sm:$0xff]   ;;  %v764_v24 = vld [vmem:[#allocation2 + $0x1c] sm:$0xf] }
  0x50   : > { %3234 = vmatprep.subr.bf16.mxu0 %v3436_v17  ;;  %3139 = vmatpush3.bf16.msra.mxu1 %v3435_v2  ;;  %v3440_v2 = vld [vmem:[%s4160_s3 + $0x1a0] sm:$0xff]   ;;  %v1602_v25 = vor.u32 %v1601_v41, %v1598_v62  ;;  %v796_v45 = vrot.slane %v794_v15, 4  ;;  %v799_v14 = vrot.slane %v797_v4, 5  ;;  %v1789_v48 = vshll.u32 %v3906_v42, 16  ;;  %v766_v60 = vld [vmem:[#allocation2 + $0x28] sm:$0xf] }
  0x51   : > { %3140 = vmatprep.subr.bf16.mxu1 %v3437_v58  ;;  %3131 = vmatmul.mubr.bf16.gmra.mrb[4].mxu1 %v2695_v54  ;;  %v1589_v46 = vrot.slane %v1588_v9, 4  ;;  %v786_v39 = vor.u32 %v785_v36, %v782_v47  ;;  %v1781_v54 = vshrl.u32 %v1764_v57, 16  ;;  %v1799_v8 = vshrl.u32 %v3908_v29, 16  ;;  %v765_v35 = vld [vmem:[#allocation2 + $0x20] sm:$0x1]  ;;  %v3444_v41 = vld [vmem:[%s4160_s3 + $0x1b0] sm:$0xff]  }
  0x52   : > { %3226 = vmatprep.mubr.bf16.mxu0 %v2814_v30  ;;  %v1603_v13 = vrot.slane %v1602_v25, 4  ;;  %v800_v19 = vor.u32 %v799_v14, %v796_v45  ;;  %v1802_v4 = vshll.u32 %v3908_v29, 16  ;;  %v808_v47 = vshrl.u32 %v764_v24, 16  ;;  %v1768_v14 = vld [vmem:[#allocation2 + $0x30] sm:$0x8] }
  0x53   : > { %3235 = vmatpush3.bf16.msra.mxu0 %v3436_v17  ;;  %v803_v17 = vshll.u32 %v763_v55, 16  ;;  %v1594_v40 = vsel %vm3774_vm5, %v1589_v46, %v1593_v38  ;;  %v787_v50 = vrot.slane %v786_v39, 4  ;;  %v1786_v38 = vshrl.u32 %v3906_v42, 16  ;;  %v767_v46 = vld [vmem:[#allocation2 + $0x2c] sm:$0x1] }
  0x54   : > { %3236 = vmatprep.subr.bf16.mxu0 %v3438_v20  ;;  %3141 = vmatpush3.bf16.msra.mxu1 %v3437_v58  ;;  %v1766_v58 = vld [vmem:[#allocation2 + $0x24] sm:$0x8]  ;;  %v1608_v30 = vsel %vm3774_vm5, %v1603_v13, %v1607_v43  ;;  %v801_v62 = vrot.slane %v800_v19, 4  ;;  %v2824_v26 = vrot.slane %v1781_v54, 11  ;;  %v1801_v15 = vrot.slane %v1799_v8, 7 }
  0x55   : > { %3142 = vmatprep.subr.bf16.mxu1 %v3439_v63  ;;  %v805_v53 = vrot.slane %v803_v17, 5  ;;  %v1794_v5 = vshrl.u32 %v1766_v58, 16  ;;  %v792_v9 = vsel %vm3774_vm5, %v787_v50, %v791_v59  ;;  %v1788_v55 = vrot.slane %v1786_v38, 7  ;;  %v3445_v17 = vld [vmem:[%s4160_s3 + $0xb8] sm:$0xff]   ;;  %v3936_v50 = vld [vmem:[#allocation2 + $0x40] sm:$0xf] }
  0x56   : > { %v811_v25 = vshll.u32 %v764_v24, 16  ;;  %v817_v45 = vshll.u32 %v765_v35, 16  ;;  %v1804_v57 = vor.u32 %v1802_v4, %v1801_v15  ;;  %v822_v39 = vshrl.u32 %v766_v60, 16  ;;  %v1770_v13 = vld [vmem:[#allocation2 + $0x3c] sm:$0x8]  ;;  %v3448_v4 = vld [vmem:[%s4160_s3 + $0x1c0] sm:$0xff]  }
  0x57   : > { %3237 = vmatpush3.bf16.msra.mxu0 %v3438_v20  ;;  %v3443_v20 = vld [vmem:[%s4160_s3 + $0xb0] sm:$0xff]   ;;  %v2825_v22 = vrot.slane %v1794_v5, 11  ;;  %v806_v43 = vsel %vm3774_vm5, %v801_v62, %v805_v53  ;;  %v1791_v59 = vor.u32 %v1789_v48, %v1788_v55  ;;  %v825_v58 = vshll.u32 %v766_v60, 16  ;;  %v3446_v38 = vld [vmem:[%s4160_s3 + $0x1b8] sm:$0xff]  }
  0x58   : > { %3238 = vmatprep.subr.bf16.mxu0 %v3440_v2  ;;  %3143 = vmatpush3.bf16.msra.mxu1 %v3439_v63  ;;  %v2815_v63 = vcombine.low %v1594_v40, %v1608_v30  ;;  %v2720_v36 = vcombine.low %v792_v9, %v806_v43  ;;  %v810_v40 = vrot.slane %v808_v47, 4  ;;  %v813_v19 = vrot.slane %v811_v25, 5 }
  0x59   : > { %3144 = vmatprep.subr.bf16.mxu1 %v3441_v1  ;;  %v819_v53 = vrot.slane %v817_v45, 5  ;;  %v831_v54 = vshll.u32 %v767_v46, 16  ;;  %v1805_v48 = vsel %vm3716_vm3, %v2825_v22, %v1804_v57  ;;  %v824_v5 = vrot.slane %v822_v39, 4  ;;  %v3449_v45 = vld [vmem:[%s4160_s3 + $0xc8] sm:$0xff]  }
  0x5a   : > { %3227 = vmatmul.mubr.bf16.gmra.mrb[4].mxu0 %v2815_v63  ;;  %3150 = vmatprep.mubr.bf16.mxu1 %v2720_v36  ;;  %v827_v30 = vrot.slane %v825_v58, 5  ;;  %v1807_v62 = vshrl.u32 %v1768_v14, 16  ;;  %v1820_v22 = vshrl.u32 %v1770_v13, 16  ;;  %v1828_v15 = vshll.u32 %v3936_v50, 16  ;;  %v3451_v58 = vld [vmem:[%s4160_s3 + $0xd0] sm:$0xff]  }
  0x5b   : > { %3239 = vmatpush3.bf16.msra.mxu0 %v3440_v2  ;;  %v3929_v2 = vld [vmem:[#allocation2 + $0x34] sm:$0xf]  ;;  %v833_v24 = vrot.slane %v831_v54, 5 }
  0x5c   : > { %3240 = vmatprep.subr.bf16.mxu0 %v3442_v33  ;;  %3145 = vmatpush3.bf16.msra.mxu1 %v3441_v1  ;;  %v1792_v1 = vsel %vm3716_vm3, %v2824_v26, %v1791_v59  ;;  %v814_v26 = vor.u32 %v813_v19, %v810_v40  ;;  %v1812_v63 = vshrl.u32 %v3929_v2, 16  ;;  %v828_v9 = vor.u32 %v827_v30, %v824_v5  ;;  %v768_v13 = vld [vmem:[#allocation2 + $0x34] sm:$0xf]  ;;  %v771_v5 = vld [vmem:[#allocation2 + $0x44] sm:$0x1] }
  0x5d   : > { %3146 = vmatprep.subr.bf16.mxu1 %v3443_v20  ;;  %v2848_v8 = vcombine.low %v1792_v1, %v1805_v48  ;;  %v2826_v55 = vrot.slane %v1807_v62, 11  ;;  %v1815_v35 = vshll.u32 %v3929_v2, 16  ;;  %v2827_v59 = vrot.slane %v1820_v22, 11  ;;  %v770_v48 = vld [vmem:[#allocation2 + $0x40] sm:$0xf] }
  0x5e   : > { %v815_v60 = vrot.slane %v814_v26, 4  ;;  %v1814_v43 = vrot.slane %v1812_v63, 7  ;;  %v829_v46 = vrot.slane %v828_v9, 4  ;;  %v3973_v1 = vor.u32 %v1070_v10, %v3659_v16  ;;  %v1772_v62 = vld [vmem:[#allocation2 + $0x48] sm:$0x8] }
  0x5f   : > { %3241 = vmatpush3.bf16.msra.mxu0 %v3442_v33  ;;  %v3447_v33 = vld [vmem:[%s4160_s3 + $0xc0] sm:$0xff]   ;;  %3246 = vmatprep.mubr.bf16.mxu0 %v2848_v8  ;;  %v3978_v19 = vor.u32 %v1083_v11, %v3661_v18  ;;  %v836_v30 = vshrl.u32 %v768_v13, 16  ;;  %v839_v51 = vshll.u32 %v768_v13, 16  ;;  %v850_v16 = vshrl.u32 %v770_v48, 16 }
  0x60   : > { %3242 = vmatprep.subr.bf16.mxu0 %v3444_v41  ;;  %3147 = vmatpush3.bf16.msra.mxu1 %v3443_v20  ;;  %v1825_v20 = vshrl.u32 %v3936_v50, 16  ;;  %v820_v47 = vsel %vm3774_vm5, %v815_v60, %v819_v53  ;;  %v1817_v36 = vor.u32 %v1815_v35, %v1814_v43  ;;  %v3983_v53 = vor.u32 %v1096_v28, %v3675_v27  ;;  %v3993_v27 = vld [vmem:[#allocation2 + $0x4c] sm:$0xf]  ;;  %v1774_v28 = vld [vmem:[#allocation2 + $0x54] sm:$0x8] }
  0x61   : > { %3148 = vmatprep.subr.bf16.mxu1 %v3445_v17  ;;  %v853_v11 = vshll.u32 %v770_v48, 16  ;;  %v859_v18 = vshll.u32 %v771_v5, 16  ;;  %v3998_v8 = vor.u32 %v1122_v56, %v3794_v61  ;;  %v838_v26 = vrot.slane %v836_v30, 4  ;;  %v772_v35 = vld [vmem:[#allocation2 + $0x4c] sm:$0xf] }
  0x62   : > { %v1827_v25 = vrot.slane %v1825_v20, 7  ;;  %v1818_v57 = vsel %vm3716_vm3, %v2826_v55, %v1817_v36  ;;  %v841_v12 = vrot.slane %v839_v51, 5  ;;  %v852_v32 = vrot.slane %v850_v16, 4  ;;  %v773_v43 = vld [vmem:[#allocation2 + $0x50] sm:$0x1]  ;;  %v3454_v20 = vld [vmem:[%s4160_s3 + $0x1d8] sm:$0xff]  }
  0x63   : > { %3243 = vmatpush3.bf16.msra.mxu0 %v3444_v41  ;;  %v834_v41 = vsel %vm3774_vm5, %v829_v46, %v833_v24  ;;  %v4000_v24 = vld [vmem:[#allocation2 + $0x58] sm:$0xf]  ;;  %v855_v63 = vrot.slane %v853_v11, 5  ;;  %v1833_v9 = vshrl.u32 %v1772_v62, 16  ;;  %v1838_v55 = vshrl.u32 %v3993_v27, 16 }
  0x64   : > { %3244 = vmatprep.subr.bf16.mxu0 %v3446_v38  ;;  %3149 = vmatpush3.bf16.msra.mxu1 %v3445_v17  ;;  %v2721_v14 = vcombine.low %v820_v47, %v834_v41  ;;  %v1830_v40 = vor.u32 %v1828_v15, %v1827_v25  ;;  %v3450_v17 = vld [vmem:[%s4160_s3 + $0x1c8] sm:$0xff]   ;;  %v842_v56 = vor.u32 %v841_v12, %v838_v26  ;;  %v1841_v61 = vshll.u32 %v3993_v27, 16  ;;  %v774_v36 = vld [vmem:[#allocation2 + $0x58] sm:$0xf]  ;;  %v775_v41 = vld [vmem:[#allocation2 + $0x5c] sm:$0x1] }
  0x65   : > { %3158 = vmatprep.subr.bf16.mxu1 %v3447_v33  ;;  %v1846_v22 = vshrl.u32 %v1774_v28, 16  ;;  %v1851_v60 = vshrl.u32 %v4000_v24, 16  ;;  %v856_v15 = vor.u32 %v855_v63, %v852_v32  ;;  %v1840_v46 = vrot.slane %v1838_v55, 7  ;;  %v1776_v30 = vld [vmem:[#allocation2 + $0x60] sm:$0x8]  ;;  %v3457_v28 = vld [vmem:[%s4160_s3 + $0xe8] sm:$0xff]  }
  0x66   : > { %v1831_v39 = vsel %vm3716_vm3, %v2827_v59, %v1830_v40  ;;  %v1854_v47 = vshll.u32 %v4000_v24, 16  ;;  %v843_v59 = vrot.slane %v842_v56, 4  ;;  %v867_v13 = vshll.u32 %v772_v35, 16  ;;  %v4024_v11 = vld [vmem:[#allocation2 + $0x64] sm:$0xf] }
  0x67   : > { %3245 = vmatpush3.bf16.msra.mxu0 %v3446_v38  ;;  %3151 = vmatmul.mubr.bf16.vlgmr.msra.gmra.mrb[0].mxu1 %v2721_v14  ;;  %v2849_v54 = vcombine.low %v1818_v57, %v1831_v39  ;;  %v769_v38 = vld [vmem:[#allocation2 + $0x38] sm:$0x1]  ;;  %v2829_v25 = vrot.slane %v1846_v22, 11  ;;  %v864_v14 = vshrl.u32 %v772_v35, 16  ;;  %v3455_v57 = vld [vmem:[%s4160_s3 + $0xe0] sm:$0xff]   ;;  %v857_v40 = vrot.slane %v856_v15, 4 }
  0x68   : > { %3254 = vmatprep.subr.bf16.mxu0 %v3448_v4  ;;  %3159 = vmatpush3.bf16.msra.mxu1 %v3447_v33  ;;  %v845_v10 = vshll.u32 %v769_v38, 16  ;;  %v861_v33 = vrot.slane %v859_v18, 5  ;;  %v1843_v39 = vor.u32 %v1841_v61, %v1840_v46  ;;  %v878_v5 = vshrl.u32 %v774_v36, 16  ;;  %v1778_v18 = vld [vmem:[#allocation2 + $0x6c] sm:$0x8] }
  0x69   : > { %3160 = vmatprep.subr.bf16.mxu1 %v3449_v45  ;;  %v866_v48 = vrot.slane %v864_v14, 4  ;;  %v869_v16 = vrot.slane %v867_v13, 5  ;;  %v881_v32 = vshll.u32 %v774_v36, 16  ;;  %v4031_v63 = vld [vmem:[#allocation2 + $0x70] sm:$0xf]  ;;  %v887_v55 = vshll.u32 %v775_v41, 16 }
  0x6a   : > { %3247 = vmatmul.mubr.bf16.vlgmr.msra.gmra.mrb[0].mxu0 %v2849_v54  ;;  %v847_v31 = vrot.slane %v845_v10, 5  ;;  %v873_v54 = vshll.u32 %v773_v43, 16  ;;  %v862_v51 = vsel %vm3774_vm5, %v857_v40, %v861_v33  ;;  %v1859_v35 = vshrl.u32 %v1776_v30, 16  ;;  %v1045_v41 = vld [vmem:[#allocation2 + $0xc] sm:$0x8]  ;;  %v3459_v13 = vld [vmem:[%s4160_s3 + $0xf0] sm:$0xff]  }
  0x6b   : > { %3255 = vmatpush3.bf16.msra.mxu0 %v3448_v4  ;;  %v2828_v4 = vrot.slane %v1833_v9, 11  ;;  %v870_v9 = vor.u32 %v869_v16, %v866_v48  ;;  %v1864_v56 = vshrl.u32 %v4024_v11, 16  ;;  %v1867_v61 = vshll.u32 %v4024_v11, 16  ;;  %v1047_v14 = vld [vmem:[#allocation2 + $0x18] sm:$0x8] }
  0x6c   : > { %3256 = vmatprep.subr.bf16.mxu0 %v3450_v17  ;;  %3161 = vmatpush3.bf16.msra.mxu1 %v3449_v45  ;;  %v1853_v45 = vrot.slane %v1851_v60, 7  ;;  %v848_v38 = vsel %vm3774_vm5, %v843_v59, %v847_v31  ;;  %v875_v62 = vrot.slane %v873_v54, 5  ;;  %v880_v31 = vrot.slane %v878_v5, 4  ;;  %v3460_v5 = vld [vmem:[%s4160_s3 + $0x1f0] sm:$0xff]  }
  0x6d   : > { %3162 = vmatprep.subr.bf16.mxu1 %v3451_v58  ;;  %v1844_v10 = vsel %vm3716_vm3, %v2828_v4, %v1843_v39  ;;  %v2722_v26 = vcombine.low %v848_v38, %v862_v51  ;;  %v1872_v22 = vshrl.u32 %v1778_v18, 16  ;;  %v4037_v60 = vrot.slane %v1158_v34, 7  ;;  %v3458_v4 = vld [vmem:[%s4160_s3 + $0x1e8] sm:$0xff]  }
  0x6e   : > { %v871_v43 = vrot.slane %v870_v9, 4  ;;  %v889_v15 = vrot.slane %v887_v55, 5  ;;  %v1866_v36 = vrot.slane %v1864_v56, 7  ;;  %v1880_v59 = vshll.u32 %v4031_v63, 16  ;;  %v1057_v55 = vld [vmem:[#allocation2 + $0x54] sm:$0x8] }
  0x6f   : > { %3257 = vmatpush3.bf16.msra.mxu0 %v3450_v17  ;;  %v1856_v17 = vor.u32 %v1854_v47, %v1853_v45  ;;  %3154 = vmatprep.mubr.bf16.mxu1 %v2722_v26  ;;  %v2830_v47 = vrot.slane %v1859_v35, 11  ;;  %v1062_v38 = vshrl.u32 %v1045_v41, 16  ;;  %v2876_v30 = vcombine.low %v3906_v42, %v3908_v29 }
  0x70   : > { %3258 = vmatprep.subr.bf16.mxu0 %v3452_v6  ;;  %3163 = vmatpush3.bf16.msra.mxu1 %v3451_v58  ;;  %v3456_v58 = vld [vmem:[%s4160_s3 + $0x1e0] sm:$0xff]   ;;  %v876_v34 = vsel %vm3774_vm5, %v871_v43, %v875_v62  ;;  %v1869_v54 = vor.u32 %v1867_v61, %v1866_v36  ;;  %v4169_v51 = vshll.u32 %v3802_v3, 16  ;;  %v2877_v7 = vcombine.low %v3929_v2, %v3936_v50 }
  0x71   : > { %3164 = vmatprep.subr.bf16.mxu1 %v3453_v23  ;;  %v1857_v12 = vsel %vm3716_vm3, %v2829_v25, %v1856_v17  ;;  %v2831_v25 = vrot.slane %v1872_v22, 11  ;;  %v1049_v17 = vld [vmem:[#allocation2 + $0x24] sm:$0x8]  ;;  %v2732_v18 = vrot.slane %v1062_v38, 11  ;;  %v1059_v22 = vld [vmem:[#allocation2 + $0x60] sm:$0x8] }
  0x72   : > { %v2850_v33 = vcombine.low %v1844_v10, %v1857_v12  ;;  %v1150_v10 = vor.u32 %v4169_v51, %v3855_v37  ;;  %v1870_v62 = vsel %vm3716_vm3, %v2830_v47, %v1869_v54  ;;  %v3461_v37 = vld [vmem:[%s4160_s3 + $0xf8] sm:$0xff]  }
  0x73   : > { %3259 = vmatpush3.bf16.msra.mxu0 %v3452_v6  ;;  %v883_v6 = vrot.slane %v881_v32, 5  ;;  %v1053_v32 = vld [vmem:[#allocation2 + $0x3c] sm:$0x8] }
  0x74   : > { %3260 = vmatprep.subr.bf16.mxu0 %v3454_v20  ;;  %3165 = vmatpush3.bf16.msra.mxu1 %v3453_v23  ;;  %v1877_v23 = vshrl.u32 %v4031_v63, 16  ;;  %v1114_v9 = vshrl.u32 %v1053_v32, 16 }
  0x75   : > { %3166 = vmatprep.subr.bf16.mxu1 %v3455_v57  ;;  %3250 = vmatprep.mubr.bf16.mxu0 %v2850_v33  ;;  %v884_v46 = vor.u32 %v883_v6, %v880_v31  ;;  %v1055_v33 = vld [vmem:[#allocation2 + $0x48] sm:$0x8] }
  0x76   : > { %v1879_v45 = vrot.slane %v1877_v23, 7  ;;  %v1127_v61 = vshrl.u32 %v1055_v33, 16  ;;  %v2736_v43 = vrot.slane %v1114_v9, 11  ;;  %v4170_v23 = vshll.u32 %v3816_v21, 16 }
  0x77   : > { %3261 = vmatpush3.bf16.msra.mxu0 %v3454_v20  ;;  %v4168_v20 = vshll.u32 %v3759_v44, 16  ;;  %v885_v39 = vrot.slane %v884_v46, 4  ;;  %v1051_v44 = vld [vmem:[#allocation2 + $0x30] sm:$0x8] }
  0x78   : > { %3262 = vmatprep.subr.bf16.mxu0 %v3456_v58  ;;  %3167 = vmatpush3.bf16.msra.mxu1 %v3455_v57  ;;  %v1075_v57 = vshrl.u32 %v1047_v14, 16  ;;  %v1882_v48 = vor.u32 %v1880_v59, %v1879_v45  ;;  %v1101_v31 = vshrl.u32 %v1051_v44, 16  ;;  %v1163_v46 = vor.u32 %v4170_v23, %v4037_v60  ;;  %v2200_v14 = vld [vmem:[#allocation2 + $0x1c] sm:$0xf]  ;;  %v2209_v44 = vld [vmem:[#allocation2 + $0x50] sm:$0x1] }
  0x79   : > { %v1137_v40 = vor.u32 %v4168_v20, %v3797_v0  ;;  %3168 = vmatprep.subr.bf16.mxu1 %v3457_v28  ;;  %v1088_v0 = vshrl.u32 %v1049_v17, 16  ;;  %v890_v16 = vsel %vm3774_vm5, %v885_v39, %v889_v15  ;;  %v1140_v15 = vshrl.u32 %v1057_v55, 16  ;;  %v2201_v20 = vld [vmem:[#allocation2 + $0x20] sm:$0x1]  ;;  %v2202_v39 = vld [vmem:[#allocation2 + $0x28] sm:$0xf] }
  0x7a   : > { %v2733_v26 = vrot.slane %v1075_v57, 11  ;;  %v2723_v12 = vcombine.low %v876_v34, %v890_v16  ;;  %v1883_v42 = vsel %vm3716_vm3, %v2831_v25, %v1882_v48  ;;  %v2735_v56 = vrot.slane %v1101_v31, 11  ;;  %v3469_v31 = vld [vmem:[%s4160_s3 + $0x210] sm:$0xff]   ;;  %v2212_v23 = vld [vmem:[#allocation2 + $0x64] sm:$0xf] }
  0x7b   : > { %3263 = vmatpush3.bf16.msra.mxu0 %v3456_v58  ;;  %v2734_v29 = vrot.slane %v1088_v0, 11  ;;  %v2851_v3 = vcombine.low %v1870_v62, %v1883_v42  ;;  %v1073_v58 = vsel %vm3716_vm3, %v2732_v18, %v3973_v1  ;;  %v3462_v1 = vld [vmem:[%s4160_s3 + $0x1f8] sm:$0xff]   ;;  %v2737_v47 = vrot.slane %v1127_v61, 11 }
  0x7c   : > { %3264 = vmatprep.subr.bf16.mxu0 %v3458_v4  ;;  %3169 = vmatpush3.bf16.msra.mxu1 %v3457_v28  ;;  %v1086_v28 = vsel %vm3716_vm3, %v2733_v26, %v3978_v19  ;;  %v1153_v19 = vshrl.u32 %v1059_v22, 16  ;;  %v1125_v59 = vsel %vm3716_vm3, %v2736_v43, %v3998_v8  ;;  %v2738_v21 = vrot.slane %v1140_v15, 11  ;;  %v3466_v8 = vld [vmem:[%s4160_s3 + $0x208] sm:$0xff]   ;;  %v2210_v62 = vld [vmem:[#allocation2 + $0x58] sm:$0xf] }
  0x7d   : > { %3170 = vmatprep.subr.bf16.mxu1 %v3459_v13  ;;  %3155 = vmatmul.mubr.bf16.gmra.mrb[4].mxu1 %v2723_v12  ;;  %v2756_v35 = vcombine.low %v1073_v58, %v1086_v28  ;;  %v1099_v6 = vsel %vm3716_vm3, %v2734_v29, %v3983_v53  ;;  %v1112_v53 = vsel %vm3716_vm3, %v2735_v56, %v3988_v52  ;;  %v2220_v54 = vshll.u32 %v2200_v14, 16  ;;  %v2211_v12 = vld [vmem:[#allocation2 + $0x5c] sm:$0x1] }
  0x7e   : > { %3251 = vmatmul.mubr.bf16.gmra.mrb[4].mxu0 %v2851_v3  ;;  %v2757_v36 = vcombine.low %v1099_v6, %v1112_v53  ;;  %v2739_v60 = vrot.slane %v1153_v19, 11  ;;  %v1138_v34 = vsel %vm3716_vm3, %v2737_v47, %v1137_v40  ;;  %v1151_v25 = vsel %vm3716_vm3, %v2738_v21, %v1150_v10  ;;  %v2203_v40 = vld [vmem:[#allocation2 + $0x2c] sm:$0x1]  ;;  %v3470_v43 = vld [vmem:[%s4160_s3 + $0x218] sm:$0xff]   ;;  %v2214_v47 = vld [vmem:[#allocation2 + $0x70] sm:$0xf] }
  0x7f   : > { %3265 = vmatpush3.bf16.msra.mxu0 %v3458_v4  ;;  %v3465_v4 = vld [vmem:[%s4160_s3 + $0x200] sm:$0xff]   ;;  %3174 = vmatprep.mubr.bf16.mxu1 %v2756_v35  ;;  %v2758_v52 = vcombine.low %v1125_v59, %v1138_v34  ;;  %v2226_v38 = vshll.u32 %v2201_v20, 16  ;;  %v2231_v57 = vshrl.u32 %v2202_v39, 16  ;;  %v2878_v17 = vcombine.low %v3993_v27, %v4000_v24 }
  0x80   : > { %3266 = vmatprep.subr.bf16.mxu0 %v3460_v5  ;;  %3171 = vmatpush3.bf16.msra.mxu1 %v3459_v13  ;;  %v1164_v45 = vsel %vm3716_vm3, %v2739_v60, %v1163_v46  ;;  %v2217_v13 = vshrl.u32 %v2200_v14, 16  ;;  %v2234_v48 = vshll.u32 %v2202_v39, 16  ;;  %v2222_v51 = vrot.slane %v2220_v54, 5  ;;  %v3471_v60 = vld [vmem:[%s4160_s3 + $0x220] sm:$0xff]   ;;  %v2213_v54 = vld [vmem:[#allocation2 + $0x68] sm:$0x1] }
  0x81   : > { %3172 = vmatprep.subr.bf16.mxu1 %v3461_v37  ;;  %3270 = vmatprep.mubr.bf16.mxu0 %v2876_v30  ;;  %v4102_v41 = vcombine.low %v1151_v25, %v1164_v45  ;;  %v2208_v30 = vld [vmem:[#allocation2 + $0x4c] sm:$0xf]  ;;  %v2228_v10 = vrot.slane %v2226_v38, 5  ;;  %v2233_v16 = vrot.slane %v2231_v57, 4  ;;  %v2282_v24 = vshll.u32 %v2209_v44, 16 }
  0x82   : > { %v2219_v0 = vrot.slane %v2217_v13, 4  ;;  %v2236_v18 = vrot.slane %v2234_v48, 5  ;;  %v2273_v2 = vshrl.u32 %v2208_v30, 16  ;;  %v2276_v50 = vshll.u32 %v2208_v30, 16  ;;  %v3472_v13 = vld [vmem:[%s4160_s3 + $0x228] sm:$0xff]  }
  0x83   : > { %3267 = vmatpush3.bf16.msra.mxu0 %v3460_v5  ;;  %v2240_v5 = vshll.u32 %v2203_v40, 16  ;;  %v2287_v42 = vshrl.u32 %v2210_v62, 16  ;;  %v2290_v29 = vshll.u32 %v2210_v62, 16  ;;  %v2296_v58 = vshll.u32 %v2211_v12, 16  ;;  %v2215_v38 = vld [vmem:[#allocation2 + $0x74] sm:$0x1] }
  0x84   : > { %3268 = vmatprep.subr.bf16.mxu0 %v3462_v1  ;;  %3173 = vmatpush3.bf16.msra.mxu1 %v3461_v37  ;;  %v2223_v27 = vor.u32 %v2222_v51, %v2219_v0  ;;  %v2237_v32 = vor.u32 %v2236_v18, %v2233_v16  ;;  %v2275_v3 = vrot.slane %v2273_v2, 4  ;;  %v2278_v37 = vrot.slane %v2276_v50, 5  ;;  %v2205_v30 = vld [vmem:[#allocation2 + $0x38] sm:$0x1]  ;;  %v2207_v44 = vld [vmem:[#allocation2 + $0x44] sm:$0x1] }
  0x85   : > { %3302 = vmatprep.subr.bf16.mxu1 %v3465_v4  ;;  %v2242_v26 = vrot.slane %v2240_v5, 5  ;;  %v2289_v33 = vrot.slane %v2287_v42, 4  ;;  %v2292_v9 = vrot.slane %v2290_v29, 5  ;;  %v2284_v6 = vrot.slane %v2282_v24, 5  ;;  %v3473_v62 = vld [vmem:[%s4160_s3 + $0x230] sm:$0xff]   ;;  %v3474_v29 = vld [vmem:[%s4160_s3 + $0x238] sm:$0xff]  }
  0x86   : > { %v2224_v28 = vrot.slane %v2223_v27, 4  ;;  %v2238_v55 = vrot.slane %v2237_v32, 4  ;;  %v2279_v35 = vor.u32 %v2278_v37, %v2275_v3  ;;  %v2298_v22 = vrot.slane %v2296_v58, 5 }
  0x87   : > { %3269 = vmatpush3.bf16.msra.mxu0 %v3462_v1  ;;  %3175 = vmatmul.mubr.bf16.vlgmr.msra.gmra.mrb[0].mxu1 %v2757_v36  ;;  %v2293_v61 = vor.u32 %v2292_v9, %v2289_v33  ;;  %v2879_v1 = vcombine.low %v4024_v11, %v4031_v63  ;;  %v2206_v63 = vld [vmem:[#allocation2 + $0x40] sm:$0xf]  ;;  %v2301_v59 = vshrl.u32 %v2212_v23, 16  ;;  %v2304_v21 = vshll.u32 %v2212_v23, 16 }
  0x88   : > { %3278 = vmatprep.subr.bf16.mxu0 %v3465_v4  ;;  %3310 = vmatpush3.bf16.msra.mxu1 %v3465_v4  ;;  %v2229_v56 = vsel %vm3774_vm5, %v2224_v28, %v2228_v10  ;;  %v2243_v15 = vsel %vm3774_vm5, %v2238_v55, %v2242_v26  ;;  %v2280_v19 = vrot.slane %v2279_v35, 4  ;;  %v2259_v45 = vshrl.u32 %v2206_v63, 16 }
  0x89   : > { %3178 = vmatprep.mubr.bf16.mxu1 %v2758_v52  ;;  %3303 = vmatprep.subr.bf16.mxu1 %v3466_v8  ;;  %v2904_v46 = vcombine.low %v2229_v56, %v2243_v15  ;;  %v2294_v53 = vrot.slane %v2293_v61, 4  ;;  %v2318_v14 = vshll.u32 %v2214_v47, 16  ;;  %v2303_v20 = vrot.slane %v2301_v59, 4 }
  0x8a   : > { %3271 = vmatmul.mubr.bf16.vlgmr.msra.gmra.mrb[0].mxu0 %v2877_v7  ;;  %v2285_v11 = vsel %vm3774_vm5, %v2280_v19, %v2284_v6  ;;  %v2306_v39 = vrot.slane %v2304_v21, 5  ;;  %v2261_v48 = vrot.slane %v2259_v45, 4  ;;  %v2310_v51 = vshll.u32 %v2213_v54, 16 }
  0x8b   : > { %3279 = vmatpush3.bf16.msra.mxu0 %v3465_v4  ;;  %3274 = vmatprep.mubr.bf16.mxu0 %v2878_v17  ;;  %v2204_v4 = vld [vmem:[#allocation2 + $0x34] sm:$0xf]  ;;  %v2299_v36 = vsel %vm3774_vm5, %v2294_v53, %v2298_v22  ;;  %v2320_v57 = vrot.slane %v2318_v14, 5  ;;  %v2324_v16 = vshll.u32 %v2215_v38, 16  ;;  %v2254_v26 = vshll.u32 %v2205_v30, 16 }
  0x8c   : > { %3280 = vmatprep.subr.bf16.mxu0 %v3466_v8  ;;  %3311 = vmatpush3.bf16.msra.mxu1 %v3466_v8  ;;  %v2906_v34 = vcombine.low %v2285_v11, %v2299_v36  ;;  %v2245_v52 = vshrl.u32 %v2204_v4, 16  ;;  %v2248_v25 = vshll.u32 %v2204_v4, 16  ;;  %v2307_v0 = vor.u32 %v2306_v39, %v2303_v20 }
  0x8d   : > { %3304 = vmatprep.subr.bf16.mxu1 %v3469_v31  ;;  %v2268_v2 = vshll.u32 %v2207_v44, 16  ;;  %v2312_v27 = vrot.slane %v2310_v51, 5  ;;  %v2326_v42 = vrot.slane %v2324_v16, 5  ;;  %v2256_v32 = vrot.slane %v2254_v26, 5 }
  0x8e   : > { %v2247_v7 = vrot.slane %v2245_v52, 4  ;;  %v2250_v17 = vrot.slane %v2248_v25, 5  ;;  %v2308_v50 = vrot.slane %v2307_v0, 4 }
  0x8f   : > { %3281 = vmatpush3.bf16.msra.mxu0 %v3466_v8  ;;  %3179 = vmatmul.mubr.bf16.gmra.mrb[4].mxu1 %v4102_v41  ;;  %v2262_v8 = vshll.u32 %v2206_v63, 16  ;;  %v2315_v41 = vshrl.u32 %v2214_v47, 16  ;;  %v2270_v37 = vrot.slane %v2268_v2, 5 }
  0x90   : > { %3282 = vmatprep.subr.bf16.mxu0 %v3469_v31  ;;  %3312 = vmatpush3.bf16.msra.mxu1 %v3469_v31  ;;  %v2251_v18 = vor.u32 %v2250_v17, %v2247_v7  ;;  %v2313_v58 = vsel %vm3774_vm5, %v2308_v50, %v2312_v27 }
  0x91   : > { %3305 = vmatprep.subr.bf16.mxu1 %v3470_v43  ;;  %3298 = vmatprep.mubr.bf16.mxu1 %v2906_v34  ;;  %v2317_v40 = vrot.slane %v2315_v41, 4  ;;  %v2264_v5 = vrot.slane %v2262_v8, 5 }
  0x92   : > { %3275 = vmatmul.mubr.bf16.gmra.mrb[4].mxu0 %v2879_v1 }
  0x93   : > { %3283 = vmatpush3.bf16.msra.mxu0 %v3469_v31  ;;  %3294 = vmatprep.mubr.bf16.mxu0 %v2904_v46  ;;  %v2321_v10 = vor.u32 %v2320_v57, %v2317_v40  ;;  %v2265_v12 = vor.u32 %v2264_v5, %v2261_v48  ;;  %v2252_v31 = vrot.slane %v2251_v18, 4 }
  0x94   : > { %3284 = vmatprep.subr.bf16.mxu0 %v3470_v43  ;;  %3313 = vmatpush3.bf16.msra.mxu1 %v3470_v43 }
  0x95   : > { %3306 = vmatprep.subr.bf16.mxu1 %v3471_v60  ;;  %v2322_v24 = vrot.slane %v2321_v10, 4  ;;  %v2266_v3 = vrot.slane %v2265_v12, 4  ;;  %v2257_v33 = vsel %vm3774_vm5, %v2252_v31, %v2256_v32 }
  0x97   : > { %3285 = vmatpush3.bf16.msra.mxu0 %v3470_v43  ;;  %v2327_v28 = vsel %vm3774_vm5, %v2322_v24, %v2326_v42  ;;  %v2271_v9 = vsel %vm3774_vm5, %v2266_v3, %v2270_v37 }
  0x98   : > { %3286 = vmatprep.subr.bf16.mxu0 %v3471_v60  ;;  %3314 = vmatpush3.bf16.msra.mxu1 %v3471_v60  ;;  %v2907_v55 = vcombine.low %v2313_v58, %v2327_v28  ;;  %v2905_v35 = vcombine.low %v2257_v33, %v2271_v9 }
  0x99   : > { %3307 = vmatprep.subr.bf16.mxu1 %v3472_v13 }
  0x9b   : > { %3287 = vmatpush3.bf16.msra.mxu0 %v3471_v60 }
  0x9c   : > { %3288 = vmatprep.subr.bf16.mxu0 %v3472_v13  ;;  %3315 = vmatpush3.bf16.msra.mxu1 %v3472_v13 }
  0x9d   : > { %3308 = vmatprep.subr.bf16.mxu1 %v3473_v62 }
  0x9f   : > { %3289 = vmatpush3.bf16.msra.mxu0 %v3472_v13 }
  0xa0   : > { %3290 = vmatprep.subr.bf16.mxu0 %v3473_v62  ;;  %3316 = vmatpush3.bf16.msra.mxu1 %v3473_v62 }
  0xa1   : > { %3309 = vmatprep.subr.bf16.mxu1 %v3474_v29 }
  0xa3   : > { %3291 = vmatpush3.bf16.msra.mxu0 %v3473_v62 }
  0xa4   : > { %3292 = vmatprep.subr.bf16.mxu0 %v3474_v29  ;;  %3317 = vmatpush3.bf16.msra.mxu1 %v3474_v29 }
  0xa7   : > { %3293 = vmatpush3.bf16.msra.mxu0 %v3474_v29  ;;  %3299 = vmatmul.mubr.bf16.vlgmr.msra.gmra.mrb[8].mxu1 %v2907_v55 }
  0xaa   : > { %3295 = vmatmul.mubr.bf16.vlgmr.msra.gmra.mrb[0].mxu0 %v2905_v35 }
 0x15a   : > { %v3176_v6 = vpop.f32.mrb[0].mxu1 }
 0x15b   : > { %v1280_v56 = vpop.f32.mrb[1].mxu1 }
 0x15c   : > { %v3177_v61 = vpop.f32.mrb[2].mxu1 }
 0x15d   : > { %v1283_v22 = vpop.f32.mrb[3].mxu1 }
 0x162   : > { %v3180_v1 = vpop.f32.mrb[4].mxu1 }
 0x163   : > { %v1296_v43 = vpop.f32.mrb[5].mxu1 }
 0x164   : > { %v3181_v19 = vpop.f32.mrb[6].mxu1 }
 0x165   : > { %v3276_v15 = vpop.f32.mrb[4].mxu0  ;;  %v1299_v53 = vpop.f32.mrb[7].mxu1 }
 0x166   : > { %v3322_v23 = vadd.f32 %v3276_v15, %v3180_v1  ;;  %v2177_v46 = vpop.f32.mrb[5].mxu0 }
 0x167   : > { %v3324_v49 = vadd.f32 %v2177_v46, %v1296_v43  ;;  %v3277_v4 = vpop.f32.mrb[6].mxu0 }
 0x168   : > { %v3326_v11 = vadd.f32 %v3277_v4, %v3181_v19  ;;  %v2180_v63 = vpop.f32.mrb[7].mxu0 }
 0x169   : > { %v3328_v47 = vadd.f32 %v2180_v63, %v1299_v53 }
 0x17a   : > { %v3300_v36 = vpop.f32.mrb[8].mxu1 }
 0x17b   : > { %v3323_v59 = vadd.f32 %v3322_v23, %v3300_v36  ;;  %v2459_v21 = vpop.f32.mrb[9].mxu1 }
 0x17c   : > { %v3325_v34 = vadd.f32 %v3324_v49, %v2459_v21  ;;  %v3301_v52 = vpop.f32.mrb[10].mxu1 }
 0x17d   : > { %v3296_v60 = vpop.f32.mrb[0].mxu0  ;;  %v3327_v8 = vadd.f32 %v3326_v11, %v3301_v52  ;;  %v2462_v41 = vpop.f32.mrb[11].mxu1  ;;  %v2502_v24 = vmul.f32 %v3323_v59, %v3323_v59 }
 0x17e   : > { %v3318_v25 = vadd.f32 %v3296_v60, %v3176_v6  ;;  %v2443_v45 = vpop.f32.mrb[1].mxu0  ;;  %v3329_v39 = vadd.f32 %v3328_v47, %v2462_v41  ;;  %v2500_v18 = vmul.f32 %v3325_v34, %v3325_v34 }
 0x17f   : > { %v3319_v14 = vadd.f32 %v2443_v45, %v1280_v56  ;;  %v3297_v20 = vpop.f32.mrb[2].mxu0  ;;  %v2970_v13 = vpack.c.bf16 %v3327_v8, %v3323_v59  ;;  %v2503_v31 = vmul.f32 %v3327_v8, %v3327_v8 }
 0x180   : > { %v3320_v40 = vadd.f32 %v3297_v20, %v3177_v61  ;;  %v2446_v54 = vpop.f32.mrb[3].mxu0  ;;  %v2965_v57 = vpack.c.bf16 %v3329_v39, %v3325_v34  ;;  %v2498_v44 = vmul.f32 %v3318_v25, %v3318_v25  ;;  %v2501_v50 = vmul.f32 %v3329_v39, %v3329_v39 }
 0x181   : > { %v3321_v38 = vadd.f32 %v2446_v54, %v1283_v22  ;;  %2977 = vst [vmem:[%s231_s20 + $0x18] sm:$0xff] %v2970_v13   ;;  %v2496_v17 = vmul.f32 %v3319_v14, %v3319_v14 }
 0x182   : > { %v2960_v7 = vpack.c.bf16 %v3320_v40, %v3318_v25  ;;  %2976 = vst [vmem:[%s231_s20 + $0x10] sm:$0xff] %v2965_v57   ;;  %v2499_v10 = vmul.f32 %v3320_v40, %v3320_v40 }
 0x183   : > { %v2482_v48 = vadd.f32 %v3321_v38, %v3319_v14  ;;  %v2497_v5 = vmul.f32 %v3321_v38, %v3321_v38  ;;  %v2955_v30 = vpack.c.bf16 %v3321_v38, %v3319_v14 }
 0x184   : > { %2975 = vst [vmem:[%s231_s20 + $0x8] sm:$0xff] %v2960_v7  }
 0x185   : > { %v2483_v0 = vadd.f32 %v3318_v25, %v2482_v48  ;;  %v2504_v51 = vadd.f32 %v2497_v5, %v2496_v17  ;;  %2956 = vst [vmem:[%s231_s20] sm:$0xff] %v2955_v30  }
 0x187   : > { %v2505_v16 = vadd.f32 %v2504_v51, %v2498_v44  ;;  %v2484_v62 = vadd.f32 %v3320_v40, %v2483_v0 }
 0x189   : > { %v2485_v26 = vadd.f32 %v3325_v34, %v2484_v62  ;;  %v2506_v12 = vadd.f32 %v2505_v16, %v2499_v10 }
 0x18b   : > { %v2486_v2 = vadd.f32 %v3329_v39, %v2485_v26  ;;  %v2507_v27 = vadd.f32 %v2506_v12, %v2500_v18 }
 0x18d   : > { %v2487_v42 = vadd.f32 %v3323_v59, %v2486_v2  ;;  %v2508_v29 = vadd.f32 %v2507_v27, %v2501_v50 }
 0x18f   : > { %v2488_v32 = vadd.f32 %v3327_v8, %v2487_v42  ;;  %v2509_v3 = vadd.f32 %v2508_v29, %v2502_v24 }
 0x191   : > { %v2489_v37 = vrot.slane %v2488_v32, 4  ;;  %v2510_v58 = vadd.f32 %v2509_v3, %v2503_v31 }
 0x193   : > { %v2490_v28 = vadd.f32 %v2489_v37, %v2488_v32  ;;  %v2511_v33 = vrot.slane %v2510_v58, 4 }
 0x195   : > { %v2491_v9 = vrot.slane %v2490_v28, 2  ;;  %v2512_v55 = vadd.f32 %v2511_v33, %v2510_v58 }
 0x197   : > { %v2492_v35 = vadd.f32 %v2491_v9, %v2490_v28  ;;  %v2513_v6 = vrot.slane %v2512_v55, 2 }
 0x199   : > { %v2493_v56 = vrot.slane %v2492_v35, 1  ;;  %v2514_v61 = vadd.f32 %v2513_v6, %v2512_v55 }
 0x19b   : > { %v2494_v22 = vadd.f32 %v2493_v56, %v2492_v35  ;;  %v2515_v1 = vrot.slane %v2514_v61, 1 }
 0x19d   : > { %2495 = vst [vmem:[%s235_s23] sm:$0x1] %v2494_v22  ;;  %v2516_v43 = vadd.f32 %v2515_v1, %v2514_v61 }
 0x19f   : > { %2517 = vst [vmem:[%s235_s23 + $0x1] sm:$0x1] %v2516_v43 }
 0x1a0 PF: > { %s16_s18 = sadd.s32 1, %s3481_s18  }
 0x1a1   : > { %p13_p4 = scmp.ge.s32.totalorder %s16_s18, 4  }
 0x1a3   :  { %15 = sbr.rel (!%p13_p4) target bundleno = 1 (0x1), region = 88 }

</bundles_post_ra>
